<compile_context>
chip_gen: v5e
topology: v5e:2x2
jax: 0.10.0
libtpu: 0.0.40
codegen_flags: <defaults>
</compile_context>

<pallas_src>
import math
import functools

import jax
import jax.numpy as jnp
from jax.experimental import pallas as pl
from jax.experimental.pallas import tpu as pltpu


def _round_up(a, b):
    return ((a + b - 1) // b) * b


def _pick_tap_group(k_taps, cout):
    """Largest power-of-two divisor G of k_taps (G >= 8 for sublane-aligned
    slices) grown until the packed matmul N-dim (G*cout) fills a 128-lane MXU
    pass."""
    if k_taps % 8 != 0:
        return 1
    g = 8
    while (k_taps % (2 * g) == 0) and (g * cout < 128):
        g *= 2
    return g


def _pick_batch_block(n):
    """Batch block for the spiking kernel: multiple of 8 (tiling rule on the
    (NB, num_classes) output block) and >= 2 blocks when possible so v7x's
    two TensorCores both get work on the 'parallel' axis."""
    for nb in (32, 16, 8):
        if n % nb == 0 and n // nb >= 2:
            return nb
    if n % 8 == 0:
        return min(n, 32)
    return n          # small batches: single block spanning the whole batch


# ----------------------------------------------------------------------------
# Kernel 1: Conv1d (+ folded BatchNorm1d), one batch item per grid step.
# Tap-packed bf16 MXU matmuls accumulate into a wide local accumulator which
# is collapsed (G shifted lane-block adds) once per time tile.
# ----------------------------------------------------------------------------
def _conv1d_bn_kernel(x_ref, w_ref, b_ref, y_ref, *, n_groups, group, t_out,
                      t_tile):
    # x_ref : (1, T_in_pad, Cin)        bf16  time-padded input, one batch item
    # w_ref : (n_groups, Cin, G*cout)   bf16  tap-packed weights, BN1 folded
    # b_ref : (1, cout)                 f32   bias with BN1 folded
    # y_ref : (1, t_out, cout)          bf16  conv output (time x channel)
    cout = y_ref.shape[2]
    gcout = w_ref.shape[2]
    n_tiles = (t_out + t_tile - 1) // t_tile
    for ti in range(n_tiles):                       # bounds VMEM for long T
        t0 = ti * t_tile
        tlen = min(t_tile, t_out - t0)
        # Wide accumulator: G tap results side by side along lanes; only
        # n_groups accumulations (local value), not K1 scratch RMWs.
        acc = jnp.zeros((tlen + group - 1, gcout), jnp.float32)
        for gi in range(n_groups):                  # unrolled group loop (MXU)
            base = t0 + gi * group                  # 8-aligned slice start
            acc = acc + jnp.dot(
                x_ref[0, base:base + tlen + group - 1, :], w_ref[gi],
                preferred_element_type=jnp.float32)
        # Collapse the G time-shifted lane blocks into the conv output.
        res = acc[0:tlen, 0:cout]
        for s in range(1, group):
            res = res + acc[s:s + tlen, s * cout:(s + 1) * cout]
        y_ref[0, t0:t0 + tlen, :] = (res + b_ref[...]).astype(y_ref.dtype)


# ----------------------------------------------------------------------------
# Kernel 2: phase-split spiking pipeline.  Grid = (batch_blocks, time_chunks).
# ----------------------------------------------------------------------------
def _snn_spike_kernel(alpha_ref, y_ref, B2_ref, b2_ref, wfc_ref, bfc_ref,
                      out_ref, v1_ref, v2_ref, acc_ref, s1_ref, *,
                      t_chunk, t_valid):
    # alpha_ref: (1,) f32 SMEM          sigmoid(PLIF w) = 1/tau
    # y_ref    : (NB, Tt, cout) bf16    Conv1d+BN1 output chunk
    # B2_ref   : (cout, C2) f32         Conv2d((64,1))-as-matrix, BN2 folded
    # b2_ref   : (1, C2) f32 ; wfc_ref: (C2, NC) f32 ; bfc_ref: (1, NC) f32
    # out_ref  : (NB, NC) f32
    # scratch  : v1 (NB,cout), v2 (NB,C2), acc (NB,C2), s1 (Tt,NB,cout)
    tb = pl.program_id(1)                           # time-chunk index (inner)

    @pl.when(tb == 0)
    def _():
        v1_ref[...] = jnp.zeros_like(v1_ref)
        v2_ref[...] = jnp.zeros_like(v2_ref)
        acc_ref[...] = jnp.zeros_like(acc_ref)

    alpha = alpha_ref[0]
    yc = y_ref[...].astype(jnp.float32)             # one bulk bf16->f32 cvt

    # ---- Phase 1: PLIF #1 recurrence (pure VPU), stage spikes in VMEM -------
    v1 = v1_ref[...]
    for i in range(t_chunk):                        # unrolled sequential steps
        v1 = v1 + (yc[:, i, :] - v1) * alpha        # charge
        s1 = (v1 >= 1.0).astype(jnp.float32)        # fire (v_th = 1)
        v1 = v1 * (1.0 - s1)                        # hard reset to 0
        s1_ref[i] = s1
    v1_ref[...] = v1

    # ---- Phase 2: ONE batched channel-mix matmul on the MXU -----------------
    nb, cout = v1_ref.shape
    c2 = v2_ref.shape[1]
    s1_all = s1_ref[...].reshape(t_chunk * nb, cout)
    z_all = (jnp.dot(s1_all, B2_ref[...], preferred_element_type=jnp.float32)
             + b2_ref[...]).reshape(t_chunk, nb, c2)

    # ---- Phase 3: PLIF #2 recurrence + masked spike accumulation ------------
    base = tb * t_chunk
    v2 = v2_ref[...]
    acc = acc_ref[...]
    for i in range(t_chunk):
        v2 = v2 + (z_all[i] - v2) * alpha
        s2 = (v2 >= 1.0).astype(jnp.float32)
        v2 = v2 * (1.0 - s2)
        # Only the accumulator needs masking in the padded tail; stale
        # membrane state past t_valid is never consumed (padding is trailing).
        acc = acc + jnp.where(base + i < t_valid, s2, 0.0)
    v2_ref[...] = v2
    acc_ref[...] = acc

    @pl.when(tb == pl.num_programs(1) - 1)
    def _():
        feat = acc * (1.0 / t_valid)                # torch.mean(out, dim=0)
        # Linear layer (Dropout is identity at inference)
        out_ref[...] = (jnp.dot(feat, wfc_ref[...],
                                preferred_element_type=jnp.float32)
                        + bfc_ref[...]).astype(out_ref.dtype)


# ----------------------------------------------------------------------------
# Wrapper
# ----------------------------------------------------------------------------
def net_forward(x, params, *, K1=64, P1=16, K2=64, P2=32, time_chunk=64,
                conv_time_tile=512):
    if x.ndim == 4:
        x = jnp.squeeze(x, axis=1)
    x = x.astype(jnp.float32)
    N, Cin, T = x.shape
    cout = params["w1"].shape[0]
    eps = 1e-5

    Tp = T + 2 * P1 - K1 + 1                 # Conv1d output length (real steps)
    C2 = cout + 2 * P2 - K2 + 1              # Conv2d output "height" = cout + 1

    # Time chunking for the spiking kernel (multiple of 16 for bf16 tiling);
    # steps in [Tp, Tp_pad) are masked inside the kernel.
    Tt = max(16, _round_up(min(time_chunk, Tp), 16))
    Tp_pad = _round_up(Tp, Tt)
    n_chunks = Tp_pad // Tt
    T_in_pad = Tp_pad + K1 - 1               # padded input time length

    # ---------------- TC branch: Conv1d + BN1 (folded), tap-packed bf16 ------
    G = _pick_tap_group(K1, cout)
    n_groups = K1 // G

    xT = jnp.transpose(x, (0, 2, 1))                                   # (N, T, Cin)
    xT_pad = jnp.pad(xT, ((0, 0), (P1, T_in_pad - T - P1), (0, 0)))
    xT_pad = xT_pad.astype(jnp.bfloat16)                               # halve HBM read

    scale1 = params["bn1_gamma"] / jnp.sqrt(params["bn1_var"] + eps)   # (cout,)
    w_taps = (jnp.transpose(params["w1"], (2, 1, 0))
              * scale1[None, None, :])                                 # (K1, Cin, cout)
    # (K1, Cin, cout) -> (n_groups, Cin, G*cout): the G taps of a group sit
    # side by side along the MXU lane dimension.
    w_packed = (jnp.transpose(w_taps.reshape(n_groups, G, Cin, cout), (0, 2, 1, 3))
                .reshape(n_groups, Cin, G * cout).astype(jnp.bfloat16))
    b1_eff = (params["b1"] - params["bn1_mean"]) * scale1 + params["bn1_beta"]

    conv_kernel = functools.partial(
        _conv1d_bn_kernel, n_groups=n_groups, group=G, t_out=Tp_pad,
        t_tile=int(conv_time_tile))
    y1 = pl.pallas_call(
        conv_kernel,
        out_shape=jax.ShapeDtypeStruct((N, Tp_pad, cout), jnp.bfloat16),
        grid=(N,),
        in_specs=[
            pl.BlockSpec((1, T_in_pad, Cin), lambda n: (n, 0, 0)),
            pl.BlockSpec((n_groups, Cin, G * cout), lambda n: (0, 0, 0)),
            pl.BlockSpec((1, cout), lambda n: (0, 0)),
        ],
        out_specs=pl.BlockSpec((1, Tp_pad, cout), lambda n: (n, 0, 0)),
        compiler_params=pltpu.CompilerParams(dimension_semantics=("parallel",)),
    )(xT_pad, w_packed, b1_eff[None, :])

    # ---------------- SC branch params: Conv2d((64,1)) as channel-matrix ------
    c_idx = jnp.arange(cout)[:, None]                                  # input channel
    h_idx = jnp.arange(C2)[None, :]                                    # output channel
    k_idx = c_idx - h_idx + P2
    valid = (k_idx >= 0) & (k_idx < K2)
    B2 = jnp.where(valid, params["w2"][jnp.clip(k_idx, 0, K2 - 1)], 0.0)  # (cout, C2)

    scale2 = params["bn2_gamma"] / jnp.sqrt(params["bn2_var"] + eps)   # (C2,)
    B2_eff = B2 * scale2[None, :]
    bias2_eff = (params["b2"] - params["bn2_mean"]) * scale2 + params["bn2_beta"]

    wfc_t = params["wfc"].T                                            # (C2, num_classes)
    bfc = params["bfc"][None, :]
    NC = wfc_t.shape[1]

    # PLIF leak factor as an SMEM scalar (safe when params are traced / jitted).
    alpha = jnp.reshape(jnp.asarray(params["alpha"], jnp.float32), (1,))

    NB = _pick_batch_block(N)
    n_bblk = N // NB

    spike_kernel = functools.partial(_snn_spike_kernel, t_chunk=Tt,
                                     t_valid=int(Tp))
    out = pl.pallas_call(
        spike_kernel,
        out_shape=jax.ShapeDtypeStruct((N, NC), jnp.float32),
        grid=(n_bblk, n_chunks),
        in_specs=[
            pl.BlockSpec(memory_space=pltpu.MemorySpace.SMEM),          # alpha
            pl.BlockSpec((NB, Tt, cout), lambda b, t: (b, t, 0)),
            pl.BlockSpec((cout, C2), lambda b, t: (0, 0)),
            pl.BlockSpec((1, C2), lambda b, t: (0, 0)),
            pl.BlockSpec((C2, NC), lambda b, t: (0, 0)),
            pl.BlockSpec((1, NC), lambda b, t: (0, 0)),
        ],
        out_specs=pl.BlockSpec((NB, NC), lambda b, t: (b, 0)),
        scratch_shapes=[
            pltpu.VMEM((NB, cout), jnp.float32),    # membrane potential, PLIF #1
            pltpu.VMEM((NB, C2), jnp.float32),      # membrane potential, PLIF #2
            pltpu.VMEM((NB, C2), jnp.float32),      # spike accumulator (time mean)
            pltpu.VMEM((Tt, NB, cout), jnp.float32),  # staged PLIF #1 spikes
        ],
        compiler_params=pltpu.CompilerParams(
            dimension_semantics=("parallel", "arbitrary")),
    )(alpha, y1, B2_eff, bias2_eff[None, :], wfc_t, bfc)
    return out


# ----------------------------------------------------------------------------
# Deterministic parameter init (shapes follow Net.__init__; synthetic values)
# ----------------------------------------------------------------------------
def init_params(key, in_channels, cout, num_classes, tau):
    C2 = cout + 1
    ks = jax.random.split(key, 8)
    return dict(
        # TC: Conv1d(in_channels, cout, kernel=64) + BatchNorm1d(cout)
        w1=jax.random.normal(ks[0], (cout, in_channels, 64), jnp.float32) * 0.05,
        b1=jax.random.normal(ks[1], (cout,), jnp.float32) * 0.1,
        bn1_gamma=jnp.ones((cout,), jnp.float32)
        + 0.1 * jax.random.normal(ks[2], (cout,), jnp.float32),
        bn1_beta=0.1 * jax.random.normal(ks[3], (cout,), jnp.float32),
        bn1_mean=jnp.zeros((cout,), jnp.float32),
        bn1_var=jnp.ones((cout,), jnp.float32),
        # SC: Conv2d(1, 1, (64, 1)) + BatchNorm1d(cout + 1)
        w2=jax.random.normal(ks[4], (64,), jnp.float32) * 0.5,
        b2=jnp.float32(0.05),
        bn2_gamma=1.5 * jnp.ones((C2,), jnp.float32),
        bn2_beta=jnp.zeros((C2,), jnp.float32),
        bn2_mean=jnp.zeros((C2,), jnp.float32),
        bn2_var=jnp.ones((C2,), jnp.float32),
        # fc: Linear(cout + 1, num_classes)
        wfc=jax.random.normal(ks[5], (num_classes, C2), jnp.float32) * 0.3,
        bfc=jax.random.normal(ks[6], (num_classes,), jnp.float32) * 0.1,
        # ParametricLIF: sigmoid(-log(tau - 1)) == 1 / tau
        alpha=jnp.float32(1.0 / tau),
    )


if __name__ == "__main__":
    tau = math.exp(-0.5) + 1.0
    in_channels, cout, num_classes = 8, 4, 3        # small stand-ins for 80 / 40 / 3
    N, T = 2, 120                                   # Tp = 89 -> 3 chunks, masked tail

    key = jax.random.PRNGKey(0)
    kx, kp = jax.random.split(key)
    x = jax.random.normal(kx, (N, 1, in_channels, T), jnp.float32)   # (B, 1, C, T)
    params = init_params(kp, in_channels, cout, num_classes, tau)

    out = net_forward(x, params, time_chunk=32)
    out = jax.block_until_ready(out)
    assert out.shape == (N, num_classes) and out.dtype == jnp.float32
    print("KERNEL_OK")
</pallas_src>

<mosaic_0001>
module attributes {stable_mosaic.version = 11 : i64} {
  func.func @_conv1d_bn_kernel(%arg0: i32, %arg1: memref<1x159x8xbf16, #tpu.memory_space<vmem>>, %arg2: memref<2x8x128xbf16, #tpu.memory_space<vmem>>, %arg3: memref<1x4xf32, #tpu.memory_space<vmem>>, %arg4: memref<1x96x4xbf16, #tpu.memory_space<vmem>>) attributes {dimension_semantics = [#tpu.dimension_semantics<parallel>], iteration_bounds = array<i64: 2>, scalar_prefetch = 0 : i64, scratch_operands = 0 : i64, tpu.core_type = #tpu.core_type<tc>, window_params = [{transform_indices = @transform_0, window_bounds = array<i64: 1, 159, 8>}, {pipeline_mode = #tpu.pipeline_mode<synchronous>, transform_indices = @transform_1, window_bounds = array<i64: 2, 8, 128>}, {pipeline_mode = #tpu.pipeline_mode<synchronous>, transform_indices = @transform_2, window_bounds = array<i64: 1, 4>}, {transform_indices = @transform_3, window_bounds = array<i64: 1, 96, 4>}]} {
    %cst = arith.constant 0.000000e+00 : f32
    %0 = vector.broadcast %cst : f32 to vector<127x128xf32>
    %c0 = arith.constant 0 : index
    %c0_0 = arith.constant 0 : index
    %c0_1 = arith.constant 0 : index
    %1 = vector.load %arg1[%c0, %c0_0, %c0_1] : memref<1x159x8xbf16, #tpu.memory_space<vmem>>, vector<1x127x8xbf16>
    %2 = vector.shape_cast %1 : vector<1x127x8xbf16> to vector<127x8xbf16>
    %c0_2 = arith.constant 0 : index
    %c0_3 = arith.constant 0 : index
    %c0_4 = arith.constant 0 : index
    %3 = vector.load %arg2[%c0_2, %c0_3, %c0_4] : memref<2x8x128xbf16, #tpu.memory_space<vmem>>, vector<1x8x128xbf16>
    %4 = vector.shape_cast %3 : vector<1x8x128xbf16> to vector<8x128xbf16>
    %cst_5 = arith.constant dense<0.000000e+00> : vector<127x128xf32>
    %5 = tpu.matmul %2, %4, %cst_5 {dimension_numbers = #tpu.dot_dimension_numbers<[1], [0], [0], [1], [0, 0, 1, 1], [], []>} : vector<127x8xbf16>, vector<8x128xbf16>, vector<127x128xf32> -> vector<127x128xf32>
    %6 = arith.addf %0, %5 : vector<127x128xf32>
    %c0_6 = arith.constant 0 : index
    %c32 = arith.constant 32 : index
    %c0_7 = arith.constant 0 : index
    %7 = vector.load %arg1[%c0_6, %c32, %c0_7] : memref<1x159x8xbf16, #tpu.memory_space<vmem>>, vector<1x127x8xbf16>
    %8 = vector.shape_cast %7 : vector<1x127x8xbf16> to vector<127x8xbf16>
    %c1 = arith.constant 1 : index
    %c0_8 = arith.constant 0 : index
    %c0_9 = arith.constant 0 : index
    %9 = vector.load %arg2[%c1, %c0_8, %c0_9] : memref<2x8x128xbf16, #tpu.memory_space<vmem>>, vector<1x8x128xbf16>
    %10 = vector.shape_cast %9 : vector<1x8x128xbf16> to vector<8x128xbf16>
    %cst_10 = arith.constant dense<0.000000e+00> : vector<127x128xf32>
    %11 = tpu.matmul %8, %10, %cst_10 {dimension_numbers = #tpu.dot_dimension_numbers<[1], [0], [0], [1], [0, 0, 1, 1], [], []>} : vector<127x8xbf16>, vector<8x128xbf16>, vector<127x128xf32> -> vector<127x128xf32>
    %12 = arith.addf %6, %11 : vector<127x128xf32>
    %13 = vector.extract_strided_slice %12 {offsets = [0, 0], sizes = [96, 4], strides = [1, 1]} : vector<127x128xf32> to vector<96x4xf32>
    %14 = vector.extract_strided_slice %12 {offsets = [1, 4], sizes = [96, 4], strides = [1, 1]} : vector<127x128xf32> to vector<96x4xf32>
    %15 = arith.addf %13, %14 : vector<96x4xf32>
    %16 = vector.extract_strided_slice %12 {offsets = [2, 8], sizes = [96, 4], strides = [1, 1]} : vector<127x128xf32> to vector<96x4xf32>
    %17 = arith.addf %15, %16 : vector<96x4xf32>
    %18 = vector.extract_strided_slice %12 {offsets = [3, 12], sizes = [96, 4], strides = [1, 1]} : vector<127x128xf32> to vector<96x4xf32>
    %19 = arith.addf %17, %18 : vector<96x4xf32>
    %20 = vector.extract_strided_slice %12 {offsets = [4, 16], sizes = [96, 4], strides = [1, 1]} : vector<127x128xf32> to vector<96x4xf32>
    %21 = arith.addf %19, %20 : vector<96x4xf32>
    %22 = vector.extract_strided_slice %12 {offsets = [5, 20], sizes = [96, 4], strides = [1, 1]} : vector<127x128xf32> to vector<96x4xf32>
    %23 = arith.addf %21, %22 : vector<96x4xf32>
    %24 = vector.extract_strided_slice %12 {offsets = [6, 24], sizes = [96, 4], strides = [1, 1]} : vector<127x128xf32> to vector<96x4xf32>
    %25 = arith.addf %23, %24 : vector<96x4xf32>
    %26 = vector.extract_strided_slice %12 {offsets = [7, 28], sizes = [96, 4], strides = [1, 1]} : vector<127x128xf32> to vector<96x4xf32>
    %27 = arith.addf %25, %26 : vector<96x4xf32>
    %28 = vector.extract_strided_slice %12 {offsets = [8, 32], sizes = [96, 4], strides = [1, 1]} : vector<127x128xf32> to vector<96x4xf32>
    %29 = arith.addf %27, %28 : vector<96x4xf32>
    %30 = vector.extract_strided_slice %12 {offsets = [9, 36], sizes = [96, 4], strides = [1, 1]} : vector<127x128xf32> to vector<96x4xf32>
    %31 = arith.addf %29, %30 : vector<96x4xf32>
    %32 = vector.extract_strided_slice %12 {offsets = [10, 40], sizes = [96, 4], strides = [1, 1]} : vector<127x128xf32> to vector<96x4xf32>
    %33 = arith.addf %31, %32 : vector<96x4xf32>
    %34 = vector.extract_strided_slice %12 {offsets = [11, 44], sizes = [96, 4], strides = [1, 1]} : vector<127x128xf32> to vector<96x4xf32>
    %35 = arith.addf %33, %34 : vector<96x4xf32>
    %36 = vector.extract_strided_slice %12 {offsets = [12, 48], sizes = [96, 4], strides = [1, 1]} : vector<127x128xf32> to vector<96x4xf32>
    %37 = arith.addf %35, %36 : vector<96x4xf32>
    %38 = vector.extract_strided_slice %12 {offsets = [13, 52], sizes = [96, 4], strides = [1, 1]} : vector<127x128xf32> to vector<96x4xf32>
    %39 = arith.addf %37, %38 : vector<96x4xf32>
    %40 = vector.extract_strided_slice %12 {offsets = [14, 56], sizes = [96, 4], strides = [1, 1]} : vector<127x128xf32> to vector<96x4xf32>
    %41 = arith.addf %39, %40 : vector<96x4xf32>
    %42 = vector.extract_strided_slice %12 {offsets = [15, 60], sizes = [96, 4], strides = [1, 1]} : vector<127x128xf32> to vector<96x4xf32>
    %43 = arith.addf %41, %42 : vector<96x4xf32>
    %44 = vector.extract_strided_slice %12 {offsets = [16, 64], sizes = [96, 4], strides = [1, 1]} : vector<127x128xf32> to vector<96x4xf32>
    %45 = arith.addf %43, %44 : vector<96x4xf32>
    %46 = vector.extract_strided_slice %12 {offsets = [17, 68], sizes = [96, 4], strides = [1, 1]} : vector<127x128xf32> to vector<96x4xf32>
    %47 = arith.addf %45, %46 : vector<96x4xf32>
    %48 = vector.extract_strided_slice %12 {offsets = [18, 72], sizes = [96, 4], strides = [1, 1]} : vector<127x128xf32> to vector<96x4xf32>
    %49 = arith.addf %47, %48 : vector<96x4xf32>
    %50 = vector.extract_strided_slice %12 {offsets = [19, 76], sizes = [96, 4], strides = [1, 1]} : vector<127x128xf32> to vector<96x4xf32>
    %51 = arith.addf %49, %50 : vector<96x4xf32>
    %52 = vector.extract_strided_slice %12 {offsets = [20, 80], sizes = [96, 4], strides = [1, 1]} : vector<127x128xf32> to vector<96x4xf32>
    %53 = arith.addf %51, %52 : vector<96x4xf32>
    %54 = vector.extract_strided_slice %12 {offsets = [21, 84], sizes = [96, 4], strides = [1, 1]} : vector<127x128xf32> to vector<96x4xf32>
    %55 = arith.addf %53, %54 : vector<96x4xf32>
    %56 = vector.extract_strided_slice %12 {offsets = [22, 88], sizes = [96, 4], strides = [1, 1]} : vector<127x128xf32> to vector<96x4xf32>
    %57 = arith.addf %55, %56 : vector<96x4xf32>
    %58 = vector.extract_strided_slice %12 {offsets = [23, 92], sizes = [96, 4], strides = [1, 1]} : vector<127x128xf32> to vector<96x4xf32>
    %59 = arith.addf %57, %58 : vector<96x4xf32>
    %60 = vector.extract_strided_slice %12 {offsets = [24, 96], sizes = [96, 4], strides = [1, 1]} : vector<127x128xf32> to vector<96x4xf32>
    %61 = arith.addf %59, %60 : vector<96x4xf32>
    %62 = vector.extract_strided_slice %12 {offsets = [25, 100], sizes = [96, 4], strides = [1, 1]} : vector<127x128xf32> to vector<96x4xf32>
    %63 = arith.addf %61, %62 : vector<96x4xf32>
    %64 = vector.extract_strided_slice %12 {offsets = [26, 104], sizes = [96, 4], strides = [1, 1]} : vector<127x128xf32> to vector<96x4xf32>
    %65 = arith.addf %63, %64 : vector<96x4xf32>
    %66 = vector.extract_strided_slice %12 {offsets = [27, 108], sizes = [96, 4], strides = [1, 1]} : vector<127x128xf32> to vector<96x4xf32>
    %67 = arith.addf %65, %66 : vector<96x4xf32>
    %68 = vector.extract_strided_slice %12 {offsets = [28, 112], sizes = [96, 4], strides = [1, 1]} : vector<127x128xf32> to vector<96x4xf32>
    %69 = arith.addf %67, %68 : vector<96x4xf32>
    %70 = vector.extract_strided_slice %12 {offsets = [29, 116], sizes = [96, 4], strides = [1, 1]} : vector<127x128xf32> to vector<96x4xf32>
    %71 = arith.addf %69, %70 : vector<96x4xf32>
    %72 = vector.extract_strided_slice %12 {offsets = [30, 120], sizes = [96, 4], strides = [1, 1]} : vector<127x128xf32> to vector<96x4xf32>
    %73 = arith.addf %71, %72 : vector<96x4xf32>
    %74 = vector.extract_strided_slice %12 {offsets = [31, 124], sizes = [96, 4], strides = [1, 1]} : vector<127x128xf32> to vector<96x4xf32>
    %75 = arith.addf %73, %74 : vector<96x4xf32>
    %c0_11 = arith.constant 0 : index
    %c0_12 = arith.constant 0 : index
    %76 = vector.load %arg3[%c0_11, %c0_12] : memref<1x4xf32, #tpu.memory_space<vmem>>, vector<1x4xf32>
    %77 = vector.broadcast %76 : vector<1x4xf32> to vector<96x4xf32>
    %78 = arith.addf %75, %77 : vector<96x4xf32>
    %79 = arith.truncf %78 : vector<96x4xf32> to vector<96x4xbf16>
    %c0_13 = arith.constant 0 : index
    %c0_14 = arith.constant 0 : index
    %c0_15 = arith.constant 0 : index
    %80 = vector.load %arg4[%c0_13, %c0_14, %c0_15] : memref<1x96x4xbf16, #tpu.memory_space<vmem>>, vector<1x96x4xbf16>
    %81 = vector.shape_cast %80 : vector<1x96x4xbf16> to vector<96x4xbf16>
    %82 = vector.shape_cast %79 : vector<96x4xbf16> to vector<1x96x4xbf16>
    tpu.vector_store %arg4[%c0_13, %c0_14, %c0_15], %82 {strides = array<i32>} : memref<1x96x4xbf16, #tpu.memory_space<vmem>>, vector<1x96x4xbf16>,
    return
  }
  func.func @transform_0(%arg0: i32) -> (i32, i32, i32) {
    %c0_i32 = arith.constant 0 : i32
    %c0_i32_0 = arith.constant 0 : i32
    %c0_i32_1 = arith.constant 0 : i32
    return %arg0, %c0_i32, %c0_i32_0 : i32, i32, i32
  }
  func.func @transform_1(%arg0: i32) -> (i32, i32, i32) {
    %c0_i32 = arith.constant 0 : i32
    %c0_i32_0 = arith.constant 0 : i32
    %c0_i32_1 = arith.constant 0 : i32
    %c0_i32_2 = arith.constant 0 : i32
    return %c0_i32, %c0_i32_0, %c0_i32_1 : i32, i32, i32
  }
  func.func @transform_2(%arg0: i32) -> (i32, i32) {
    %c0_i32 = arith.constant 0 : i32
    %c0_i32_0 = arith.constant 0 : i32
    %c0_i32_1 = arith.constant 0 : i32
    return %c0_i32, %c0_i32_0 : i32, i32
  }
  func.func @transform_3(%arg0: i32) -> (i32, i32, i32) {
    %c0_i32 = arith.constant 0 : i32
    %c0_i32_0 = arith.constant 0 : i32
    %c0_i32_1 = arith.constant 0 : i32
    return %arg0, %c0_i32, %c0_i32_0 : i32, i32, i32
  }
}

</mosaic_0001>

<bundles_post_ra>
// kernel: tpu_custom_call.1
= control target key start
LH: loop header
LB: loop body
LE: loop exit
PB: predicated region body
PF: predicated region fallthrough
CT: control target
= control target key end

     0   :  { %s2383_s12 = smov 0   ;;  %s4464_s0 = inlined_call_operand.vmem [shape: bf16[2,159,8], index: 0, kind: input, shape index: {}]   ;;  %s4465_s1 = inlined_call_operand.vmem [shape: bf16[2,8,128], index: 1, kind: input, shape index: {}]   ;;  %s4466_s2 = inlined_call_operand.vmem [shape: f32[1,4], index: 2, kind: input, shape index: {}]   ;;  %s4467_s3 = inlined_call_operand.vmem [shape: bf16[2,96,4], index: 3, kind: output, shape index: {}]  }
   0x1 LB: > { %s2204_s13 = sadd.s32 4294967295, %s2330_s12   ;;  %p2208_p0 = scmp.ge.s32.totalorder %s2330_s12, 1  ;;  %s2330_s12 = sphi %s2383_s12, %s13_s12  }
   0x2   : > { %p137_p1 = scmp.lt.s32.totalorder %s2330_s12, 3 }
   0x4   : > { %p138_p2 = pnand %p2208_p0, %p137_p1 }
   0x6   : > { %141 = sbr.rel (%p138_p2) target bundleno = 1272 (0x4f8), region = 32 }
   0xb   : > { %v2211_v0 = vld [vmem:[%s4465_s1 + $0x4] sm:$0xf]  ;;  %vm260_vm0 = vcmask 1043456   ;;  %v188_v1 = vld [vmem:[%s4465_s1] sm:$0xf]  ;;  %p161_p3 = scmp.lt.s32.totalorder %s2204_s13, 1 }
   0xc   : > { %v262_v2 = vsel %vm260_vm0, %v2211_v0, 0  ;;  %v330_v3 = vsel %vm260_vm0, %v188_v1, 0  ;;  %vm235_vm1 = vcmask 64512   ;;  %vm394_vm2 = vcmask 1046528   ;;  %s2332_s22 = smov 124   ;;  %s2333_s23 = smov 120  }
   0xd   : > { %271 = vmatpush.bf16.msra.mxu0 %v262_v2  ;;  %2280 = vmatpush.bf16.msra.mxu2 %v262_v2  ;;  %s5308_s13 = smov (!%p161_p3, %s2204_s13), 1  ;;  %vm468_vm3 = vcmask 1045504   ;;  %vm542_vm4 = vcmask 1044480   ;;  %s2334_s24 = smov 116   ;;  %vm689_vm5 = vcmask 1042432   ;;  %vm763_vm6 = vcmask 1041408  }
   0xe   : > { %339 = vmatpush.bf16.msra.mxu1 %v330_v3  ;;  %2281 = vmatpush.bf16.msra.mxu3 %v330_v3  ;;  %s2282_s18 = smul.u32 80, %s5308_s13  ;;  %s2335_s25 = smov 112   ;;  %vm837_vm7 = vcmask 1040384   ;;  %vm2136_vm8 = vcmask 27648  }
   0xf   : > { %s2336_s26 = smov 108   ;;  %s2337_s27 = smov 104  }
  0x10   : > { %s165_s21 = scalar_lea.vmem %s4464_s0, %s2282_s18  ;;  %s2338_s28 = smov 100  }
  0x11   : > { %v2272_v4 = vld [vmem:[%s165_s21 + $0x10] sm:$0xff]  ;;  %v2270_v6 = vld [vmem:[%s165_s21] sm:$0xff]  ;;  %v2273_v8 = vld [vmem:[%s165_s21 + $0x18] sm:$0xff]  ;;  %s2339_s29 = smov 96   ;;  %s2340_s30 = smov 92  }
  0x12   : > { %v2276_v5 = vld [vmem:[%s165_s21 + $0x30] sm:$0xff]  ;;  %v2274_v7 = vld [vmem:[%s165_s21 + $0x20] sm:$0xff]  ;;  %2244 = vmatmul.msk.bf16.vlgmr.msra.gmra.mxu0 %vm235_vm1, %v2272_v4  ;;  %2260 = vmatmul.msk.bf16.vlgmr.msra.gmra.mxu1 %vm235_vm1, %v2270_v6  ;;  %v2277_v9 = vld [vmem:[%s165_s21 + $0x38] sm:$0xff]  ;;  %s2341_s4 = smov 88   ;;  %s2342_s5 = smov 84  }
  0x13   : > { %2248 = vmatmul.msk.bf16.vlgmr.msra.gmra.mxu2 %vm235_vm1, %v2276_v5  ;;  %2264 = vmatmul.msk.bf16.vlgmr.msra.gmra.mxu3 %vm235_vm1, %v2274_v7  ;;  %v2271_v10 = vld [vmem:[%s165_s21 + $0x8] sm:$0xff]  ;;  %v2278_v12 = vld [vmem:[%s165_s21 + $0x40] sm:$0xff]  ;;  %s2343_s6 = smov 80   ;;  %s2344_s7 = smov 76  }
  0x14   : > { %v2275_v11 = vld [vmem:[%s165_s21 + $0x28] sm:$0xff]  ;;  %s2345_s8 = smov 72   ;;  %s2346_s9 = smov 68  }
  0x15   : > { %v2279_v13 = vld [vmem:[%s165_s21 + $0x48] sm:$0xff]  ;;  %s2347_s10 = smov 64   ;;  %s2348_s11 = smov 60  }
  0x16   : > { %s2349_s14 = smov 56   ;;  %s2350_s15 = smov 52  }
  0x17   : > { %s2351_s16 = smov 48   ;;  %s2352_s17 = smov 44  }
  0x18   : > { %s2353_s18 = smov 40   ;;  %s2354_s19 = smov 36  }
  0x19   : > { %s2355_s20 = smov 32   ;;  %s2356_s21 = smov 28  }
  0x22   : > { %2245 = vmatmul.msk.bf16.gmra.mxu0 %vm235_vm1, %v2273_v8  ;;  %2261 = vmatmul.msk.bf16.gmra.mxu1 %vm235_vm1, %v2271_v10 }
  0x23   : > { %2249 = vmatmul.msk.bf16.gmra.mxu2 %vm235_vm1, %v2277_v9  ;;  %2265 = vmatmul.msk.bf16.gmra.mxu3 %vm235_vm1, %v2275_v11 }
  0x32   : > { %2246 = vmatmul.msk.bf16.gmra.mxu0 %vm235_vm1, %v2274_v7  ;;  %2262 = vmatmul.msk.bf16.gmra.mxu1 %vm235_vm1, %v2272_v4 }
  0x33   : > { %2250 = vmatmul.msk.bf16.gmra.mxu2 %vm235_vm1, %v2278_v12  ;;  %2266 = vmatmul.msk.bf16.gmra.mxu3 %vm235_vm1, %v2276_v5 }
  0x42   : > { %2247 = vmatmul.msk.bf16.gmra.mxu0 %vm235_vm1, %v2275_v11  ;;  %2263 = vmatmul.msk.bf16.gmra.mxu1 %vm235_vm1, %v2273_v8 }
  0x43   : > { %2251 = vmatmul.msk.bf16.gmra.mxu2 %vm235_vm1, %v2279_v13  ;;  %2267 = vmatmul.msk.bf16.gmra.mxu3 %vm235_vm1, %v2277_v9 }
  0x8f   : > { %v273_v14 = vpop.f32.mrf.mxu0  ;;  %v341_v15 = vpop.f32.mrf.mxu1 }
  0x90   : > { %v2421_v18 = vadd.f32 %v341_v15, %v273_v14 }
  0x92   : > { %4635 = vst [vmem:[#allocation2_spill] sm:$0xff] %v2421_v18  ;;  %v395_v23 = vrot.slane %v2421_v18, 1  ;;  %v469_v37 = vrot.slane %v2421_v18, 2  ;;  %v543_v45 = vrot.slane %v2421_v18, 3  ;;  %v616_v53 = vrot.slane %v2421_v18, 4 }
  0x93   : > { %v690_v61 = vrot.slane %v2421_v18, 5  ;;  %v764_v5 = vrot.slane %v2421_v18, 6 }
  0x96   : > { %v293_v16 = vpop.f32.mrf.mxu2  ;;  %v361_v17 = vpop.f32.mrf.mxu3 }
  0x97   : > { %v275_v19 = vpop.f32.mrf.mxu0  ;;  %v343_v20 = vpop.f32.mrf.mxu1  ;;  %v2425_v22 = vadd.f32 %v361_v17, %v293_v16  ;;  %v838_v16 = vrot.slane %v2421_v18, 7 }
  0x98   : > { %v2423_v21 = vadd.f32 %v343_v20, %v275_v19 }
  0x99   : > { %4637 = vst [vmem:[#allocation4_spill] sm:$0xff] %v2425_v22  ;;  %v4476_v30 = vrot.slane %v2425_v22, 1  ;;  %v4475_v40 = vrot.slane %v2425_v22, 2  ;;  %v4474_v48 = vrot.slane %v2425_v22, 3  ;;  %v4472_v56 = vrot.slane %v2425_v22, 4 }
  0x9a   : > { %4636 = vst [vmem:[#allocation3_spill] sm:$0xff] %v2423_v21  ;;  %v396_v24 = vrot.slane %v2423_v21, 1  ;;  %v470_v34 = vrot.slane %v2423_v21, 2  ;;  %v544_v43 = vrot.slane %v2423_v21, 3  ;;  %v617_v51 = vrot.slane %v2423_v21, 4 }
  0x9b   : > { %v691_v58 = vrot.slane %v2423_v21, 5  ;;  %v4471_v0 = vrot.slane %v2425_v22, 5  ;;  %v765_v2 = vrot.slane %v2423_v21, 6  ;;  %v4469_v8 = vrot.slane %v2425_v22, 6 }
  0x9c   : > { %v397_v26 = vsel %vm394_vm2, %v395_v23, %v396_v24  ;;  %v471_v39 = vsel %vm468_vm3, %v469_v37, %v470_v34  ;;  %v545_v47 = vsel %vm542_vm4, %v543_v45, %v544_v43  ;;  %v618_v55 = vsel %vm260_vm0, %v616_v53, %v617_v51 }
  0x9d   : > { %420 = vrot.lane.b32.xlu0 %v397_v26, %s2332_s22  ;;  %v692_v63 = vsel %vm689_vm5, %v690_v61, %v691_v58  ;;  %v766_v7 = vsel %vm763_vm6, %v764_v5, %v765_v2  ;;  %v839_v12 = vrot.slane %v2423_v21, 7 }
  0x9e   : > { %v295_v25 = vpop.f32.mrf.mxu2  ;;  %v363_v27 = vpop.f32.mrf.mxu3 }
  0x9f   : > { %v2433_v28 = vadd.f32 %v363_v27, %v295_v25  ;;  %v278_v29 = vpop.f32.mrf.mxu0  ;;  %v346_v31 = vpop.f32.mrf.mxu1  ;;  %v840_v23 = vsel %vm837_vm7, %v838_v16, %v839_v12 }
  0xa0   : > { %v2436_v32 = vadd.f32 %v346_v31, %v278_v29 }
  0xa1   : > { %4638 = vst [vmem:[#allocation5_spill] sm:$0xff] %v2433_v28  ;;  %v412_v33 = vrot.slane %v2433_v28, 1  ;;  %v486_v41 = vrot.slane %v2433_v28, 2  ;;  %v560_v49 = vrot.slane %v2433_v28, 3  ;;  %v633_v57 = vrot.slane %v2433_v28, 4 }
  0xa2   : > { %v472_v36 = vrot.slane %v2436_v32, 2  ;;  %v546_v44 = vrot.slane %v2436_v32, 3  ;;  %v619_v52 = vrot.slane %v2436_v32, 4  ;;  %v693_v59 = vrot.slane %v2436_v32, 5 }
  0xa3   : > { %v2445_v35 = vsel %vm394_vm2, %v4476_v30, %v412_v33  ;;  %v2467_v42 = vsel %vm468_vm3, %v4475_v40, %v486_v41  ;;  %v2490_v50 = vsel %vm542_vm4, %v4474_v48, %v560_v49  ;;  %v2515_v60 = vsel %vm260_vm0, %v4472_v56, %v633_v57 }
  0xa4   : > { %4639 = vst [vmem:[#allocation6_spill] sm:$0xff] %v2445_v35  ;;  %436 = vrot.lane.b32.xlu2 %v2445_v35, %s2332_s22  ;;  %v2454_v38 = vsel %vm468_vm3, %v470_v34, %v472_v36  ;;  %v2477_v46 = vsel %vm542_vm4, %v544_v43, %v546_v44  ;;  %v2500_v54 = vsel %vm260_vm0, %v617_v51, %v619_v52  ;;  %v707_v1 = vrot.slane %v2433_v28, 5 }
  0xa5   : > { %496 = vrot.lane.b32.xlu1 %v2454_v38, %s2333_s23  ;;  %494 = vrot.lane.b32.xlu0 %v471_v39, %s2333_s23  ;;  %4640 = vst [vmem:[#allocation7_spill] sm:$0xff] %v2467_v42  ;;  %v2523_v62 = vsel %vm689_vm5, %v691_v58, %v693_v59  ;;  %v767_v3 = vrot.slane %v2436_v32, 6  ;;  %v781_v9 = vrot.slane %v2433_v28, 6  ;;  %v4470_v13 = vrot.slane %v2436_v32, 7 }
  0xa6   : > { %4641 = vst [vmem:[#allocation8_spill] sm:$0xff] %v2490_v50  ;;  %v2538_v4 = vsel %vm689_vm5, %v4471_v0, %v707_v1  ;;  %v298_v17 = vpop.f32.mrf.mxu2  ;;  %v366_v19 = vpop.f32.mrf.mxu3  ;;  %v398_v26 = vrot.slane %v2436_v32, 1 }
  0xa7   : > { %4642 = vst [vmem:[#allocation9_spill] sm:$0xff] %v2515_v60  ;;  %v2546_v6 = vsel %vm763_vm6, %v765_v2, %v767_v3  ;;  %v280_v10 = vpop.f32.mrf.mxu0  ;;  %v348_v11 = vpop.f32.mrf.mxu1  ;;  %v2563_v15 = vsel %vm763_vm6, %v4469_v8, %v781_v9  ;;  %v2571_v20 = vsel %vm837_vm7, %v839_v12, %v4470_v13  ;;  %v2589_v37 = vadd.f32 %v366_v19, %v298_v17 }
  0xa8   : > { %4643 = vst [vmem:[#allocation10_spill] sm:$0xff] %v2523_v62  ;;  %v2556_v14 = vadd.f32 %v348_v11, %v280_v10  ;;  %v2601_v45 = vsel %vm394_vm2, %v396_v24, %v398_v26 }
  0xa9   : > { %4644 = vst [vmem:[#allocation11_spill] sm:$0xff] %v2538_v4  ;;  %v488_v58 = vrot.slane %v2589_v37, 2  ;;  %v562_v5 = vrot.slane %v2589_v37, 3  ;;  %v635_v17 = vrot.slane %v2589_v37, 4 }
  0xaa   : > { %4645 = vst [vmem:[#allocation12_spill] sm:$0xff] %v2546_v6  ;;  %v474_v25 = vrot.slane %v2556_v14, 2  ;;  %v400_v27 = vrot.slane %v2556_v14, 1 }
  0xab   : > { %4646 = vst [vmem:[#allocation13_spill] sm:$0xff] %v2563_v15  ;;  %v2649_v2 = vsel %vm468_vm3, %v486_v41, %v488_v58  ;;  %v2673_v11 = vsel %vm542_vm4, %v560_v49, %v562_v5 }
  0xac   : > { %510 = vrot.lane.b32.xlu2 %v2467_v42, %s2333_s23  ;;  %4647 = vst [vmem:[#allocation14_spill] sm:$0xff] %v2571_v20  ;;  %v2585_v29 = vsel %vm468_vm3, %v472_v36, %v474_v25  ;;  %v2596_v43 = vsel %vm394_vm2, %v398_v26, %v400_v27  ;;  %v548_v36 = vrot.slane %v2556_v14, 3 }
  0xad   : > { %570 = vrot.lane.b32.xlu1 %v2477_v46, %s2334_s24  ;;  %568 = vrot.lane.b32.xlu0 %v545_v47, %s2334_s24  ;;  %4648 = vst [vmem:[#allocation15_spill] sm:$0xff] %v2589_v37  ;;  %v414_v47 = vrot.slane %v2589_v37, 1 }
  0xae   : > { %v300_v31 = vpop.f32.mrf.mxu2  ;;  %v368_v34 = vpop.f32.mrf.mxu3  ;;  %v2615_v53 = vsel %vm542_vm4, %v546_v44, %v548_v36  ;;  %v4480_v44 = vrot.slane %v2556_v14, 4  ;;  %4653 = vst [vmem:[#allocation20_spill] sm:$0xff] %v2649_v2 }
  0xaf   : > { %v2591_v39 = vadd.f32 %v368_v34, %v300_v31  ;;  %4656 = vst [vmem:[#allocation23_spill] sm:$0xff] %v2673_v11  ;;  %v2699_v31 = vsel %vm260_vm0, %v633_v57, %v635_v17  ;;  %v709_v34 = vrot.slane %v2589_v37, 5  ;;  %v351_v8 = vpop.f32.mrf.mxu1 }
  0xb0   : > { %4660 = vst [vmem:[#allocation27_spill] sm:$0xff] %v2699_v31 }
  0xb1   : > { %4649 = vst [vmem:[#allocation16_spill] sm:$0xff] %v2591_v39  ;;  %v416_v51 = vrot.slane %v2591_v39, 1  ;;  %v490_v61 = vrot.slane %v2591_v39, 2  ;;  %v637_v19 = vrot.slane %v2591_v39, 4 }
  0xb3   : > { %v2620_v24 = vsel %vm394_vm2, %v414_v47, %v416_v51  ;;  %v2694_v26 = vsel %vm260_vm0, %v635_v17, %v637_v19  ;;  %v785_v17 = vrot.slane %v2591_v39, 6 }
  0xb4   : > { %584 = vrot.lane.b32.xlu2 %v2490_v50, %s2334_s24  ;;  %4650 = vst [vmem:[#allocation17_spill] sm:$0xff] %v2620_v24 }
  0xb5   : > { %643 = vrot.lane.b32.xlu1 %v2500_v54, %s2335_s25  ;;  %641 = vrot.lane.b32.xlu0 %v618_v55, %s2335_s25  ;;  %v2625_v55 = vsel %vm394_vm2, %v412_v33, %v414_v47  ;;  %v2644_v33 = vsel %vm468_vm3, %v488_v58, %v490_v61  ;;  %4659 = vst [vmem:[#allocation26_spill] sm:$0xff] %v2694_v26  ;;  %v711_v47 = vrot.slane %v2591_v39, 5 }
  0xb6   : > { %4651 = vst [vmem:[#allocation18_spill] sm:$0xff] %v2625_v55  ;;  %v303_v12 = vpop.f32.mrf.mxu2  ;;  %v371_v16 = vpop.f32.mrf.mxu3 }
  0xb7   : > { %4652 = vst [vmem:[#allocation19_spill] sm:$0xff] %v2644_v33  ;;  %v2716_v57 = vsel %vm689_vm5, %v709_v34, %v711_v47 }
  0xb8   : > { %4662 = vst [vmem:[#allocation29_spill] sm:$0xff] %v2716_v57 }
  0xbc   : > { %657 = vrot.lane.b32.xlu2 %v2515_v60, %s2335_s25 }
  0xbd   : > { %717 = vrot.lane.b32.xlu1 %v2523_v62, %s2336_s26  ;;  %715 = vrot.lane.b32.xlu0 %v692_v63, %s2336_s26  ;;  %v2639_v63 = vsel %vm260_vm0, %v619_v52, %v4480_v44  ;;  %v4479_v52 = vrot.slane %v2556_v14, 5 }
  0xbf   : > { %v2663_v10 = vsel %vm689_vm5, %v693_v59, %v4479_v52  ;;  %v4477_v59 = vrot.slane %v2556_v14, 6 }
  0xc0   : > { %4654 = vst [vmem:[#allocation21_spill] sm:$0xff] %v2663_v10 }
  0xc1   : > { %v2689_v49 = vsel %vm763_vm6, %v767_v3, %v4477_v59 }
  0xc2   : > { %4658 = vst [vmem:[#allocation25_spill] sm:$0xff] %v2689_v49 }
  0xc4   : > { %731 = vrot.lane.b32.xlu2 %v2538_v4, %s2336_s26 }
  0xc5   : > { %791 = vrot.lane.b32.xlu1 %v2546_v6, %s2337_s27  ;;  %789 = vrot.lane.b32.xlu0 %v766_v7, %s2337_s27  ;;  %v564_v7 = vrot.slane %v2591_v39, 3 }
  0xc7   : > { %v2668_v41 = vsel %vm542_vm4, %v562_v5, %v564_v7  ;;  %v2721_v5 = vsel %vm689_vm5, %v707_v1, %v709_v34 }
  0xc8   : > { %4655 = vst [vmem:[#allocation22_spill] sm:$0xff] %v2668_v41 }
  0xc9   : > { %4663 = vst [vmem:[#allocation30_spill] sm:$0xff] %v2721_v5 }
  0xcc   : > { %805 = vrot.lane.b32.xlu2 %v2563_v15, %s2337_s27 }
  0xcd   : > { %865 = vrot.lane.b32.xlu1 %v2571_v20, %s2338_s28  ;;  %863 = vrot.lane.b32.xlu0 %v840_v23, %s2338_s28  ;;  %v2682_v23 = vadd.f32 %v371_v16, %v303_v12  ;;  %v783_v16 = vrot.slane %v2589_v37, 6 }
  0xcf   : > { %4657 = vst [vmem:[#allocation24_spill] sm:$0xff] %v2682_v23  ;;  %v4468_v3 = vrot.slane %v2682_v23, 1  ;;  %v2742_v13 = vsel %vm763_vm6, %v783_v16, %v785_v17  ;;  %v2747_v0 = vsel %vm763_vm6, %v781_v9, %v783_v16  ;;  %v353_v16 = vpop.f32.mrf.mxu1 }
  0xd0   : > { %4666 = vst [vmem:[#allocation33_spill] sm:$0xff] %v2742_v13 }
  0xd1   : > { %v2711_v58 = vsel %vm394_vm2, %v416_v51, %v4468_v3  ;;  %v4473_v51 = vrot.slane %v2682_v23, 2  ;;  %v283_v3 = vpop.f32.mrf.mxu0  ;;  %4667 = vst [vmem:[#allocation34_spill] sm:$0xff] %v2747_v0 }
  0xd2   : > { %4661 = vst [vmem:[#allocation28_spill] sm:$0xff] %v2711_v58  ;;  %v2739_v34 = vadd.f32 %v351_v8, %v283_v3 }
  0xd3   : > { %v2735_v1 = vsel %vm468_vm3, %v490_v61, %v4473_v51  ;;  %v4478_v61 = vrot.slane %v2682_v23, 3 }
  0xd4   : > { %498 = vrot.lane.b32.xlu2 %v2585_v29, %s2333_s23  ;;  %4665 = vst [vmem:[#allocation32_spill] sm:$0xff] %v2735_v1  ;;  %v402_v8 = vrot.slane %v2739_v34, 1  ;;  %v476_v3 = vrot.slane %v2739_v34, 2 }
  0xd5   : > { %424 = vrot.lane.b32.xlu1 %v2596_v43, %s2332_s22  ;;  %422 = vrot.lane.b32.xlu0 %v2601_v45, %s2332_s22  ;;  %v2761_v51 = vsel %vm542_vm4, %v564_v7, %v4478_v61  ;;  %v4481_v7 = vrot.slane %v2682_v23, 4 }
  0xd6   : > { %4669 = vst [vmem:[#allocation36_spill] sm:$0xff] %v2761_v51  ;;  %v2770_v40 = vsel %vm394_vm2, %v400_v27, %v402_v8  ;;  %v2775_v30 = vsel %vm468_vm3, %v474_v25, %v476_v3 }
  0xd7   : > { %4671 = vst [vmem:[#allocation38_spill] sm:$0xff] %v2770_v40  ;;  %v2791_v25 = vsel %vm260_vm0, %v637_v19, %v4481_v7  ;;  %v4483_v19 = vrot.slane %v2682_v23, 5 }
  0xd8   : > { %4672 = vst [vmem:[#allocation39_spill] sm:$0xff] %v2775_v30 }
  0xd9   : > { %v285_v9 = vpop.f32.mrf.mxu0  ;;  %4675 = vst [vmem:[#allocation42_spill] sm:$0xff] %v2791_v25 }
  0xda   : > { %v2765_v48 = vadd.f32 %v353_v16, %v285_v9  ;;  %v550_v16 = vrot.slane %v2739_v34, 3 }
  0xdc   : > { %572 = vrot.lane.b32.xlu2 %v2615_v53, %s2334_s24  ;;  %4670 = vst [vmem:[#allocation37_spill] sm:$0xff] %v2765_v48  ;;  %v4482_v27 = vrot.slane %v2765_v48, 2  ;;  %v2803_v52 = vsel %vm542_vm4, %v548_v36, %v550_v16  ;;  %v2821_v36 = vsel %vm689_vm5, %v711_v47, %v4483_v19  ;;  %v356_v19 = vpop.f32.mrf.mxu1 }
  0xdd   : > { %440 = vrot.lane.b32.xlu1 %v2620_v24, %s2332_s22  ;;  %438 = vrot.lane.b32.xlu0 %v2625_v55, %s2332_s22  ;;  %4677 = vst [vmem:[#allocation44_spill] sm:$0xff] %v2803_v52 }
  0xde   : > { %v2798_v61 = vsel %vm468_vm3, %v476_v3, %v4482_v27  ;;  %v4485_v3 = vrot.slane %v2765_v48, 3  ;;  %v623_v27 = vrot.slane %v2739_v34, 4  ;;  %4681 = vst [vmem:[#allocation48_spill] sm:$0xff] %v2821_v36 }
  0xdf   : > { %4676 = vst [vmem:[#allocation43_spill] sm:$0xff] %v2798_v61 }
  0xe1   : > { %v288_v47 = vpop.f32.mrf.mxu0 }
  0xe2   : > { %v2878_v15 = vadd.f32 %v356_v19, %v288_v47  ;;  %v773_v47 = vrot.slane %v2765_v48, 6 }
  0xe4   : > { %645 = vrot.lane.b32.xlu2 %v2639_v63, %s2335_s25 }
  0xe5   : > { %514 = vrot.lane.b32.xlu1 %v2644_v33, %s2333_s23  ;;  %512 = vrot.lane.b32.xlu0 %v2649_v2, %s2333_s23 }
  0xec   : > { %719 = vrot.lane.b32.xlu2 %v2663_v10, %s2336_s26 }
  0xed   : > { %588 = vrot.lane.b32.xlu1 %v2668_v41, %s2334_s24  ;;  %586 = vrot.lane.b32.xlu0 %v2673_v11, %s2334_s24 }
  0xf4   : > { %793 = vrot.lane.b32.xlu2 %v2689_v49, %s2337_s27 }
  0xf5   : > { %661 = vrot.lane.b32.xlu1 %v2694_v26, %s2335_s25  ;;  %659 = vrot.lane.b32.xlu0 %v2699_v31, %s2335_s25 }
  0xfc   : > { %442 = vrot.lane.b32.xlu2 %v2711_v58, %s2332_s22 }
  0xfd   : > { %735 = vrot.lane.b32.xlu1 %v2716_v57, %s2336_s26  ;;  %733 = vrot.lane.b32.xlu0 %v2721_v5, %s2336_s26 }
  0xfe   : > { %v2723_v12 = vpop.permute.xlu2 %436 }
  0xff   : > { %4664 = vst [vmem:[#allocation31_spill] sm:$0xff] %v2723_v12 }
 0x104   : > { %516 = vrot.lane.b32.xlu2 %v2735_v1, %s2333_s23 }
 0x105   : > { %809 = vrot.lane.b32.xlu1 %v2742_v13, %s2337_s27  ;;  %807 = vrot.lane.b32.xlu0 %v2747_v0, %s2337_s27  ;;  %v358_v13 = vpop.f32.mrf.mxu1 }
 0x106   : > { %v2749_v56 = vpop.permute.xlu2 %510 }
 0x107   : > { %4668 = vst [vmem:[#allocation35_spill] sm:$0xff] %v2749_v56  ;;  %v4683_v56 = vrot.slane %v2556_v14, 4 }
 0x10c   : > { %590 = vrot.lane.b32.xlu2 %v2761_v51, %s2334_s24 }
 0x10d   : > { %426 = vrot.lane.b32.xlu1 %v2770_v40, %s2332_s22  ;;  %500 = vrot.lane.b32.xlu0 %v2775_v30, %s2333_s23 }
 0x10e   : > { %v2777_v59 = vpop.permute.xlu2 %584 }
 0x10f   : > { %4673 = vst [vmem:[#allocation40_spill] sm:$0xff] %v2777_v59  ;;  %v2784_v9 = vpop.permute.xlu0 %420 }
 0x110   : > { %4674 = vst [vmem:[#allocation41_spill] sm:$0xff] %v2784_v9  ;;  %v4487_v9 = vrot.slane %v2682_v23, 6 }
 0x114   : > { %663 = vrot.lane.b32.xlu2 %v2791_v25, %s2335_s25 }
 0x115   : > { %502 = vrot.lane.b32.xlu1 %v2798_v61, %s2333_s23  ;;  %574 = vrot.lane.b32.xlu0 %v2803_v52, %s2334_s24 }
 0x116   : > { %v2805_v44 = vpop.permute.xlu2 %657 }
 0x117   : > { %4678 = vst [vmem:[#allocation45_spill] sm:$0xff] %v2805_v44  ;;  %v2812_v7 = vpop.permute.xlu1 %496  ;;  %v2814_v59 = vpop.permute.xlu0 %494  ;;  %v2828_v44 = vsel %vm542_vm4, %v550_v16, %v4485_v3  ;;  %v4490_v3 = vrot.slane %v2765_v48, 4 }
 0x118   : > { %4679 = vst [vmem:[#allocation46_spill] sm:$0xff] %v2812_v7 }
 0x119   : > { %4680 = vst [vmem:[#allocation47_spill] sm:$0xff] %v2814_v59  ;;  %v2833_v59 = vsel %vm260_vm0, %v4683_v56, %v623_v27  ;;  %v697_v56 = vrot.slane %v2739_v34, 5  ;;  %v2858_v7 = vsel %vm260_vm0, %v623_v27, %v4490_v3  ;;  %v699_v27 = vrot.slane %v2765_v48, 5 }
 0x11a   : > { %4682 = vst [vmem:[#allocation49_spill] sm:$0xff] %v2828_v44  ;;  %v771_v3 = vrot.slane %v2739_v34, 6 }
 0x11b   : > { %4684 = vst [vmem:[#allocation50_spill] sm:$0xff] %v2833_v59 }
 0x11c   : > { %737 = vrot.lane.b32.xlu2 %v2821_v36, %s2336_s26  ;;  %4689 = vst [vmem:[#allocation55_spill] sm:$0xff] %v2858_v7 }
 0x11d   : > { %576 = vrot.lane.b32.xlu1 %v2828_v44, %s2334_s24  ;;  %647 = vrot.lane.b32.xlu0 %v2833_v59, %s2335_s25 }
 0x11e   : > { %v2835_v12 = vpop.permute.xlu2 %731 }
 0x11f   : > { %4685 = vst [vmem:[#allocation51_spill] sm:$0xff] %v2835_v12  ;;  %v2842_v18 = vpop.permute.xlu1 %570  ;;  %v2844_v16 = vpop.permute.xlu0 %568  ;;  %v2851_v12 = vsel %vm763_vm6, %v785_v17, %v4487_v9  ;;  %v404_v17 = vrot.slane %v2765_v48, 1 }
 0x120   : > { %4686 = vst [vmem:[#allocation52_spill] sm:$0xff] %v2842_v18  ;;  %v4690_v18 = vrot.slane %v2556_v14, 5 }
 0x121   : > { %4687 = vst [vmem:[#allocation53_spill] sm:$0xff] %v2844_v16 }
 0x122   : > { %4688 = vst [vmem:[#allocation54_spill] sm:$0xff] %v2851_v12  ;;  %v2863_v16 = vsel %vm689_vm5, %v4690_v18, %v697_v56  ;;  %v290_v18 = vpop.f32.mrf.mxu0 }
 0x123   : > { %4691 = vst [vmem:[#allocation56_spill] sm:$0xff] %v2863_v16  ;;  %v2885_v0 = vadd.f32 %v358_v13, %v290_v18 }
 0x124   : > { %811 = vrot.lane.b32.xlu2 %v2851_v12, %s2337_s27 }
 0x125   : > { %649 = vrot.lane.b32.xlu1 %v2858_v7, %s2335_s25  ;;  %721 = vrot.lane.b32.xlu0 %v2863_v16, %s2336_s26 }
 0x126   : > { %v2865_v20 = vpop.permute.xlu2 %805 }
 0x127   : > { %4692 = vst [vmem:[#allocation57_spill] sm:$0xff] %v2865_v20  ;;  %v2872_v9 = vpop.permute.xlu1 %643  ;;  %v2874_v12 = vpop.permute.xlu0 %641  ;;  %v2881_v20 = vsel %vm394_vm2, %v402_v8, %v404_v17  ;;  %v406_v8 = vrot.slane %v2878_v15, 1 }
 0x128   : > { %4693 = vst [vmem:[#allocation58_spill] sm:$0xff] %v2872_v9  ;;  %v2888_v9 = vsel %vm689_vm5, %v697_v56, %v699_v27  ;;  %v408_v56 = vrot.slane %v2885_v0, 1 }
 0x129   : > { %4694 = vst [vmem:[#allocation59_spill] sm:$0xff] %v2874_v12  ;;  %v4697_v12 = vrot.slane %v2556_v14, 6 }
 0x12a   : > { %4695 = vst [vmem:[#allocation60_spill] sm:$0xff] %v2881_v20  ;;  %v2912_v18 = vsel %vm394_vm2, %v406_v8, %v408_v56 }
 0x12b   : > { %4696 = vst [vmem:[#allocation61_spill] sm:$0xff] %v2888_v9  ;;  %v2893_v49 = vsel %vm763_vm6, %v4697_v12, %v771_v3  ;;  %v2909_v12 = vsel %vm394_vm2, %v404_v17, %v406_v8  ;;  %v480_v17 = vrot.slane %v2878_v15, 2 }
 0x12c   : > { %428 = vrot.lane.b32.xlu2 %v2881_v20, %s2332_s22  ;;  %4698 = vst [vmem:[#allocation62_spill] sm:$0xff] %v2893_v49 }
 0x12d   : > { %723 = vrot.lane.b32.xlu1 %v2888_v9, %s2336_s26  ;;  %795 = vrot.lane.b32.xlu0 %v2893_v49, %s2337_s27  ;;  %4702 = vst [vmem:[#allocation66_spill] sm:$0xff] %v2909_v12 }
 0x12e   : > { %v2895_v6 = vpop.permute.xlu2 %498  ;;  %4703 = vst [vmem:[#allocation67_spill] sm:$0xff] %v2912_v18 }
 0x12f   : > { %4699 = vst [vmem:[#allocation63_spill] sm:$0xff] %v2895_v6  ;;  %v2902_v13 = vpop.permute.xlu1 %717  ;;  %v2904_v19 = vpop.permute.xlu0 %715  ;;  %v2917_v6 = vsel %vm763_vm6, %v771_v3, %v773_v47  ;;  %v482_v3 = vrot.slane %v2885_v0, 2 }
 0x130   : > { %4700 = vst [vmem:[#allocation64_spill] sm:$0xff] %v2902_v13  ;;  %v4708_v13 = vrot.slane %v2765_v48, 2 }
 0x131   : > { %4701 = vst [vmem:[#allocation65_spill] sm:$0xff] %v2904_v19  ;;  %v2944_v57 = vsel %vm468_vm3, %v480_v17, %v482_v3 }
 0x132   : > { %4704 = vst [vmem:[#allocation68_spill] sm:$0xff] %v2917_v6  ;;  %v2933_v36 = vsel %vm468_vm3, %v4708_v13, %v480_v17  ;;  %v554_v13 = vrot.slane %v2878_v15, 3  ;;  %v556_v17 = vrot.slane %v2885_v0, 3 }
 0x133   : > { %4709 = vst [vmem:[#allocation72_spill] sm:$0xff] %v2933_v36 }
 0x134   : > { %430 = vrot.lane.b32.xlu2 %v2909_v12, %s2332_s22  ;;  %4712 = vst [vmem:[#allocation74_spill] sm:$0xff] %v2944_v57  ;;  %v2971_v9 = vsel %vm542_vm4, %v554_v13, %v556_v17 }
 0x135   : > { %797 = vrot.lane.b32.xlu1 %v2917_v6, %s2337_s27  ;;  %432 = vrot.lane.b32.xlu0 %v2912_v18, %s2332_s22  ;;  %4720 = vst [vmem:[#allocation80_spill] sm:$0xff] %v2971_v9 }
 0x136   : > { %v2919_v49 = vpop.permute.xlu2 %572 }
 0x137   : > { %4705 = vst [vmem:[#allocation69_spill] sm:$0xff] %v2919_v49  ;;  %v2926_v19 = vpop.permute.xlu1 %791  ;;  %v2928_v8 = vpop.permute.xlu0 %789  ;;  %v4710_v49 = vrot.slane %v2425_v22, 1 }
 0x138   : > { %4706 = vst [vmem:[#allocation70_spill] sm:$0xff] %v2926_v19 }
 0x139   : > { %4707 = vst [vmem:[#allocation71_spill] sm:$0xff] %v2928_v8  ;;  %v2941_v6 = vsel %vm394_vm2, %v408_v56, %v4710_v49  ;;  %v4716_v49 = vrot.slane %v2765_v48, 3 }
 0x13a   : > { %4711 = vst [vmem:[#allocation73_spill] sm:$0xff] %v2941_v6 }
 0x13b   : > { %v2960_v56 = vsel %vm542_vm4, %v4716_v49, %v554_v13  ;;  %v627_v49 = vrot.slane %v2878_v15, 4  ;;  %v629_v13 = vrot.slane %v2885_v0, 4 }
 0x13c   : > { %504 = vrot.lane.b32.xlu2 %v2933_v36, %s2333_s23  ;;  %4717 = vst [vmem:[#allocation78_spill] sm:$0xff] %v2960_v56 }
 0x13d   : > { %434 = vrot.lane.b32.xlu1 %v2941_v6, %s2332_s22  ;;  %506 = vrot.lane.b32.xlu0 %v2944_v57, %s2333_s23  ;;  %v2998_v62 = vsel %vm260_vm0, %v627_v49, %v629_v13  ;;  %s2357_s22 = smov 24  }
 0x13e   : > { %v2946_v19 = vpop.permute.xlu2 %645  ;;  %4728 = vst [vmem:[#allocation86_spill] sm:$0xff] %v2998_v62 }
 0x13f   : > { %4713 = vst [vmem:[#allocation75_spill] sm:$0xff] %v2946_v19  ;;  %v2953_v8 = vpop.permute.xlu1 %865  ;;  %v2955_v4 = vpop.permute.xlu0 %863  ;;  %v4718_v19 = vrot.slane %v2425_v22, 2 }
 0x140   : > { %4714 = vst [vmem:[#allocation76_spill] sm:$0xff] %v2953_v8 }
 0x141   : > { %4715 = vst [vmem:[#allocation77_spill] sm:$0xff] %v2955_v4  ;;  %v2968_v5 = vsel %vm468_vm3, %v482_v3, %v4718_v19  ;;  %v4724_v19 = vrot.slane %v2765_v48, 4 }
 0x142   : > { %4719 = vst [vmem:[#allocation79_spill] sm:$0xff] %v2968_v5 }
 0x143   : > { %v2987_v3 = vsel %vm260_vm0, %v4724_v19, %v627_v49  ;;  %v701_v19 = vrot.slane %v2878_v15, 5  ;;  %v4733_v49 = vrot.slane %v2425_v22, 4 }
 0x144   : > { %578 = vrot.lane.b32.xlu2 %v2960_v56, %s2334_s24  ;;  %4725 = vst [vmem:[#allocation84_spill] sm:$0xff] %v2987_v3 }
 0x145   : > { %508 = vrot.lane.b32.xlu1 %v2968_v5, %s2333_s23  ;;  %580 = vrot.lane.b32.xlu0 %v2971_v9, %s2334_s24  ;;  %s2358_s23 = smov 20  }
 0x146   : > { %v2973_v8 = vpop.permute.xlu2 %719 }
 0x147   : > { %4721 = vst [vmem:[#allocation81_spill] sm:$0xff] %v2973_v8  ;;  %v2980_v4 = vpop.permute.xlu1 %424  ;;  %v2982_v10 = vpop.permute.xlu0 %422  ;;  %v4726_v8 = vrot.slane %v2425_v22, 3 }
 0x148   : > { %4722 = vst [vmem:[#allocation82_spill] sm:$0xff] %v2980_v4 }
 0x149   : > { %4723 = vst [vmem:[#allocation83_spill] sm:$0xff] %v2982_v10  ;;  %v2995_v16 = vsel %vm542_vm4, %v556_v17, %v4726_v8  ;;  %v3012_v8 = vsel %vm689_vm5, %v699_v27, %v701_v19  ;;  %v703_v17 = vrot.slane %v2885_v0, 5  ;;  %v775_v27 = vrot.slane %v2878_v15, 6 }
 0x14a   : > { %4727 = vst [vmem:[#allocation85_spill] sm:$0xff] %v2995_v16 }
 0x14b   : > { %4732 = vst [vmem:[#allocation90_spill] sm:$0xff] %v3012_v8  ;;  %v3023_v26 = vsel %vm689_vm5, %v701_v19, %v703_v17  ;;  %v777_v19 = vrot.slane %v2885_v0, 6 }
 0x14c   : > { %651 = vrot.lane.b32.xlu2 %v2987_v3, %s2335_s25  ;;  %4735 = vst [vmem:[#allocation92_spill] sm:$0xff] %v3023_v26 }
 0x14d   : > { %582 = vrot.lane.b32.xlu1 %v2995_v16, %s2334_s24  ;;  %653 = vrot.lane.b32.xlu0 %v2998_v62, %s2335_s25  ;;  %s2359_s24 = smov 16  }
 0x14e   : > { %v3000_v4 = vpop.permute.xlu2 %793 }
 0x14f   : > { %4729 = vst [vmem:[#allocation87_spill] sm:$0xff] %v3000_v4  ;;  %v3007_v10 = vpop.permute.xlu1 %440  ;;  %v3009_v25 = vpop.permute.xlu0 %438  ;;  %v3020_v4 = vsel %vm260_vm0, %v629_v13, %v4733_v49  ;;  %v3037_v13 = vsel %vm763_vm6, %v773_v47, %v775_v27  ;;  %v4740_v49 = vrot.slane %v2425_v22, 5  ;;  %v843_v47 = vrot.slane %v2556_v14, 7 }
 0x150   : > { %4730 = vst [vmem:[#allocation88_spill] sm:$0xff] %v3007_v10 }
 0x151   : > { %4731 = vst [vmem:[#allocation89_spill] sm:$0xff] %v3009_v25 }
 0x152   : > { %4734 = vst [vmem:[#allocation91_spill] sm:$0xff] %v3020_v4 }
 0x153   : > { %4739 = vst [vmem:[#allocation96_spill] sm:$0xff] %v3037_v13 }
 0x154   : > { %725 = vrot.lane.b32.xlu2 %v3012_v8, %s2336_s26  ;;  %v3048_v8 = vsel %vm763_vm6, %v775_v27, %v777_v19 }
 0x155   : > { %655 = vrot.lane.b32.xlu1 %v3020_v4, %s2335_s25  ;;  %727 = vrot.lane.b32.xlu0 %v3023_v26, %s2336_s26  ;;  %4742 = vst [vmem:[#allocation98_spill] sm:$0xff] %v3048_v8  ;;  %s2360_s25 = smov 12  }
 0x156   : > { %v3025_v60 = vpop.permute.xlu2 %442 }
 0x157   : > { %4736 = vst [vmem:[#allocation93_spill] sm:$0xff] %v3025_v60  ;;  %v3032_v25 = vpop.permute.xlu1 %514  ;;  %v3034_v10 = vpop.permute.xlu0 %512  ;;  %v3045_v60 = vsel %vm689_vm5, %v703_v17, %v4740_v49  ;;  %v845_v17 = vrot.slane %v2739_v34, 7  ;;  %v4746_v49 = vrot.slane %v2436_v32, 7 }
 0x158   : > { %4737 = vst [vmem:[#allocation94_spill] sm:$0xff] %v3032_v25 }
 0x159   : > { %4738 = vst [vmem:[#allocation95_spill] sm:$0xff] %v3034_v10  ;;  %v3065_v27 = vsel %vm837_vm7, %v4746_v49, %v843_v47  ;;  %v847_v49 = vrot.slane %v2765_v48, 7 }
 0x15a   : > { %4741 = vst [vmem:[#allocation97_spill] sm:$0xff] %v3045_v60 }
 0x15b   : > { %4747 = vst [vmem:[#allocation102_spill] sm:$0xff] %v3065_v27 }
 0x15c   : > { %799 = vrot.lane.b32.xlu2 %v3037_v13, %s2337_s27 }
 0x15d   : > { %729 = vrot.lane.b32.xlu1 %v3045_v60, %s2336_s26  ;;  %801 = vrot.lane.b32.xlu0 %v3048_v8, %s2337_s27  ;;  %v3075_v8 = vsel %vm837_vm7, %v843_v47, %v845_v17  ;;  %v3096_v47 = vsel %vm837_vm7, %v845_v17, %v847_v49  ;;  %v857_v17 = vrot.slane %v2589_v37, 7  ;;  %s2361_s26 = smov 8  }
 0x15e   : > { %v3050_v26 = vpop.permute.xlu2 %516  ;;  %4750 = vst [vmem:[#allocation104_spill] sm:$0xff] %v3075_v8 }
 0x15f   : > { %4743 = vst [vmem:[#allocation99_spill] sm:$0xff] %v3050_v26  ;;  %v3057_v10 = vpop.permute.xlu1 %588  ;;  %v3059_v25 = vpop.permute.xlu0 %586  ;;  %v4748_v26 = vrot.slane %v2425_v22, 6 }
 0x160   : > { %4744 = vst [vmem:[#allocation100_spill] sm:$0xff] %v3057_v10 }
 0x161   : > { %4745 = vst [vmem:[#allocation101_spill] sm:$0xff] %v3059_v25  ;;  %v3072_v13 = vsel %vm763_vm6, %v777_v19, %v4748_v26  ;;  %v849_v25 = vrot.slane %v2878_v15, 7  ;;  %v851_v19 = vrot.slane %v2885_v0, 7 }
 0x162   : > { %4749 = vst [vmem:[#allocation103_spill] sm:$0xff] %v3072_v13 }
 0x163   : > { %v3090_v26 = vsel %vm837_vm7, %v847_v49, %v849_v25  ;;  %4755 = vst [vmem:[#allocation109_spill] sm:$0xff] %v3096_v47 }
 0x164   : > { %867 = vrot.lane.b32.xlu2 %v3065_v27, %s2338_s28  ;;  %4754 = vst [vmem:[#allocation108_spill] sm:$0xff] %v3090_v26 }
 0x165   : > { %803 = vrot.lane.b32.xlu1 %v3072_v13, %s2337_s27  ;;  %869 = vrot.lane.b32.xlu0 %v3075_v8, %s2338_s28  ;;  %s2362_s27 = smov 4  }
 0x166   : > { %v3077_v10 = vpop.permute.xlu2 %590 }
 0x167   : > { %4751 = vst [vmem:[#allocation105_spill] sm:$0xff] %v3077_v10  ;;  %v3085_v27 = vpop.permute.xlu1 %661  ;;  %v3087_v60 = vpop.permute.xlu0 %659  ;;  %v3099_v10 = vsel %vm837_vm7, %v849_v25, %v851_v19 }
 0x168   : > { %4752 = vst [vmem:[#allocation106_spill] sm:$0xff] %v3085_v27  ;;  %v855_v27 = vrot.slane %v2433_v28, 7 }
 0x169   : > { %4753 = vst [vmem:[#allocation107_spill] sm:$0xff] %v3087_v60  ;;  %v853_v60 = vrot.slane %v2425_v22, 7 }
 0x16a   : > { %4756 = vst [vmem:[#allocation110_spill] sm:$0xff] %v3099_v10 }
 0x16b   : > { %v3115_v25 = vsel %vm837_vm7, %v853_v60, %v855_v27  ;;  %v3120_v49 = vsel %vm837_vm7, %v851_v19, %v853_v60 }
 0x16c   : > { %873 = vrot.lane.b32.xlu2 %v3090_v26, %s2338_s28  ;;  %4760 = vst [vmem:[#allocation114_spill] sm:$0xff] %v3115_v25 }
 0x16d   : > { %871 = vrot.lane.b32.xlu1 %v3096_v47, %s2338_s28  ;;  %875 = vrot.lane.b32.xlu0 %v3099_v10, %s2338_s28 }
 0x16e   : > { %v3101_v8 = vpop.permute.xlu2 %663 }
 0x16f   : > { %4757 = vst [vmem:[#allocation111_spill] sm:$0xff] %v3101_v8  ;;  %v3109_v13 = vpop.permute.xlu1 %735  ;;  %v3111_v26 = vpop.permute.xlu0 %733  ;;  %v3123_v8 = vsel %vm837_vm7, %v855_v27, %v857_v17 }
 0x170   : > { %4758 = vst [vmem:[#allocation112_spill] sm:$0xff] %v3109_v13  ;;  %v4549_v13 = vrot.slane %v2682_v23, 7 }
 0x171   : > { %4759 = vst [vmem:[#allocation113_spill] sm:$0xff] %v3111_v26  ;;  %v859_v26 = vrot.slane %v2591_v39, 7 }
 0x172   : > { %4761 = vst [vmem:[#allocation115_spill] sm:$0xff] %v3123_v8 }
 0x173   : > { %v3140_v60 = vsel %vm837_vm7, %v859_v26, %v4549_v13  ;;  %v3145_v27 = vsel %vm837_vm7, %v857_v17, %v859_v26 }
 0x174   : > { %879 = vrot.lane.b32.xlu2 %v3115_v25, %s2338_s28  ;;  %4765 = vst [vmem:[#allocation119_spill] sm:$0xff] %v3140_v60 }
 0x175   : > { %877 = vrot.lane.b32.xlu1 %v3120_v49, %s2338_s28  ;;  %881 = vrot.lane.b32.xlu0 %v3123_v8, %s2338_s28  ;;  %4766 = vst [vmem:[#allocation120_spill] sm:$0xff] %v3145_v27 }
 0x176   : > { %v3125_v10 = vpop.permute.xlu2 %737 }
 0x177   : > { %4762 = vst [vmem:[#allocation116_spill] sm:$0xff] %v3125_v10  ;;  %v3133_v47 = vpop.permute.xlu1 %809  ;;  %v3135_v25 = vpop.permute.xlu0 %807 }
 0x178   : > { %4763 = vst [vmem:[#allocation117_spill] sm:$0xff] %v3133_v47 }
 0x179   : > { %4764 = vst [vmem:[#allocation118_spill] sm:$0xff] %v3135_v25 }
 0x17c   : > { %885 = vrot.lane.b32.xlu2 %v3140_v60, %s2338_s28 }
 0x17d   : > { %883 = vrot.lane.b32.xlu1 %v3145_v27, %s2338_s28  ;;  %911 = vrot.lane.b32.xlu0 %v2423_v21, %s2339_s29 }
 0x17e   : > { %v3147_v19 = vpop.permute.xlu2 %811 }
 0x17f   : > { %4767 = vst [vmem:[#allocation121_spill] sm:$0xff] %v3147_v19  ;;  %v3152_v25 = vpop.permute.xlu1 %426  ;;  %v3154_v47 = vpop.permute.xlu0 %500 }
 0x180   : > { %4768 = vst [vmem:[#allocation122_spill] sm:$0xff] %v3152_v25 }
 0x181   : > { %4769 = vst [vmem:[#allocation123_spill] sm:$0xff] %v3154_v47 }
 0x184   : > { %915 = vrot.lane.b32.xlu2 %v2556_v14, %s2339_s29 }
 0x185   : > { %913 = vrot.lane.b32.xlu1 %v2436_v32, %s2339_s29  ;;  %917 = vrot.lane.b32.xlu0 %v2739_v34, %s2339_s29 }
 0x186   : > { %v3157_v13 = vpop.permute.xlu2 %428 }
 0x187   : > { %4770 = vst [vmem:[#allocation124_spill] sm:$0xff] %v3157_v13  ;;  %v3161_v26 = vpop.permute.xlu1 %502  ;;  %v3163_v17 = vpop.permute.xlu0 %574 }
 0x188   : > { %4771 = vst [vmem:[#allocation125_spill] sm:$0xff] %v3161_v26 }
 0x189   : > { %4772 = vst [vmem:[#allocation126_spill] sm:$0xff] %v3163_v17 }
 0x18c   : > { %921 = vrot.lane.b32.xlu2 %v2878_v15, %s2339_s29 }
 0x18d   : > { %919 = vrot.lane.b32.xlu1 %v2765_v48, %s2339_s29  ;;  %923 = vrot.lane.b32.xlu0 %v2885_v0, %s2339_s29 }
 0x18e   : > { %v3166_v19 = vpop.permute.xlu2 %430 }
 0x18f   : > { %4773 = vst [vmem:[#allocation127_spill] sm:$0xff] %v3166_v19  ;;  %v3170_v47 = vpop.permute.xlu1 %576  ;;  %v3172_v25 = vpop.permute.xlu0 %647 }
 0x190   : > { %4774 = vst [vmem:[#allocation128_spill] sm:$0xff] %v3170_v47 }
 0x191   : > { %4775 = vst [vmem:[#allocation129_spill] sm:$0xff] %v3172_v25 }
 0x194   : > { %927 = vrot.lane.b32.xlu2 %v2433_v28, %s2339_s29 }
 0x195   : > { %925 = vrot.lane.b32.xlu1 %v2425_v22, %s2339_s29  ;;  %929 = vrot.lane.b32.xlu0 %v2589_v37, %s2339_s29 }
 0x196   : > { %v3175_v13 = vpop.permute.xlu2 %504 }
 0x197   : > { %4776 = vst [vmem:[#allocation130_spill] sm:$0xff] %v3175_v13  ;;  %v3179_v17 = vpop.permute.xlu1 %649  ;;  %v3181_v26 = vpop.permute.xlu0 %721 }
 0x198   : > { %4777 = vst [vmem:[#allocation131_spill] sm:$0xff] %v3179_v17 }
 0x199   : > { %4778 = vst [vmem:[#allocation132_spill] sm:$0xff] %v3181_v26 }
 0x19c   : > { %933 = vrot.lane.b32.xlu2 %v2682_v23, %s2339_s29 }
 0x19d   : > { %931 = vrot.lane.b32.xlu1 %v2591_v39, %s2339_s29  ;;  %962 = vrot.lane.b32.xlu0 %v2601_v45, %s2340_s30 }
 0x19e   : > { %v3184_v19 = vpop.permute.xlu2 %578 }
 0x19f   : > { %4779 = vst [vmem:[#allocation133_spill] sm:$0xff] %v3184_v19  ;;  %v3188_v25 = vpop.permute.xlu1 %723  ;;  %v3190_v47 = vpop.permute.xlu0 %795 }
 0x1a0   : > { %4780 = vst [vmem:[#allocation134_spill] sm:$0xff] %v3188_v25  ;;  %v305_v25 = vpop.f32.mrf.mxu2 }
 0x1a1   : > { %4781 = vst [vmem:[#allocation135_spill] sm:$0xff] %v3190_v47 }
 0x1a4   : > { %966 = vrot.lane.b32.xlu2 %v2770_v40, %s2340_s30 }
 0x1a5   : > { %964 = vrot.lane.b32.xlu1 %v2596_v43, %s2340_s30  ;;  %968 = vrot.lane.b32.xlu0 %v2881_v20, %s2340_s30 }
 0x1a6   : > { %v3193_v13 = vpop.permute.xlu2 %651 }
 0x1a7   : > { %4782 = vst [vmem:[#allocation136_spill] sm:$0xff] %v3193_v13  ;;  %v3197_v26 = vpop.permute.xlu1 %797  ;;  %v3199_v17 = vpop.permute.xlu0 %432 }
 0x1a8   : > { %4783 = vst [vmem:[#allocation137_spill] sm:$0xff] %v3197_v26  ;;  %v373_v13 = vpop.f32.mrf.mxu3 }
 0x1a9   : > { %4784 = vst [vmem:[#allocation138_spill] sm:$0xff] %v3199_v17  ;;  %v3210_v10 = vadd.f32 %v373_v13, %v305_v25 }
 0x1ab   : > { %4788 = vst [vmem:[#allocation142_spill] sm:$0xff] %v3210_v10  ;;  %v4551_v17 = vrot.slane %v3210_v10, 1 }
 0x1ac   : > { %972 = vrot.lane.b32.xlu2 %v2912_v18, %s2340_s30 }
 0x1ad   : > { %970 = vrot.lane.b32.xlu1 %v2909_v12, %s2340_s30  ;;  %974 = vrot.lane.b32.xlu0 %v2941_v6, %s2340_s30 }
 0x1ae   : > { %v3202_v19 = vpop.permute.xlu2 %725 }
 0x1af   : > { %4785 = vst [vmem:[#allocation139_spill] sm:$0xff] %v3202_v19  ;;  %v3206_v45 = vpop.permute.xlu1 %434  ;;  %v3208_v47 = vpop.permute.xlu0 %506 }
 0x1b0   : > { %4786 = vst [vmem:[#allocation140_spill] sm:$0xff] %v3206_v45 }
 0x1b1   : > { %4787 = vst [vmem:[#allocation141_spill] sm:$0xff] %v3208_v47  ;;  %v4792_v47 = vrot.slane %v2682_v23, 1 }
 0x1b3   : > { %v3227_v13 = vsel %vm394_vm2, %v4792_v47, %v4551_v17 }
 0x1b4   : > { %978 = vrot.lane.b32.xlu2 %v2625_v55, %s2340_s30  ;;  %4793 = vst [vmem:[#allocation146_spill] sm:$0xff] %v3227_v13 }
 0x1b5   : > { %976 = vrot.lane.b32.xlu1 %v2445_v35, %s2340_s30  ;;  %980 = vrot.lane.b32.xlu0 %v2620_v24, %s2340_s30 }
 0x1b6   : > { %v3213_v26 = vpop.permute.xlu2 %799 }
 0x1b7   : > { %4789 = vst [vmem:[#allocation143_spill] sm:$0xff] %v3213_v26  ;;  %v3218_v19 = vpop.permute.xlu1 %508  ;;  %v3220_v21 = vpop.permute.xlu0 %580 }
 0x1b8   : > { %4790 = vst [vmem:[#allocation144_spill] sm:$0xff] %v3218_v19 }
 0x1b9   : > { %4791 = vst [vmem:[#allocation145_spill] sm:$0xff] %v3220_v21 }
 0x1bc   : > { %984 = vrot.lane.b32.xlu2 %v3227_v13, %s2340_s30 }
 0x1bd   : > { %982 = vrot.lane.b32.xlu1 %v2711_v58, %s2340_s30  ;;  %1012 = vrot.lane.b32.xlu0 %v2454_v38, %s2341_s4  ;;  %s2283_s30 = smul.u32 48, %s5308_s13 }
 0x1be   : > { %v3230_v25 = vpop.permute.xlu2 %867 }
 0x1bf   : > { %4794 = vst [vmem:[#allocation147_spill] sm:$0xff] %v3230_v25  ;;  %v3234_v45 = vpop.permute.xlu1 %582  ;;  %v3236_v19 = vpop.permute.xlu0 %653 }
 0x1c0   : > { %4795 = vst [vmem:[#allocation148_spill] sm:$0xff] %v3234_v45 }
 0x1c1   : > { %4796 = vst [vmem:[#allocation149_spill] sm:$0xff] %v3236_v19 }
 0x1c4   : > { %1016 = vrot.lane.b32.xlu2 %v2775_v30, %s2341_s4 }
 0x1c5   : > { %1014 = vrot.lane.b32.xlu1 %v2585_v29, %s2341_s4  ;;  %1018 = vrot.lane.b32.xlu0 %v2798_v61, %s2341_s4 }
 0x1c6   : > { %v3239_v21 = vpop.permute.xlu2 %873 }
 0x1c7   : > { %4797 = vst [vmem:[#allocation150_spill] sm:$0xff] %v3239_v21  ;;  %v3243_v47 = vpop.permute.xlu1 %655  ;;  %v3245_v17 = vpop.permute.xlu0 %727 }
 0x1c8   : > { %4798 = vst [vmem:[#allocation151_spill] sm:$0xff] %v3243_v47 }
 0x1c9   : > { %4799 = vst [vmem:[#allocation152_spill] sm:$0xff] %v3245_v17  ;;  %v4552_v17 = vrot.slane %v3210_v10, 2 }
 0x1cc   : > { %1022 = vrot.lane.b32.xlu2 %v2944_v57, %s2341_s4 }
 0x1cd   : > { %1020 = vrot.lane.b32.xlu1 %v2933_v36, %s2341_s4  ;;  %1024 = vrot.lane.b32.xlu0 %v2968_v5, %s2341_s4 }
 0x1ce   : > { %v3248_v26 = vpop.permute.xlu2 %879 }
 0x1cf   : > { %4800 = vst [vmem:[#allocation153_spill] sm:$0xff] %v3248_v26  ;;  %v3252_v38 = vpop.permute.xlu1 %729  ;;  %v3254_v19 = vpop.permute.xlu0 %801 }
 0x1d0   : > { %4801 = vst [vmem:[#allocation154_spill] sm:$0xff] %v3252_v38  ;;  %v4806_v38 = vrot.slane %v2682_v23, 2 }
 0x1d1   : > { %4802 = vst [vmem:[#allocation155_spill] sm:$0xff] %v3254_v19 }
 0x1d2   : > { %v3271_v19 = vsel %vm468_vm3, %v4806_v38, %v4552_v17 }
 0x1d3   : > { %4807 = vst [vmem:[#allocation159_spill] sm:$0xff] %v3271_v19 }
 0x1d4   : > { %1028 = vrot.lane.b32.xlu2 %v2649_v2, %s2341_s4 }
 0x1d5   : > { %1026 = vrot.lane.b32.xlu1 %v2467_v42, %s2341_s4  ;;  %1030 = vrot.lane.b32.xlu0 %v2644_v33, %s2341_s4 }
 0x1d6   : > { %v3257_v45 = vpop.permute.xlu2 %885 }
 0x1d7   : > { %4803 = vst [vmem:[#allocation156_spill] sm:$0xff] %v3257_v45  ;;  %v3262_v47 = vpop.permute.xlu1 %803  ;;  %v3264_v26 = vpop.permute.xlu0 %869 }
 0x1d8   : > { %4804 = vst [vmem:[#allocation157_spill] sm:$0xff] %v3262_v47 }
 0x1d9   : > { %4805 = vst [vmem:[#allocation158_spill] sm:$0xff] %v3264_v26 }
 0x1dc   : > { %1034 = vrot.lane.b32.xlu2 %v3271_v19, %s2341_s4 }
 0x1dd   : > { %1032 = vrot.lane.b32.xlu1 %v2735_v1, %s2341_s4  ;;  %1062 = vrot.lane.b32.xlu0 %v2477_v46, %s2342_s5 }
 0x1de   : > { %v3274_v21 = vpop.permute.xlu2 %915 }
 0x1df   : > { %4808 = vst [vmem:[#allocation160_spill] sm:$0xff] %v3274_v21  ;;  %v3278_v25 = vpop.permute.xlu1 %871  ;;  %v3280_v47 = vpop.permute.xlu0 %875 }
 0x1e0   : > { %4809 = vst [vmem:[#allocation161_spill] sm:$0xff] %v3278_v25 }
 0x1e1   : > { %4810 = vst [vmem:[#allocation162_spill] sm:$0xff] %v3280_v47 }
 0x1e4   : > { %1066 = vrot.lane.b32.xlu2 %v2803_v52, %s2342_s5 }
 0x1e5   : > { %1064 = vrot.lane.b32.xlu1 %v2615_v53, %s2342_s5  ;;  %1068 = vrot.lane.b32.xlu0 %v2828_v44, %s2342_s5 }
 0x1e6   : > { %v3283_v26 = vpop.permute.xlu2 %921 }
 0x1e7   : > { %4811 = vst [vmem:[#allocation163_spill] sm:$0xff] %v3283_v26  ;;  %v3287_v38 = vpop.permute.xlu1 %877  ;;  %v3289_v17 = vpop.permute.xlu0 %881 }
 0x1e8   : > { %4812 = vst [vmem:[#allocation164_spill] sm:$0xff] %v3287_v38  ;;  %v4553_v38 = vrot.slane %v3210_v10, 3 }
 0x1e9   : > { %4813 = vst [vmem:[#allocation165_spill] sm:$0xff] %v3289_v17 }
 0x1ec   : > { %1072 = vrot.lane.b32.xlu2 %v2971_v9, %s2342_s5 }
 0x1ed   : > { %1070 = vrot.lane.b32.xlu1 %v2960_v56, %s2342_s5  ;;  %1074 = vrot.lane.b32.xlu0 %v2995_v16, %s2342_s5 }
 0x1ee   : > { %v3292_v21 = vpop.permute.xlu2 %927 }
 0x1ef   : > { %4814 = vst [vmem:[#allocation166_spill] sm:$0xff] %v3292_v21  ;;  %v3296_v46 = vpop.permute.xlu1 %883  ;;  %v3298_v47 = vpop.permute.xlu0 %911 }
 0x1f0   : > { %4815 = vst [vmem:[#allocation167_spill] sm:$0xff] %v3296_v46  ;;  %v4820_v46 = vrot.slane %v2682_v23, 3 }
 0x1f1   : > { %4816 = vst [vmem:[#allocation168_spill] sm:$0xff] %v3298_v47 }
 0x1f2   : > { %v3315_v47 = vsel %vm542_vm4, %v4820_v46, %v4553_v38 }
 0x1f3   : > { %4821 = vst [vmem:[#allocation172_spill] sm:$0xff] %v3315_v47 }
 0x1f4   : > { %1078 = vrot.lane.b32.xlu2 %v2673_v11, %s2342_s5 }
 0x1f5   : > { %1076 = vrot.lane.b32.xlu1 %v2490_v50, %s2342_s5  ;;  %1080 = vrot.lane.b32.xlu0 %v2668_v41, %s2342_s5 }
 0x1f6   : > { %v3301_v25 = vpop.permute.xlu2 %933 }
 0x1f7   : > { %4817 = vst [vmem:[#allocation169_spill] sm:$0xff] %v3301_v25  ;;  %v3306_v17 = vpop.permute.xlu1 %913  ;;  %v3308_v21 = vpop.permute.xlu0 %917 }
 0x1f8   : > { %4818 = vst [vmem:[#allocation170_spill] sm:$0xff] %v3306_v17 }
 0x1f9   : > { %4819 = vst [vmem:[#allocation171_spill] sm:$0xff] %v3308_v21 }
 0x1fc   : > { %1084 = vrot.lane.b32.xlu2 %v3315_v47, %s2342_s5 }
 0x1fd   : > { %1082 = vrot.lane.b32.xlu1 %v2761_v51, %s2342_s5  ;;  %1112 = vrot.lane.b32.xlu0 %v2500_v54, %s2343_s6 }
 0x1fe   : > { %v3318_v26 = vpop.permute.xlu2 %966 }
 0x1ff   : > { %4822 = vst [vmem:[#allocation173_spill] sm:$0xff] %v3318_v26  ;;  %v3322_v25 = vpop.permute.xlu1 %919  ;;  %v3324_v17 = vpop.permute.xlu0 %923 }
 0x200   : > { %4823 = vst [vmem:[#allocation174_spill] sm:$0xff] %v3322_v25 }
 0x201   : > { %4824 = vst [vmem:[#allocation175_spill] sm:$0xff] %v3324_v17 }
 0x204   : > { %1116 = vrot.lane.b32.xlu2 %v2833_v59, %s2343_s6 }
 0x205   : > { %1114 = vrot.lane.b32.xlu1 %v2639_v63, %s2343_s6  ;;  %1118 = vrot.lane.b32.xlu0 %v2858_v7, %s2343_s6 }
 0x206   : > { %v3327_v21 = vpop.permute.xlu2 %972 }
 0x207   : > { %4825 = vst [vmem:[#allocation176_spill] sm:$0xff] %v3327_v21  ;;  %v3331_v46 = vpop.permute.xlu1 %925  ;;  %v3333_v38 = vpop.permute.xlu0 %929  ;;  %v4832_v21 = vld [vmem:[#allocation9_spill] sm:$0xff] }
 0x208   : > { %4826 = vst [vmem:[#allocation177_spill] sm:$0xff] %v3331_v46  ;;  %v4833_v46 = vld [vmem:[#allocation26_spill] sm:$0xff] }
 0x209   : > { %4827 = vst [vmem:[#allocation178_spill] sm:$0xff] %v3333_v38  ;;  %v4560_v38 = vrot.slane %v3210_v10, 4 }
 0x20c   : > { %1122 = vrot.lane.b32.xlu2 %v2998_v62, %s2343_s6 }
 0x20d   : > { %1120 = vrot.lane.b32.xlu1 %v2987_v3, %s2343_s6  ;;  %1124 = vrot.lane.b32.xlu0 %v3020_v4, %s2343_s6  ;;  %v4845_v4 = vld [vmem:[#allocation21_spill] sm:$0xff] }
 0x20e   : > { %v3336_v26 = vpop.permute.xlu2 %978 }
 0x20f   : > { %4828 = vst [vmem:[#allocation179_spill] sm:$0xff] %v3336_v26  ;;  %v3340_v54 = vpop.permute.xlu1 %931  ;;  %v3342_v17 = vpop.permute.xlu0 %962 }
 0x210   : > { %4829 = vst [vmem:[#allocation180_spill] sm:$0xff] %v3340_v54  ;;  %v4836_v54 = vrot.slane %v2682_v23, 4 }
 0x211   : > { %4830 = vst [vmem:[#allocation181_spill] sm:$0xff] %v3342_v17 }
 0x212   : > { %v3359_v17 = vsel %vm260_vm0, %v4836_v54, %v4560_v38  ;;  %v4846_v54 = vld [vmem:[#allocation61_spill] sm:$0xff] }
 0x213   : > { %4837 = vst [vmem:[#allocation185_spill] sm:$0xff] %v3359_v17 }
 0x214   : > { %1128 = vrot.lane.b32.xlu2 %v2699_v31, %s2343_s6  ;;  %v4839_v31 = vld [vmem:[#allocation42_spill] sm:$0xff] }
 0x215   : > { %1126 = vrot.lane.b32.xlu1 %v4832_v21, %s2343_s6  ;;  %1130 = vrot.lane.b32.xlu0 %v4833_v46, %s2343_s6  ;;  %v4840_v46 = vld [vmem:[#allocation10_spill] sm:$0xff] }
 0x216   : > { %v3345_v25 = vpop.permute.xlu2 %984 }
 0x217   : > { %4831 = vst [vmem:[#allocation182_spill] sm:$0xff] %v3345_v25  ;;  %v3350_v45 = vpop.permute.xlu1 %964  ;;  %v3352_v26 = vpop.permute.xlu0 %968 }
 0x218   : > { %4834 = vst [vmem:[#allocation183_spill] sm:$0xff] %v3350_v45 }
 0x219   : > { %4835 = vst [vmem:[#allocation184_spill] sm:$0xff] %v3352_v26  ;;  %v4843_v26 = vld [vmem:[#allocation56_spill] sm:$0xff] }
 0x21c   : > { %1134 = vrot.lane.b32.xlu2 %v3359_v17, %s2343_s6  ;;  %v4849_v17 = vld [vmem:[#allocation92_spill] sm:$0xff] }
 0x21d   : > { %1132 = vrot.lane.b32.xlu1 %v4839_v31, %s2343_s6  ;;  %1162 = vrot.lane.b32.xlu0 %v4840_v46, %s2344_s7  ;;  %v4851_v46 = vld [vmem:[#allocation90_spill] sm:$0xff]  ;;  %s4408_s6 = scalar_lea.vmem %s4467_s3, %s2283_s30 }
 0x21e   : > { %v3362_v25 = vpop.permute.xlu2 %1016 }
 0x21f   : > { %4838 = vst [vmem:[#allocation186_spill] sm:$0xff] %v3362_v25  ;;  %v3366_v21 = vpop.permute.xlu1 %970  ;;  %v3368_v45 = vpop.permute.xlu0 %974 }
 0x220   : > { %4841 = vst [vmem:[#allocation10_spill] sm:$0xff] %v3366_v21  ;;  %v4852_v21 = vld [vmem:[#allocation97_spill] sm:$0xff] }
 0x221   : > { %4842 = vst [vmem:[#allocation187_spill] sm:$0xff] %v3368_v45 }
 0x224   : > { %1166 = vrot.lane.b32.xlu2 %v4843_v26, %s2344_s7 }
 0x225   : > { %1164 = vrot.lane.b32.xlu1 %v4845_v4, %s2344_s7  ;;  %1168 = vrot.lane.b32.xlu0 %v4846_v54, %s2344_s7  ;;  %v4857_v54 = vld [vmem:[#allocation11_spill] sm:$0xff] }
 0x226   : > { %v3371_v62 = vpop.permute.xlu2 %1022 }
 0x227   : > { %4844 = vst [vmem:[#allocation188_spill] sm:$0xff] %v3371_v62  ;;  %v3375_v38 = vpop.permute.xlu1 %976  ;;  %v3377_v25 = vpop.permute.xlu0 %980  ;;  %v4855_v62 = vld [vmem:[#allocation30_spill] sm:$0xff] }
 0x228   : > { %4847 = vst [vmem:[#allocation189_spill] sm:$0xff] %v3375_v38  ;;  %v4858_v38 = vld [vmem:[#allocation29_spill] sm:$0xff] }
 0x229   : > { %4848 = vst [vmem:[#allocation190_spill] sm:$0xff] %v3377_v25  ;;  %v4563_v25 = vrot.slane %v3210_v10, 5 }
 0x22c   : > { %1172 = vrot.lane.b32.xlu2 %v4849_v17, %s2344_s7 }
 0x22d   : > { %1170 = vrot.lane.b32.xlu1 %v4851_v46, %s2344_s7  ;;  %1174 = vrot.lane.b32.xlu0 %v4852_v21, %s2344_s7  ;;  %v4870_v46 = vld [vmem:[#allocation25_spill] sm:$0xff] }
 0x22e   : > { %v3380_v31 = vpop.permute.xlu2 %1028 }
 0x22f   : > { %4850 = vst [vmem:[#allocation191_spill] sm:$0xff] %v3380_v31  ;;  %v3384_v45 = vpop.permute.xlu1 %982  ;;  %v3386_v26 = vpop.permute.xlu0 %1012 }
 0x230   : > { %4853 = vst [vmem:[#allocation192_spill] sm:$0xff] %v3384_v45  ;;  %v4861_v45 = vrot.slane %v2682_v23, 5 }
 0x231   : > { %4854 = vst [vmem:[#allocation193_spill] sm:$0xff] %v3386_v26 }
 0x232   : > { %v3403_v26 = vsel %vm689_vm5, %v4861_v45, %v4563_v25  ;;  %v4871_v45 = vld [vmem:[#allocation68_spill] sm:$0xff] }
 0x233   : > { %4862 = vst [vmem:[#allocation197_spill] sm:$0xff] %v3403_v26 }
 0x234   : > { %1178 = vrot.lane.b32.xlu2 %v4855_v62, %s2344_s7  ;;  %v4864_v62 = vld [vmem:[#allocation48_spill] sm:$0xff] }
 0x235   : > { %1176 = vrot.lane.b32.xlu1 %v4857_v54, %s2344_s7  ;;  %1180 = vrot.lane.b32.xlu0 %v4858_v38, %s2344_s7  ;;  %v4865_v38 = vld [vmem:[#allocation12_spill] sm:$0xff] }
 0x236   : > { %v3389_v4 = vpop.permute.xlu2 %1034 }
 0x237   : > { %4856 = vst [vmem:[#allocation194_spill] sm:$0xff] %v3389_v4  ;;  %v3394_v17 = vpop.permute.xlu1 %1014  ;;  %v3396_v31 = vpop.permute.xlu0 %1018 }
 0x238   : > { %4859 = vst [vmem:[#allocation195_spill] sm:$0xff] %v3394_v17 }
 0x239   : > { %4860 = vst [vmem:[#allocation196_spill] sm:$0xff] %v3396_v31  ;;  %v4868_v31 = vld [vmem:[#allocation62_spill] sm:$0xff] }
 0x23c   : > { %1184 = vrot.lane.b32.xlu2 %v3403_v26, %s2344_s7  ;;  %v4874_v26 = vld [vmem:[#allocation98_spill] sm:$0xff] }
 0x23d   : > { %1182 = vrot.lane.b32.xlu1 %v4864_v62, %s2344_s7  ;;  %1212 = vrot.lane.b32.xlu0 %v4865_v38, %s2345_s8  ;;  %v4876_v38 = vld [vmem:[#allocation96_spill] sm:$0xff] }
 0x23e   : > { %v3406_v4 = vpop.permute.xlu2 %1066 }
 0x23f   : > { %4863 = vst [vmem:[#allocation198_spill] sm:$0xff] %v3406_v4  ;;  %v3410_v54 = vpop.permute.xlu1 %1020  ;;  %v3412_v17 = vpop.permute.xlu0 %1024 }
 0x240   : > { %4866 = vst [vmem:[#allocation12_spill] sm:$0xff] %v3410_v54  ;;  %v4877_v54 = vld [vmem:[#allocation103_spill] sm:$0xff] }
 0x241   : > { %4867 = vst [vmem:[#allocation199_spill] sm:$0xff] %v3412_v17 }
 0x244   : > { %1216 = vrot.lane.b32.xlu2 %v4868_v31, %s2345_s8 }
 0x245   : > { %1214 = vrot.lane.b32.xlu1 %v4870_v46, %s2345_s8  ;;  %1218 = vrot.lane.b32.xlu0 %v4871_v45, %s2345_s8  ;;  %v4882_v45 = vld [vmem:[#allocation13_spill] sm:$0xff] }
 0x246   : > { %v3415_v21 = vpop.permute.xlu2 %1072 }
 0x247   : > { %4869 = vst [vmem:[#allocation200_spill] sm:$0xff] %v3415_v21  ;;  %v3419_v25 = vpop.permute.xlu1 %1026  ;;  %v3421_v4 = vpop.permute.xlu0 %1030  ;;  %v4880_v21 = vld [vmem:[#allocation34_spill] sm:$0xff] }
 0x248   : > { %4872 = vst [vmem:[#allocation201_spill] sm:$0xff] %v3419_v25  ;;  %v4883_v25 = vld [vmem:[#allocation33_spill] sm:$0xff] }
 0x249   : > { %4873 = vst [vmem:[#allocation202_spill] sm:$0xff] %v3421_v4  ;;  %v4566_v4 = vrot.slane %v3210_v10, 6 }
 0x24c   : > { %1222 = vrot.lane.b32.xlu2 %v4874_v26, %s2345_s8 }
 0x24d   : > { %1220 = vrot.lane.b32.xlu1 %v4876_v38, %s2345_s8  ;;  %1224 = vrot.lane.b32.xlu0 %v4877_v54, %s2345_s8  ;;  %v4895_v38 = vld [vmem:[#allocation102_spill] sm:$0xff] }
 0x24e   : > { %v3424_v62 = vpop.permute.xlu2 %1078 }
 0x24f   : > { %4875 = vst [vmem:[#allocation203_spill] sm:$0xff] %v3424_v62  ;;  %v3428_v17 = vpop.permute.xlu1 %1032  ;;  %v3430_v31 = vpop.permute.xlu0 %1062 }
 0x250   : > { %4878 = vst [vmem:[#allocation204_spill] sm:$0xff] %v3428_v17  ;;  %v4886_v17 = vrot.slane %v2682_v23, 6 }
 0x251   : > { %4879 = vst [vmem:[#allocation205_spill] sm:$0xff] %v3430_v31 }
 0x252   : > { %v3447_v31 = vsel %vm763_vm6, %v4886_v17, %v4566_v4  ;;  %v4896_v17 = vld [vmem:[#allocation109_spill] sm:$0xff] }
 0x253   : > { %4887 = vst [vmem:[#allocation209_spill] sm:$0xff] %v3447_v31 }
 0x254   : > { %1228 = vrot.lane.b32.xlu2 %v4880_v21, %s2345_s8  ;;  %v4889_v21 = vld [vmem:[#allocation54_spill] sm:$0xff] }
 0x255   : > { %1226 = vrot.lane.b32.xlu1 %v4882_v45, %s2345_s8  ;;  %1230 = vrot.lane.b32.xlu0 %v4883_v25, %s2345_s8  ;;  %v4890_v25 = vld [vmem:[#allocation14_spill] sm:$0xff] }
 0x256   : > { %v3433_v46 = vpop.permute.xlu2 %1084 }
 0x257   : > { %4881 = vst [vmem:[#allocation206_spill] sm:$0xff] %v3433_v46  ;;  %v3438_v26 = vpop.permute.xlu1 %1064  ;;  %v3440_v62 = vpop.permute.xlu0 %1068 }
 0x258   : > { %4884 = vst [vmem:[#allocation207_spill] sm:$0xff] %v3438_v26 }
 0x259   : > { %4885 = vst [vmem:[#allocation208_spill] sm:$0xff] %v3440_v62  ;;  %v4893_v62 = vld [vmem:[#allocation104_spill] sm:$0xff] }
 0x25c   : > { %1234 = vrot.lane.b32.xlu2 %v3447_v31, %s2345_s8  ;;  %v4899_v31 = vld [vmem:[#allocation110_spill] sm:$0xff] }
 0x25d   : > { %1232 = vrot.lane.b32.xlu1 %v4889_v21, %s2345_s8  ;;  %1262 = vrot.lane.b32.xlu0 %v4890_v25, %s2346_s9  ;;  %v4901_v25 = vld [vmem:[#allocation108_spill] sm:$0xff] }
 0x25e   : > { %v3450_v46 = vpop.permute.xlu2 %1116 }
 0x25f   : > { %4888 = vst [vmem:[#allocation210_spill] sm:$0xff] %v3450_v46  ;;  %v3454_v45 = vpop.permute.xlu1 %1070  ;;  %v3456_v26 = vpop.permute.xlu0 %1074 }
 0x260   : > { %4891 = vst [vmem:[#allocation14_spill] sm:$0xff] %v3454_v45 }
 0x261   : > { %4892 = vst [vmem:[#allocation211_spill] sm:$0xff] %v3456_v26 }
 0x264   : > { %1266 = vrot.lane.b32.xlu2 %v4893_v62, %s2346_s9  ;;  %v4904_v62 = vld [vmem:[#allocation114_spill] sm:$0xff] }
 0x265   : > { %1264 = vrot.lane.b32.xlu1 %v4895_v38, %s2346_s9  ;;  %1268 = vrot.lane.b32.xlu0 %v4896_v17, %s2346_s9 }
 0x266   : > { %v3459_v54 = vpop.permute.xlu2 %1122 }
 0x267   : > { %4894 = vst [vmem:[#allocation212_spill] sm:$0xff] %v3459_v54  ;;  %v3463_v4 = vpop.permute.xlu1 %1076  ;;  %v3465_v46 = vpop.permute.xlu0 %1080 }
 0x268   : > { %4897 = vst [vmem:[#allocation102_spill] sm:$0xff] %v3463_v4  ;;  %v4573_v4 = vrot.slane %v3210_v10, 7 }
 0x269   : > { %4898 = vst [vmem:[#allocation213_spill] sm:$0xff] %v3465_v46 }
 0x26c   : > { %1272 = vrot.lane.b32.xlu2 %v4899_v31, %s2346_s9 }
 0x26d   : > { %1270 = vrot.lane.b32.xlu1 %v4901_v25, %s2346_s9  ;;  %1274 = vrot.lane.b32.xlu0 %v3120_v49, %s2346_s9 }
 0x26e   : > { %v3468_v21 = vpop.permute.xlu2 %1128 }
 0x26f   : > { %4900 = vst [vmem:[#allocation110_spill] sm:$0xff] %v3468_v21  ;;  %v3472_v26 = vpop.permute.xlu1 %1082  ;;  %v3474_v45 = vpop.permute.xlu0 %1112 }
 0x270   : > { %4902 = vst [vmem:[#allocation214_spill] sm:$0xff] %v3472_v26  ;;  %v4907_v26 = vrot.slane %v2682_v23, 7 }
 0x271   : > { %4903 = vst [vmem:[#allocation215_spill] sm:$0xff] %v3474_v45 }
 0x272   : > { %v3491_v45 = vsel %vm837_vm7, %v4907_v26, %v4573_v4 }
 0x273   : > { %4908 = vst [vmem:[#allocation217_spill] sm:$0xff] %v3491_v45 }
 0x274   : > { %1278 = vrot.lane.b32.xlu2 %v3123_v8, %s2346_s9 }
 0x275   : > { %1276 = vrot.lane.b32.xlu1 %v4904_v62, %s2346_s9  ;;  %1280 = vrot.lane.b32.xlu0 %v3145_v27, %s2346_s9 }
 0x276   : > { %v3477_v54 = vpop.permute.xlu2 %1134 }
 0x277   : > { %v3482_v46 = vpop.permute.xlu1 %1114  ;;  %v3484_v21 = vpop.permute.xlu0 %1118 }
 0x278   : > { %4905 = vst [vmem:[#allocation114_spill] sm:$0xff] %v3482_v46 }
 0x279   : > { %4906 = vst [vmem:[#allocation216_spill] sm:$0xff] %v3484_v21 }
 0x27c   : > { %1284 = vrot.lane.b32.xlu2 %v3491_v45, %s2346_s9 }
 0x27d   : > { %1282 = vrot.lane.b32.xlu1 %v3140_v60, %s2346_s9  ;;  %1310 = vrot.lane.b32.xlu0 %v2436_v32, %s2347_s10 }
 0x27e   : > { %v3494_v8 = vpop.permute.xlu2 %1166 }
 0x27f   : > { %v3498_v27 = vpop.permute.xlu1 %1120  ;;  %v3500_v46 = vpop.permute.xlu0 %1124 }
 0x280   : > { %4909 = vst [vmem:[#allocation218_spill] sm:$0xff] %v3498_v27 }
 0x281   : > { %4910 = vst [vmem:[#allocation219_spill] sm:$0xff] %v3500_v46 }
 0x284   : > { %1314 = vrot.lane.b32.xlu2 %v2739_v34, %s2347_s10 }
 0x285   : > { %1312 = vrot.lane.b32.xlu1 %v2556_v14, %s2347_s10  ;;  %1316 = vrot.lane.b32.xlu0 %v2765_v48, %s2347_s10 }
 0x286   : > { %v3503_v21 = vpop.permute.xlu2 %1172 }
 0x287   : > { %4911 = vst [vmem:[#allocation220_spill] sm:$0xff] %v3503_v21  ;;  %v3507_v26 = vpop.permute.xlu1 %1126  ;;  %v3509_v4 = vpop.permute.xlu0 %1130 }
 0x288   : > { %4912 = vst [vmem:[#allocation221_spill] sm:$0xff] %v3507_v26 }
 0x289   : > { %4913 = vst [vmem:[#allocation222_spill] sm:$0xff] %v3509_v4 }
 0x28c   : > { %1320 = vrot.lane.b32.xlu2 %v2885_v0, %s2347_s10 }
 0x28d   : > { %1318 = vrot.lane.b32.xlu1 %v2878_v15, %s2347_s10  ;;  %1322 = vrot.lane.b32.xlu0 %v2425_v22, %s2347_s10 }
 0x28e   : > { %v3512_v45 = vpop.permute.xlu2 %1178 }
 0x28f   : > { %4914 = vst [vmem:[#allocation223_spill] sm:$0xff] %v3512_v45  ;;  %v3516_v46 = vpop.permute.xlu1 %1132  ;;  %v3518_v27 = vpop.permute.xlu0 %1162 }
 0x290   : > { %4915 = vst [vmem:[#allocation224_spill] sm:$0xff] %v3516_v46 }
 0x291   : > { %4916 = vst [vmem:[#allocation225_spill] sm:$0xff] %v3518_v27 }
 0x294   : > { %1326 = vrot.lane.b32.xlu2 %v2589_v37, %s2347_s10 }
 0x295   : > { %1324 = vrot.lane.b32.xlu1 %v2433_v28, %s2347_s10  ;;  %1328 = vrot.lane.b32.xlu0 %v2591_v39, %s2347_s10 }
 0x296   : > { %v3521_v21 = vpop.permute.xlu2 %1184 }
 0x297   : > { %v3525_v26 = vpop.permute.xlu1 %1164  ;;  %v3527_v4 = vpop.permute.xlu0 %1168 }
 0x298   : > { %4917 = vst [vmem:[#allocation226_spill] sm:$0xff] %v3525_v26 }
 0x299   : > { %4918 = vst [vmem:[#allocation227_spill] sm:$0xff] %v3527_v4 }
 0x29c   : > { %1332 = vrot.lane.b32.xlu2 %v3210_v10, %s2347_s10 }
 0x29d   : > { %1330 = vrot.lane.b32.xlu1 %v2682_v23, %s2347_s10  ;;  %1361 = vrot.lane.b32.xlu0 %v2596_v43, %s2348_s11  ;;  %v308_v43 = vpop.f32.mrf.mxu2 }
 0x29e   : > { %v3530_v45 = vpop.permute.xlu2 %1216 }
 0x29f   : > { %v3534_v27 = vpop.permute.xlu1 %1170  ;;  %v3536_v46 = vpop.permute.xlu0 %1174 }
 0x2a0   : > { %4919 = vst [vmem:[#allocation228_spill] sm:$0xff] %v3534_v27 }
 0x2a1   : > { %4920 = vst [vmem:[#allocation229_spill] sm:$0xff] %v3536_v46 }
 0x2a4   : > { %1365 = vrot.lane.b32.xlu2 %v2881_v20, %s2348_s11  ;;  %v376_v20 = vpop.f32.mrf.mxu3 }
 0x2a5   : > { %1363 = vrot.lane.b32.xlu1 %v2770_v40, %s2348_s11  ;;  %1367 = vrot.lane.b32.xlu0 %v2909_v12, %s2348_s11  ;;  %v3556_v40 = vadd.f32 %v376_v20, %v308_v43 }
 0x2a6   : > { %v3539_v60 = vpop.permute.xlu2 %1222 }
 0x2a7   : > { %v3543_v4 = vpop.permute.xlu1 %1176  ;;  %v3545_v26 = vpop.permute.xlu0 %1180  ;;  %4924 = vst [vmem:[#allocation233_spill] sm:$0xff] %v3556_v40 }
 0x2a8   : > { %4921 = vst [vmem:[#allocation230_spill] sm:$0xff] %v3543_v4  ;;  %v4927_v4 = vrot.slane %v3210_v10, 1 }
 0x2ac   : > { %1371 = vrot.lane.b32.xlu2 %v2941_v6, %s2348_s11  ;;  %v4588_v6 = vrot.slane %v3556_v40, 1 }
 0x2ad   : > { %1369 = vrot.lane.b32.xlu1 %v2912_v18, %s2348_s11  ;;  %1373 = vrot.lane.b32.xlu0 %v2445_v35, %s2348_s11 }
 0x2ae   : > { %v3548_v23 = vpop.permute.xlu2 %1228  ;;  %v3573_v20 = vsel %vm394_vm2, %v4927_v4, %v4588_v6 }
 0x2af   : > { %v3552_v46 = vpop.permute.xlu1 %1182  ;;  %v3554_v27 = vpop.permute.xlu0 %1212  ;;  %4928 = vst [vmem:[#allocation236_spill] sm:$0xff] %v3573_v20 }
 0x2b0   : > { %4922 = vst [vmem:[#allocation231_spill] sm:$0xff] %v3552_v46  ;;  %v5045_v46 = vld [vmem:[#allocation65_spill] sm:$0xff] }
 0x2b1   : > { %4923 = vst [vmem:[#allocation232_spill] sm:$0xff] %v3554_v27 }
 0x2b4   : > { %1377 = vrot.lane.b32.xlu2 %v2620_v24, %s2348_s11 }
 0x2b5   : > { %1375 = vrot.lane.b32.xlu1 %v2625_v55, %s2348_s11  ;;  %1379 = vrot.lane.b32.xlu0 %v2711_v58, %s2348_s11 }
 0x2b6   : > { %v3559_v12 = vpop.permute.xlu2 %1234 }
 0x2b7   : > { %v3564_v18 = vpop.permute.xlu1 %1214  ;;  %v3566_v35 = vpop.permute.xlu0 %1218 }
 0x2b8   : > { %4925 = vst [vmem:[#allocation234_spill] sm:$0xff] %v3564_v18 }
 0x2b9   : > { %4926 = vst [vmem:[#allocation235_spill] sm:$0xff] %v3566_v35 }
 0x2bc   : > { %1383 = vrot.lane.b32.xlu2 %v3573_v20, %s2348_s11 }
 0x2bd   : > { %1381 = vrot.lane.b32.xlu1 %v3227_v13, %s2348_s11  ;;  %1411 = vrot.lane.b32.xlu0 %v2585_v29, %s2349_s14 }
 0x2be   : > { %v3576_v43 = vpop.permute.xlu2 %1266 }
 0x2bf   : > { %v3580_v24 = vpop.permute.xlu1 %1220  ;;  %v3582_v58 = vpop.permute.xlu0 %1224 }
 0x2c0   : > { %4929 = vst [vmem:[#allocation237_spill] sm:$0xff] %v3580_v24 }
 0x2c1   : > { %4930 = vst [vmem:[#allocation238_spill] sm:$0xff] %v3582_v58 }
 0x2c4   : > { %1415 = vrot.lane.b32.xlu2 %v2798_v61, %s2349_s14 }
 0x2c5   : > { %1413 = vrot.lane.b32.xlu1 %v2775_v30, %s2349_s14  ;;  %1417 = vrot.lane.b32.xlu0 %v2933_v36, %s2349_s14 }
 0x2c6   : > { %v3585_v55 = vpop.permute.xlu2 %1272 }
 0x2c7   : > { %v3589_v4 = vpop.permute.xlu1 %1226  ;;  %v3591_v6 = vpop.permute.xlu0 %1230 }
 0x2c8   : > { %4931 = vst [vmem:[#allocation239_spill] sm:$0xff] %v3589_v4 }
 0x2cc   : > { %1421 = vrot.lane.b32.xlu2 %v2968_v5, %s2349_s14  ;;  %v4600_v5 = vrot.slane %v3556_v40, 2 }
 0x2cd   : > { %1419 = vrot.lane.b32.xlu1 %v2944_v57, %s2349_s14  ;;  %1423 = vrot.lane.b32.xlu0 %v2467_v42, %s2349_s14  ;;  %v4937_v42 = vrot.slane %v3210_v10, 2 }
 0x2ce   : > { %v3594_v20 = vpop.permute.xlu2 %1278 }
 0x2cf   : > { %4932 = vst [vmem:[#allocation240_spill] sm:$0xff] %v3594_v20  ;;  %v3598_v29 = vpop.permute.xlu1 %1232  ;;  %v3600_v61 = vpop.permute.xlu0 %1262  ;;  %v3617_v57 = vsel %vm468_vm3, %v4937_v42, %v4600_v5 }
 0x2d0   : > { %4933 = vst [vmem:[#allocation241_spill] sm:$0xff] %v3598_v29  ;;  %v5012_v29 = vld [vmem:[#allocation105_spill] sm:$0xff] }
 0x2d1   : > { %4934 = vst [vmem:[#allocation242_spill] sm:$0xff] %v3600_v61 }
 0x2d2   : > { %4938 = vst [vmem:[#allocation245_spill] sm:$0xff] %v3617_v57 }
 0x2d4   : > { %1427 = vrot.lane.b32.xlu2 %v2644_v33, %s2349_s14 }
 0x2d5   : > { %1425 = vrot.lane.b32.xlu1 %v2649_v2, %s2349_s14  ;;  %1429 = vrot.lane.b32.xlu0 %v2735_v1, %s2349_s14 }
 0x2d6   : > { %v3603_v30 = vpop.permute.xlu2 %1284 }
 0x2d7   : > { %v3608_v36 = vpop.permute.xlu1 %1264  ;;  %v3610_v13 = vpop.permute.xlu0 %1268 }
 0x2d8   : > { %4935 = vst [vmem:[#allocation243_spill] sm:$0xff] %v3608_v36  ;;  %v4980_v36 = vld [vmem:[#allocation29_spill] sm:$0xff] }
 0x2d9   : > { %4936 = vst [vmem:[#allocation244_spill] sm:$0xff] %v3610_v13 }
 0x2dc   : > { %1433 = vrot.lane.b32.xlu2 %v3617_v57, %s2349_s14 }
 0x2dd   : > { %1431 = vrot.lane.b32.xlu1 %v3271_v19, %s2349_s14  ;;  %1461 = vrot.lane.b32.xlu0 %v2615_v53, %s2350_s15 }
 0x2de   : > { %v3620_v33 = vpop.permute.xlu2 %1314 }
 0x2df   : > { %v3624_v1 = vpop.permute.xlu1 %1270  ;;  %v3626_v2 = vpop.permute.xlu0 %1274 }
 0x2e0   : > { %4939 = vst [vmem:[#allocation246_spill] sm:$0xff] %v3624_v1 }
 0x2e1   : > { %4940 = vst [vmem:[#allocation247_spill] sm:$0xff] %v3626_v2  ;;  %v4958_v2 = vld [vmem:[#allocation26_spill] sm:$0xff] }
 0x2e4   : > { %1465 = vrot.lane.b32.xlu2 %v2828_v44, %s2350_s15 }
 0x2e5   : > { %1463 = vrot.lane.b32.xlu1 %v2803_v52, %s2350_s15  ;;  %1467 = vrot.lane.b32.xlu0 %v2960_v56, %s2350_s15 }
 0x2e6   : > { %v3629_v4 = vpop.permute.xlu2 %1320 }
 0x2e7   : > { %v3633_v42 = vpop.permute.xlu1 %1276  ;;  %v3635_v5 = vpop.permute.xlu0 %1280 }
 0x2e8   : > { %4941 = vst [vmem:[#allocation248_spill] sm:$0xff] %v3633_v42 }
 0x2ec   : > { %1471 = vrot.lane.b32.xlu2 %v2995_v16, %s2350_s15  ;;  %v4612_v16 = vrot.slane %v3556_v40, 3 }
 0x2ed   : > { %1469 = vrot.lane.b32.xlu1 %v2971_v9, %s2350_s15  ;;  %1473 = vrot.lane.b32.xlu0 %v2490_v50, %s2350_s15  ;;  %v4947_v50 = vrot.slane %v3210_v10, 3 }
 0x2ee   : > { %v3638_v57 = vpop.permute.xlu2 %1326 }
 0x2ef   : > { %4942 = vst [vmem:[#allocation249_spill] sm:$0xff] %v3638_v57  ;;  %v3642_v53 = vpop.permute.xlu1 %1282  ;;  %v3644_v44 = vpop.permute.xlu0 %1310  ;;  %v3661_v9 = vsel %vm542_vm4, %v4947_v50, %v4612_v16 }
 0x2f0   : > { %4943 = vst [vmem:[#allocation250_spill] sm:$0xff] %v3642_v53  ;;  %v5007_v53 = vld [vmem:[#allocation93_spill] sm:$0xff] }
 0x2f1   : > { %4944 = vst [vmem:[#allocation251_spill] sm:$0xff] %v3644_v44  ;;  %v5006_v44 = vld [vmem:[#allocation63_spill] sm:$0xff] }
 0x2f2   : > { %4948 = vst [vmem:[#allocation254_spill] sm:$0xff] %v3661_v9 }
 0x2f4   : > { %1477 = vrot.lane.b32.xlu2 %v2668_v41, %s2350_s15 }
 0x2f5   : > { %1475 = vrot.lane.b32.xlu1 %v2673_v11, %s2350_s15  ;;  %1479 = vrot.lane.b32.xlu0 %v2761_v51, %s2350_s15 }
 0x2f6   : > { %v3647_v52 = vpop.permute.xlu2 %1332 }
 0x2f7   : > { %v3652_v56 = vpop.permute.xlu1 %1312  ;;  %v3654_v19 = vpop.permute.xlu0 %1316 }
 0x2f8   : > { %4945 = vst [vmem:[#allocation252_spill] sm:$0xff] %v3652_v56  ;;  %v4970_v56 = vld [vmem:[#allocation56_spill] sm:$0xff] }
 0x2f9   : > { %4946 = vst [vmem:[#allocation253_spill] sm:$0xff] %v3654_v19 }
 0x2fc   : > { %1483 = vrot.lane.b32.xlu2 %v3661_v9, %s2350_s15  ;;  %v4952_v9 = vld [vmem:[#allocation91_spill] sm:$0xff] }
 0x2fd   : > { %1481 = vrot.lane.b32.xlu1 %v3315_v47, %s2350_s15  ;;  %1511 = vrot.lane.b32.xlu0 %v2639_v63, %s2351_s16  ;;  %v4954_v63 = vld [vmem:[#allocation86_spill] sm:$0xff] }
 0x2fe   : > { %v3664_v41 = vpop.permute.xlu2 %1365 }
 0x2ff   : > { %v3668_v51 = vpop.permute.xlu1 %1318  ;;  %v3670_v11 = vpop.permute.xlu0 %1322 }
 0x300   : > { %4949 = vst [vmem:[#allocation255_spill] sm:$0xff] %v3668_v51  ;;  %v4955_v51 = vld [vmem:[#allocation9_spill] sm:$0xff] }
 0x301   : > { %4950 = vst [vmem:[#allocation256_spill] sm:$0xff] %v3670_v11 }
 0x304   : > { %1515 = vrot.lane.b32.xlu2 %v2858_v7, %s2351_s16 }
 0x305   : > { %1513 = vrot.lane.b32.xlu1 %v2833_v59, %s2351_s16  ;;  %1517 = vrot.lane.b32.xlu0 %v2987_v3, %s2351_s16  ;;  %v4959_v3 = vld [vmem:[#allocation27_spill] sm:$0xff] }
 0x306   : > { %v3673_v42 = vpop.permute.xlu2 %1371 }
 0x307   : > { %v3677_v50 = vpop.permute.xlu1 %1324  ;;  %v3679_v16 = vpop.permute.xlu0 %1328 }
 0x308   : > { %4951 = vst [vmem:[#allocation257_spill] sm:$0xff] %v3677_v50  ;;  %v4960_v50 = vld [vmem:[#allocation42_spill] sm:$0xff] }
 0x30c   : > { %1521 = vrot.lane.b32.xlu2 %v4952_v9, %s2351_s16  ;;  %v4618_v9 = vrot.slane %v3556_v40, 4 }
 0x30d   : > { %1519 = vrot.lane.b32.xlu1 %v4954_v63, %s2351_s16  ;;  %1523 = vrot.lane.b32.xlu0 %v4955_v51, %s2351_s16  ;;  %v4963_v51 = vrot.slane %v3210_v10, 4 }
 0x30e   : > { %v3682_v47 = vpop.permute.xlu2 %1377 }
 0x30f   : > { %4953 = vst [vmem:[#allocation258_spill] sm:$0xff] %v3682_v47  ;;  %v3686_v11 = vpop.permute.xlu1 %1330  ;;  %v3688_v7 = vpop.permute.xlu0 %1361  ;;  %v3705_v63 = vsel %vm260_vm0, %v4963_v51, %v4618_v9  ;;  %v4971_v51 = vld [vmem:[#allocation90_spill] sm:$0xff] }
 0x310   : > { %4956 = vst [vmem:[#allocation259_spill] sm:$0xff] %v3686_v11 }
 0x311   : > { %4957 = vst [vmem:[#allocation260_spill] sm:$0xff] %v3688_v7  ;;  %v5002_v7 = vld [vmem:[#allocation3_spill] sm:$0xff] }
 0x312   : > { %4964 = vst [vmem:[#allocation263_spill] sm:$0xff] %v3705_v63 }
 0x314   : > { %1527 = vrot.lane.b32.xlu2 %v4958_v2, %s2351_s16 }
 0x315   : > { %1525 = vrot.lane.b32.xlu1 %v4959_v3, %s2351_s16  ;;  %1529 = vrot.lane.b32.xlu0 %v4960_v50, %s2351_s16  ;;  %v4965_v3 = vld [vmem:[#allocation185_spill] sm:$0xff] }
 0x316   : > { %v3691_v59 = vpop.permute.xlu2 %1383  ;;  %v4966_v50 = vld [vmem:[#allocation21_spill] sm:$0xff] }
 0x317   : > { %v3696_v1 = vpop.permute.xlu1 %1363  ;;  %v3698_v58 = vpop.permute.xlu0 %1367 }
 0x318   : > { %4961 = vst [vmem:[#allocation261_spill] sm:$0xff] %v3696_v1 }
 0x319   : > { %4962 = vst [vmem:[#allocation262_spill] sm:$0xff] %v3698_v58  ;;  %v4969_v58 = vld [vmem:[#allocation61_spill] sm:$0xff] }
 0x31c   : > { %1533 = vrot.lane.b32.xlu2 %v3705_v63, %s2351_s16 }
 0x31d   : > { %1531 = vrot.lane.b32.xlu1 %v4965_v3, %s2351_s16  ;;  %1561 = vrot.lane.b32.xlu0 %v4966_v50, %s2352_s17  ;;  %v4974_v3 = vld [vmem:[#allocation97_spill] sm:$0xff]  ;;  %v4976_v50 = vld [vmem:[#allocation92_spill] sm:$0xff] }
 0x31e   : > { %v3708_v2 = vpop.permute.xlu2 %1415 }
 0x31f   : > { %v3712_v24 = vpop.permute.xlu1 %1369  ;;  %v3714_v1 = vpop.permute.xlu0 %1373 }
 0x320   : > { %4967 = vst [vmem:[#allocation21_spill] sm:$0xff] %v3712_v24  ;;  %v4977_v24 = vld [vmem:[#allocation11_spill] sm:$0xff] }
 0x321   : > { %4968 = vst [vmem:[#allocation264_spill] sm:$0xff] %v3714_v1 }
 0x324   : > { %1565 = vrot.lane.b32.xlu2 %v4969_v58, %s2352_s17 }
 0x325   : > { %1563 = vrot.lane.b32.xlu1 %v4970_v56, %s2352_s17  ;;  %1567 = vrot.lane.b32.xlu0 %v4971_v51, %s2352_s17  ;;  %v4981_v51 = vld [vmem:[#allocation30_spill] sm:$0xff] }
 0x326   : > { %v3717_v19 = vpop.permute.xlu2 %1421 }
 0x327   : > { %v3721_v9 = vpop.permute.xlu1 %1375  ;;  %v3723_v63 = vpop.permute.xlu0 %1379 }
 0x328   : > { %4972 = vst [vmem:[#allocation265_spill] sm:$0xff] %v3721_v9  ;;  %v4982_v9 = vld [vmem:[#allocation48_spill] sm:$0xff] }
 0x329   : > { %4973 = vst [vmem:[#allocation266_spill] sm:$0xff] %v3723_v63  ;;  %v5024_v63 = vld [vmem:[#allocation121_spill] sm:$0xff] }
 0x32c   : > { %1571 = vrot.lane.b32.xlu2 %v4974_v3, %s2352_s17  ;;  %v4620_v3 = vrot.slane %v3556_v40, 5 }
 0x32d   : > { %1569 = vrot.lane.b32.xlu1 %v4976_v50, %s2352_s17  ;;  %1573 = vrot.lane.b32.xlu0 %v4977_v24, %s2352_s17  ;;  %v4985_v24 = vrot.slane %v3210_v10, 5 }
 0x32e   : > { %v3726_v13 = vpop.permute.xlu2 %1427 }
 0x32f   : > { %4975 = vst [vmem:[#allocation267_spill] sm:$0xff] %v3726_v13  ;;  %v3730_v1 = vpop.permute.xlu1 %1381  ;;  %v3732_v58 = vpop.permute.xlu0 %1411  ;;  %v3749_v50 = vsel %vm689_vm5, %v4985_v24, %v4620_v3  ;;  %v4993_v24 = vld [vmem:[#allocation62_spill] sm:$0xff]  ;;  %v4994_v3 = vld [vmem:[#allocation96_spill] sm:$0xff] }
 0x330   : > { %4978 = vst [vmem:[#allocation268_spill] sm:$0xff] %v3730_v1 }
 0x331   : > { %4979 = vst [vmem:[#allocation269_spill] sm:$0xff] %v3732_v58  ;;  %v4991_v58 = vld [vmem:[#allocation68_spill] sm:$0xff] }
 0x332   : > { %4986 = vst [vmem:[#allocation272_spill] sm:$0xff] %v3749_v50 }
 0x334   : > { %1577 = vrot.lane.b32.xlu2 %v4980_v36, %s2352_s17 }
 0x335   : > { %1575 = vrot.lane.b32.xlu1 %v4981_v51, %s2352_s17  ;;  %1579 = vrot.lane.b32.xlu0 %v4982_v9, %s2352_s17  ;;  %v4987_v51 = vld [vmem:[#allocation197_spill] sm:$0xff] }
 0x336   : > { %v3735_v56 = vpop.permute.xlu2 %1433  ;;  %v4988_v9 = vld [vmem:[#allocation25_spill] sm:$0xff] }
 0x337   : > { %v3740_v35 = vpop.permute.xlu1 %1413  ;;  %v3742_v18 = vpop.permute.xlu0 %1417 }
 0x338   : > { %4983 = vst [vmem:[#allocation270_spill] sm:$0xff] %v3740_v35 }
 0x339   : > { %4984 = vst [vmem:[#allocation271_spill] sm:$0xff] %v3742_v18 }
 0x33c   : > { %1583 = vrot.lane.b32.xlu2 %v3749_v50, %s2352_s17 }
 0x33d   : > { %1581 = vrot.lane.b32.xlu1 %v4987_v51, %s2352_s17  ;;  %1611 = vrot.lane.b32.xlu0 %v4988_v9, %s2353_s18  ;;  %v4997_v9 = vld [vmem:[#allocation103_spill] sm:$0xff] }
 0x33e   : > { %v3752_v36 = vpop.permute.xlu2 %1465 }
 0x33f   : > { %v3757_v35 = vpop.permute.xlu1 %1419  ;;  %v3759_v18 = vpop.permute.xlu0 %1423 }
 0x340   : > { %4989 = vst [vmem:[#allocation25_spill] sm:$0xff] %v3757_v35 }
 0x341   : > { %4990 = vst [vmem:[#allocation273_spill] sm:$0xff] %v3759_v18  ;;  %v4998_v18 = vld [vmem:[#allocation82_spill] sm:$0xff] }
 0x342   : > { %v458_v35 = vadd.f32 %v4998_v18, %v2436_v32  ;;  %v467_v32 = vadd.f32 %v5007_v53, %v2591_v39  ;;  %v5008_v18 = vld [vmem:[#allocation99_spill] sm:$0xff]  ;;  %v5021_v39 = vld [vmem:[#allocation2_spill] sm:$0xff] }
 0x344   : > { %1615 = vrot.lane.b32.xlu2 %v4991_v58, %s2353_s18  ;;  %v5000_v58 = vld [vmem:[#allocation98_spill] sm:$0xff] }
 0x345   : > { %1613 = vrot.lane.b32.xlu1 %v4993_v24, %s2353_s18  ;;  %1617 = vrot.lane.b32.xlu0 %v4994_v3, %s2353_s18  ;;  %v5001_v24 = vld [vmem:[#allocation13_spill] sm:$0xff]  ;;  %v5003_v3 = vld [vmem:[#allocation83_spill] sm:$0xff] }
 0x346   : > { %v3763_v1 = vpop.permute.xlu2 %1471  ;;  %v457_v11 = vadd.f32 %v5003_v3, %v5002_v7 }
 0x347   : > { %4992 = vst [vmem:[#allocation274_spill] sm:$0xff] %v3763_v1  ;;  %v3769_v50 = vpop.permute.xlu1 %1425  ;;  %v3771_v51 = vpop.permute.xlu0 %1429  ;;  %v5023_v1 = vld [vmem:[#allocation31_spill] sm:$0xff] }
 0x348   : > { %4995 = vst [vmem:[#allocation275_spill] sm:$0xff] %v3769_v50 }
 0x349   : > { %4996 = vst [vmem:[#allocation276_spill] sm:$0xff] %v3771_v51  ;;  %v5009_v51 = vld [vmem:[#allocation46_spill] sm:$0xff] }
 0x34a   : > { %v531_v57 = vadd.f32 %v5009_v51, %v457_v11  ;;  %v5016_v11 = vld [vmem:[#allocation52_spill] sm:$0xff] }
 0x34c   : > { %1621 = vrot.lane.b32.xlu2 %v4997_v9, %s2353_s18  ;;  %v532_v9 = vadd.f32 %v5006_v44, %v458_v35  ;;  %v5014_v35 = vld [vmem:[#allocation54_spill] sm:$0xff]  ;;  %v5015_v44 = vld [vmem:[#allocation111_spill] sm:$0xff]  ;;  %v605_v51 = vadd.f32 %v5016_v11, %v531_v57  ;;  %v5025_v57 = vrot.slane %v3210_v10, 6 }
 0x34d   : > { %1619 = vrot.lane.b32.xlu1 %v5000_v58, %s2353_s18  ;;  %1623 = vrot.lane.b32.xlu0 %v5001_v24, %s2353_s18  ;;  %v5010_v58 = vld [vmem:[#allocation33_spill] sm:$0xff]  ;;  %v5027_v11 = vld [vmem:[#allocation47_spill] sm:$0xff] }
 0x34e   : > { %v3777_v13 = vpop.permute.xlu2 %1477  ;;  %v5011_v24 = vld [vmem:[#allocation69_spill] sm:$0xff] }
 0x34f   : > { %4999 = vst [vmem:[#allocation82_spill] sm:$0xff] %v3777_v13  ;;  %v3785_v50 = vpop.permute.xlu1 %1431  ;;  %v3787_v47 = vpop.permute.xlu0 %1461  ;;  %v541_v13 = vadd.f32 %v5008_v18, %v467_v32  ;;  %v606_v61 = vadd.f32 %v5011_v24, %v532_v9  ;;  %v4624_v32 = vrot.slane %v3556_v40, 6  ;;  %v5019_v24 = vld [vmem:[#allocation75_spill] sm:$0xff] }
 0x350   : > { %5004 = vst [vmem:[#allocation3_spill] sm:$0xff] %v3785_v50  ;;  %v5022_v50 = vld [vmem:[#allocation41_spill] sm:$0xff] }
 0x351   : > { %5005 = vst [vmem:[#allocation83_spill] sm:$0xff] %v3787_v47  ;;  %v615_v7 = vadd.f32 %v5012_v29, %v541_v13  ;;  %v5013_v47 = vld [vmem:[#allocation34_spill] sm:$0xff]  ;;  %v679_v13 = vadd.f32 %v5019_v24, %v606_v61  ;;  %v5020_v29 = vld [vmem:[#allocation116_spill] sm:$0xff] }
 0x352   : > { %v5028_v61 = vld [vmem:[#allocation58_spill] sm:$0xff] }
 0x353   : > { %v688_v53 = vadd.f32 %v5015_v44, %v615_v7  ;;  %v3823_v44 = vsel %vm763_vm6, %v5025_v57, %v4624_v32  ;;  %v678_v24 = vadd.f32 %v5028_v61, %v605_v51  ;;  %v5033_v57 = vld [vmem:[#allocation209_spill] sm:$0xff] }
 0x354   : > { %1627 = vrot.lane.b32.xlu2 %v5010_v58, %s2353_s18  ;;  %5026 = vst [vmem:[#allocation99_spill] sm:$0xff] %v3823_v44  ;;  %v5036_v61 = vld [vmem:[#allocation169_spill] sm:$0xff] }
 0x355   : > { %1625 = vrot.lane.b32.xlu1 %v5013_v47, %s2353_s18  ;;  %1629 = vrot.lane.b32.xlu0 %v5014_v35, %s2353_s18  ;;  %v762_v9 = vadd.f32 %v5020_v29, %v688_v53  ;;  %v456_v47 = vadd.f32 %v5022_v50, %v5021_v39  ;;  %v464_v35 = vadd.f32 %v5023_v1, %v2425_v22  ;;  %v5029_v39 = vld [vmem:[#allocation35_spill] sm:$0xff]  ;;  %v5030_v53 = vld [vmem:[#allocation81_spill] sm:$0xff]  ;;  %v5031_v29 = vld [vmem:[#allocation156_spill] sm:$0xff] }
 0x356   : > { %v3798_v3 = vpop.permute.xlu2 %1483  ;;  %v753_v1 = vadd.f32 %v5030_v53, %v679_v13  ;;  %v5038_v53 = vld [vmem:[#allocation64_spill] sm:$0xff]  ;;  %v5041_v32 = vld [vmem:[#allocation45_spill] sm:$0xff] }
 0x357   : > { %v3807_v18 = vpop.permute.xlu1 %1463  ;;  %v3809_v58 = vpop.permute.xlu0 %1467  ;;  %v836_v7 = vadd.f32 %v5024_v63, %v762_v9  ;;  %v538_v50 = vadd.f32 %v5029_v39, %v464_v35  ;;  %v5032_v9 = vld [vmem:[#allocation53_spill] sm:$0xff]  ;;  %v5037_v39 = vld [vmem:[#allocation59_spill] sm:$0xff] }
 0x358   : > { %5017 = vst [vmem:[#allocation63_spill] sm:$0xff] %v3807_v18 }
 0x359   : > { %5018 = vst [vmem:[#allocation93_spill] sm:$0xff] %v3809_v58  ;;  %v530_v58 = vadd.f32 %v5027_v11, %v456_v47  ;;  %v910_v63 = vadd.f32 %v5031_v29, %v836_v7  ;;  %v5034_v47 = vld [vmem:[#allocation40_spill] sm:$0xff]  ;;  %v5035_v11 = vld [vmem:[#allocation127_spill] sm:$0xff] }
 0x35a   : > { %v612_v51 = vadd.f32 %v5034_v47, %v538_v50  ;;  %v461_v35 = vadd.f32 %v5035_v11, %v2765_v48  ;;  %v5044_v50 = vld [vmem:[#allocation182_spill] sm:$0xff] }
 0x35b   : > { %v604_v18 = vadd.f32 %v5032_v9, %v530_v58  ;;  %v958_v13 = vadd.f32 %v5036_v61, %v910_v63  ;;  %v752_v58 = vadd.f32 %v5038_v53, %v678_v24  ;;  %v5046_v63 = vld [vmem:[#allocation88_spill] sm:$0xff]  ;;  %v5048_v53 = vld [vmem:[#allocation51_spill] sm:$0xff] }
 0x35c   : > { %1633 = vrot.lane.b32.xlu2 %v3823_v44, %s2353_s18  ;;  %v685_v44 = vadd.f32 %v5041_v32, %v612_v51  ;;  %v466_v61 = vadd.f32 %v5046_v63, %v2589_v37  ;;  %v5050_v51 = vld [vmem:[#allocation147_spill] sm:$0xff]  ;;  %v5055_v63 = vld [vmem:[#allocation70_spill] sm:$0xff] }
 0x35d   : > { %1631 = vrot.lane.b32.xlu1 %v5033_v57, %s2353_s18  ;;  %1661 = vrot.lane.b32.xlu0 %v4895_v38, %s2354_s19  ;;  %v677_v7 = vadd.f32 %v5037_v39, %v604_v18  ;;  %v5042_v57 = vld [vmem:[#allocation87_spill] sm:$0xff]  ;;  %v5043_v38 = vld [vmem:[#allocation130_spill] sm:$0xff]  ;;  %v1009_v47 = vadd.f32 %v5044_v50, %v958_v13  ;;  %v5047_v18 = vld [vmem:[#allocation89_spill] sm:$0xff]  ;;  %v4630_v39 = vrot.slane %v3556_v40, 7  ;;  %v826_v37 = vadd.f32 %v5055_v63, %v752_v58 }
 0x35e   : > { %v3833_v22 = vpop.permute.xlu2 %1515  ;;  %v827_v20 = vadd.f32 %v5042_v57, %v753_v1  ;;  %v535_v27 = vadd.f32 %v5043_v38, %v461_v35  ;;  %v465_v24 = vadd.f32 %v5047_v18, %v2433_v28  ;;  %v5051_v57 = vld [vmem:[#allocation194_spill] sm:$0xff]  ;;  %v5052_v38 = vld [vmem:[#allocation71_spill] sm:$0xff] }
 0x35f   : > { %v3845_v29 = vpop.permute.xlu1 %1469  ;;  %v3847_v9 = vpop.permute.xlu0 %1473  ;;  %v751_v11 = vadd.f32 %v5045_v46, %v677_v7  ;;  %v1059_v35 = vadd.f32 %v5051_v57, %v1009_v47  ;;  %v5053_v50 = vld [vmem:[#allocation94_spill] sm:$0xff]  ;;  %v5054_v7 = vld [vmem:[#allocation95_spill] sm:$0xff]  ;;  %v5060_v57 = vld [vmem:[#allocation100_spill] sm:$0xff] }
 0x360   : > { %5039 = vst [vmem:[#allocation46_spill] sm:$0xff] %v3845_v29  ;;  %v5049_v29 = vld [vmem:[#allocation133_spill] sm:$0xff]  ;;  %v901_v1 = vadd.f32 %v5050_v51, %v827_v20  ;;  %v540_v46 = vadd.f32 %v5053_v50, %v466_v61  ;;  %v539_v48 = vadd.f32 %v5054_v7, %v465_v24  ;;  %v5056_v18 = vld [vmem:[#allocation122_spill] sm:$0xff]  ;;  %v5062_v24 = vld [vmem:[#allocation124_spill] sm:$0xff] }
 0x361   : > { %5040 = vst [vmem:[#allocation69_spill] sm:$0xff] %v3847_v9  ;;  %v759_v9 = vadd.f32 %v5048_v53, %v685_v44  ;;  %v609_v32 = vadd.f32 %v5049_v29, %v535_v27  ;;  %v825_v13 = vadd.f32 %v5052_v38, %v751_v11  ;;  %v459_v44 = vadd.f32 %v5056_v18, %v2556_v14  ;;  %v5057_v53 = vld [vmem:[#allocation136_spill] sm:$0xff]  ;;  %v5059_v51 = vld [vmem:[#allocation206_spill] sm:$0xff]  ;;  %v5061_v38 = vld [vmem:[#allocation101_spill] sm:$0xff] }
 0x362   : > { %v5058_v29 = vld [vmem:[#allocation160_spill] sm:$0xff]  ;;  %v1109_v47 = vadd.f32 %v5059_v51, %v1059_v35  ;;  %v614_v11 = vadd.f32 %v5060_v57, %v540_v46  ;;  %v613_v61 = vadd.f32 %v5061_v38, %v539_v48  ;;  %v460_v50 = vadd.f32 %v5062_v24, %v2739_v34  ;;  %v5068_v51 = vld [vmem:[#allocation77_spill] sm:$0xff]  ;;  %v5069_v38 = vld [vmem:[#allocation106_spill] sm:$0xff] }
 0x363   : > { %v682_v27 = vadd.f32 %v5057_v53, %v609_v32  ;;  %v949_v20 = vadd.f32 %v5058_v29, %v901_v1  ;;  %v5063_v7 = vld [vmem:[#allocation104_spill] sm:$0xff]  ;;  %v5064_v32 = vld [vmem:[#allocation139_spill] sm:$0xff]  ;;  %v5065_v1 = vld [vmem:[#allocation173_spill] sm:$0xff]  ;;  %v5066_v48 = vrot.slane %v3210_v10, 7  ;;  %v3896_v57 = vadd.f32 %v5068_v51, %v825_v13 }
 0x364   : > { %1665 = vrot.lane.b32.xlu2 %v4896_v17, %s2354_s19  ;;  %v1159_v35 = vadd.f32 %v3477_v54, %v1109_v47  ;;  %v5067_v53 = vld [vmem:[#allocation57_spill] sm:$0xff]  ;;  %v687_v24 = vadd.f32 %v5069_v38, %v614_v11  ;;  %v5070_v17 = vld [vmem:[#allocation107_spill] sm:$0xff]  ;;  %v5078_v38 = vld [vmem:[#allocation76_spill] sm:$0xff] }
 0x365   : > { %1663 = vrot.lane.b32.xlu1 %v5063_v7, %s2354_s19  ;;  %1667 = vrot.lane.b32.xlu0 %v4901_v25, %s2354_s19  ;;  %v756_v63 = vadd.f32 %v5064_v32, %v682_v27  ;;  %v1000_v18 = vadd.f32 %v5065_v1, %v949_v20  ;;  %v3892_v46 = vsel %vm837_vm7, %v5066_v48, %v4630_v39  ;;  %v5072_v54 = vld [vmem:[#allocation123_spill] sm:$0xff]  ;;  %v5074_v7 = vld [vmem:[#allocation186_spill] sm:$0xff]  ;;  %v5076_v13 = vld [vmem:[#allocation113_spill] sm:$0xff] }
 0x366   : > { %v3878_v58 = vpop.permute.xlu2 %1521  ;;  %v833_v29 = vadd.f32 %v5067_v53, %v759_v9  ;;  %v686_v27 = vadd.f32 %v5070_v17, %v613_v61  ;;  %v533_v47 = vadd.f32 %v5072_v54, %v459_v44  ;;  %v5073_v1 = vld [vmem:[#allocation143_spill] sm:$0xff]  ;;  %v1209_v39 = vadd.f32 %v3521_v21, %v1159_v35  ;;  %v5075_v9 = vld [vmem:[#allocation112_spill] sm:$0xff]  ;;  %v5077_v10 = vld [vmem:[#allocation125_spill] sm:$0xff] }
 0x367   : > { %v3900_v32 = vpop.permute.xlu1 %1475  ;;  %v3902_v20 = vpop.permute.xlu0 %1479  ;;  %v830_v25 = vadd.f32 %v5073_v1, %v756_v63  ;;  %v1050_v48 = vadd.f32 %v5074_v7, %v1000_v18  ;;  %v761_v53 = vadd.f32 %v5075_v9, %v687_v24  ;;  %v534_v11 = vadd.f32 %v5077_v10, %v460_v50  ;;  %v5079_v61 = vld [vmem:[#allocation126_spill] sm:$0xff]  ;;  %v5082_v7 = vld [vmem:[#allocation117_spill] sm:$0xff]  ;;  %v5084_v24 = vld [vmem:[#allocation128_spill] sm:$0xff] }
 0x368   : > { %5071 = vst [vmem:[#allocation105_spill] sm:$0xff] %v3900_v32  ;;  %v760_v51 = vadd.f32 %v5076_v13, %v686_v27  ;;  %v3912_v17 = vadd.f32 %v5078_v38, %v826_v37  ;;  %v607_v32 = vadd.f32 %v5079_v61, %v533_v47  ;;  %v5080_v40 = vld [vmem:[#allocation150_spill] sm:$0xff]  ;;  %v1259_v63 = vadd.f32 %v3559_v12, %v1209_v39  ;;  %v5086_v37 = vld [vmem:[#allocation129_spill] sm:$0xff]  ;;  %v5087_v47 = vld [vmem:[#allocation163_spill] sm:$0xff] }
 0x369   : > { %v904_v28 = vadd.f32 %v5080_v40, %v830_v25  ;;  %v5081_v44 = vld [vmem:[#allocation198_spill] sm:$0xff]  ;;  %v835_v18 = vadd.f32 %v5082_v7, %v761_v53  ;;  %v608_v1 = vadd.f32 %v5084_v24, %v534_v11  ;;  %v5089_v39 = vld [vmem:[#allocation131_spill] sm:$0xff]  ;;  %v5090_v53 = vld [vmem:[#allocation140_spill] sm:$0xff] }
 0x36a   : > { %v1100_v54 = vadd.f32 %v5081_v44, %v1050_v48  ;;  %v5083_v21 = vld [vmem:[#allocation118_spill] sm:$0xff]  ;;  %v680_v50 = vadd.f32 %v5086_v37, %v607_v32  ;;  %v1309_v12 = vadd.f32 %v3603_v30, %v1259_v63  ;;  %v463_v13 = vadd.f32 %v5090_v53, %v2885_v0  ;;  %v5093_v61 = vld [vmem:[#allocation176_spill] sm:$0xff] }
 0x36b   : > { %v834_v35 = vadd.f32 %v5083_v21, %v760_v51  ;;  %v5085_v27 = vld [vmem:[#allocation138_spill] sm:$0xff]  ;;  %v952_v40 = vadd.f32 %v5087_v47, %v904_v28  ;;  %v681_v9 = vadd.f32 %v5089_v39, %v608_v1  ;;  %v5091_v51 = vld [vmem:[#allocation141_spill] sm:$0xff]  ;;  %v5094_v63 = vld [vmem:[#allocation132_spill] sm:$0xff] }
 0x36c   : > { %v462_v10 = vadd.f32 %v5085_v27, %v2878_v15  ;;  %1671 = vrot.lane.b32.xlu2 %v3120_v49, %s2354_s19  ;;  %v5088_v25 = vld [vmem:[#allocation210_spill] sm:$0xff]  ;;  %v5092_v28 = vld [vmem:[#allocation165_spill] sm:$0xff]  ;;  %v754_v7 = vadd.f32 %v5094_v63, %v680_v50  ;;  %v5096_v1 = vld [vmem:[#allocation144_spill] sm:$0xff] }
 0x36d   : > { %v1150_v48 = vadd.f32 %v5088_v25, %v1100_v54  ;;  %1669 = vrot.lane.b32.xlu1 %v4899_v31, %s2354_s19  ;;  %1673 = vrot.lane.b32.xlu0 %v4904_v62, %s2354_s19  ;;  %v908_v32 = vadd.f32 %v5092_v28, %v834_v35  ;;  %v1003_v44 = vadd.f32 %v5093_v61, %v952_v40  ;;  %v5095_v21 = vld [vmem:[#allocation134_spill] sm:$0xff]  ;;  %v5099_v53 = vld [vmem:[#allocation188_spill] sm:$0xff]  ;;  %v5103_v28 = vld [vmem:[#allocation153_spill] sm:$0xff] }
 0x36e   : > { %v536_v11 = vadd.f32 %v5091_v51, %v462_v10  ;;  %v3933_v38 = vpop.permute.xlu2 %1527  ;;  %v1357_v54 = vadd.f32 %v3647_v52, %v1309_v12  ;;  %v755_v24 = vadd.f32 %v5095_v21, %v681_v9  ;;  %v537_v27 = vadd.f32 %v5096_v1, %v463_v13  ;;  %v5097_v10 = vld [vmem:[#allocation145_spill] sm:$0xff]  ;;  %v5098_v39 = vld [vmem:[#allocation178_spill] sm:$0xff]  ;;  %v5101_v12 = vld [vmem:[#allocation148_spill] sm:$0xff] }
 0x36f   : > { %v1200_v30 = vadd.f32 %v3494_v8, %v1150_v48  ;;  %v3947_v47 = vpop.permute.xlu1 %1481  ;;  %v3949_v25 = vpop.permute.xlu0 %1511  ;;  %v956_v35 = vadd.f32 %v5098_v39, %v908_v32  ;;  %v1053_v40 = vadd.f32 %v5099_v53, %v1003_v44  ;;  %v5100_v48 = vld [vmem:[#allocation135_spill] sm:$0xff]  ;;  %v5102_v51 = vld [vmem:[#allocation149_spill] sm:$0xff]  ;;  %v5104_v61 = vld [vmem:[#allocation190_spill] sm:$0xff] }
 0x370   : > { %v610_v37 = vadd.f32 %v5097_v10, %v536_v11  ;;  %v1408_v52 = vadd.f32 %v3691_v59, %v1357_v54  ;;  %v828_v50 = vadd.f32 %v5100_v48, %v754_v7  ;;  %v611_v9 = vadd.f32 %v5101_v12, %v537_v27  ;;  %v5105_v21 = vld [vmem:[#allocation200_spill] sm:$0xff]  ;;  %v5106_v10 = vld [vmem:[#allocation137_spill] sm:$0xff]  ;;  %v5109_v39 = vld [vmem:[#allocation166_spill] sm:$0xff] }
 0x371   : > { %v1250_v8 = vadd.f32 %v3530_v45, %v1200_v30  ;;  %v907_v11 = vadd.f32 %v5103_v28, %v833_v29  ;;  %v1007_v63 = vadd.f32 %v5104_v61, %v956_v35  ;;  %v1103_v1 = vadd.f32 %v5105_v21, %v1053_v40  ;;  %v5107_v30 = vld [vmem:[#allocation151_spill] sm:$0xff]  ;;  %v5108_v54 = vld [vmem:[#allocation152_spill] sm:$0xff]  ;;  %v5111_v29 = vld [vmem:[#allocation202_spill] sm:$0xff] }
 0x372   : > { %v683_v13 = vadd.f32 %v5102_v51, %v610_v37  ;;  %v1458_v44 = vadd.f32 %v3735_v56, %v1408_v52  ;;  %v829_v45 = vadd.f32 %v5106_v10, %v755_v24  ;;  %v684_v59 = vadd.f32 %v5107_v30, %v611_v9  ;;  %v5110_v37 = vld [vmem:[#allocation120_spill] sm:$0xff]  ;;  %v5113_v56 = vld [vmem:[#allocation167_spill] sm:$0xff]  ;;  %v5123_v30 = vld [vmem:[#allocation181_spill] sm:$0xff] }
 0x373   : > { %v1300_v32 = vadd.f32 %v3576_v43, %v1250_v8  ;;  %v955_v27 = vadd.f32 %v5109_v39, %v907_v11  ;;  %v1057_v53 = vadd.f32 %v5111_v29, %v1007_v63  ;;  %v5112_v35 = vld [vmem:[#allocation212_spill] sm:$0xff]  ;;  %v909_v8 = vadd.f32 %v5113_v56, %v835_v18  ;;  %v5115_v12 = vld [vmem:[#allocation179_spill] sm:$0xff]  ;;  %v5118_v11 = vld [vmem:[#allocation213_spill] sm:$0xff] }
 0x374   : > { %v757_v7 = vadd.f32 %v5108_v54, %v683_v13  ;;  %1677 = vrot.lane.b32.xlu2 %v5110_v37, %s2354_s19  ;;  %v1153_v48 = vadd.f32 %v5112_v35, %v1103_v1  ;;  %v1508_v43 = vadd.f32 %v3798_v3, %v1458_v44  ;;  %v5114_v24 = vld [vmem:[#allocation168_spill] sm:$0xff]  ;;  %v5116_v13 = vld [vmem:[#allocation115_spill] sm:$0xff]  ;;  %v5120_v18 = vld [vmem:[#allocation154_spill] sm:$0xff] }
 0x375   : > { %v1348_v40 = vadd.f32 %v3620_v33, %v1300_v32  ;;  %v947_v52 = vadd.f32 %v5114_v24, %v3896_v57  ;;  %v1006_v9 = vadd.f32 %v5115_v12, %v955_v27  ;;  %1675 = vrot.lane.b32.xlu1 %v5116_v13, %s2354_s19  ;;  %v5117_v28 = vld [vmem:[#allocation119_spill] sm:$0xff]  ;;  %v1107_v61 = vadd.f32 %v5118_v11, %v1057_v53  ;;  %v5119_v63 = vld [vmem:[#allocation220_spill] sm:$0xff]  ;;  %v5125_v35 = vld [vmem:[#allocation222_spill] sm:$0xff] }
 0x376   : > { %v1534_v51 = vpop.permute.xlu2 %1533  ;;  %1679 = vrot.lane.b32.xlu0 %v5117_v28, %s2354_s19  ;;  %v1203_v33 = vadd.f32 %v5119_v63, %v1153_v48  ;;  %v758_v1 = vadd.f32 %v5120_v18, %v684_v59  ;;  %v5121_v57 = vld [vmem:[#allocation155_spill] sm:$0xff]  ;;  %v5122_v44 = vld [vmem:[#allocation180_spill] sm:$0xff] }
 0x377   : > { %v1399_v3 = vadd.f32 %v3664_v41, %v1348_v40  ;;  %v3984_v21 = vadd.f32 %v1534_v51, %v1508_v43  ;;  %v831_v32 = vadd.f32 %v5121_v57, %v757_v7  ;;  %v957_v10 = vadd.f32 %v5122_v44, %v909_v8  ;;  %v3990_v39 = vpop.permute.xlu1 %1513  ;;  %v3992_v27 = vpop.permute.xlu0 %1517  ;;  %v5124_v29 = vld [vmem:[#allocation191_spill] sm:$0xff]  ;;  %v5126_v43 = vld [vmem:[#allocation157_spill] sm:$0xff]  ;;  %v5127_v7 = vld [vmem:[#allocation158_spill] sm:$0xff] }
 0x378   : > { %v998_v54 = vadd.f32 %v5123_v30, %v947_v52  ;;  %v1056_v53 = vadd.f32 %v5124_v29, %v1006_v9  ;;  %v1157_v48 = vadd.f32 %v5125_v35, %v1107_v61  ;;  %v1253_v41 = vadd.f32 %v3539_v60, %v1203_v33  ;;  %v5128_v8 = vld [vmem:[#allocation192_spill] sm:$0xff]  ;;  %v5129_v52 = vld [vmem:[#allocation193_spill] sm:$0xff]  ;;  %v5130_v51 = vld [vmem:[#allocation203_spill] sm:$0xff] }
 0x379   : > { %v1449_v40 = vadd.f32 %v3708_v2, %v1399_v3  ;;  %v3999_v59 = vadd.f32 %v5126_v43, %v758_v1  ;;  %v902_v56 = vadd.f32 %v5127_v7, %v828_v50  ;;  %v1008_v24 = vadd.f32 %v5128_v8, %v957_v10  ;;  %v5131_v60 = vld [vmem:[#allocation161_spill] sm:$0xff]  ;;  %v5132_v2 = vld [vmem:[#allocation170_spill] sm:$0xff]  ;;  %v5133_v18 = vld [vmem:[#allocation204_spill] sm:$0xff] }
 0x37a   : > { %v1048_v12 = vadd.f32 %v5129_v52, %v998_v54  ;;  %v1106_v11 = vadd.f32 %v5130_v51, %v1056_v53  ;;  %v1207_v63 = vadd.f32 %v3545_v26, %v1157_v48  ;;  %v1303_v9 = vadd.f32 %v3585_v55, %v1253_v41  ;;  %v5134_v50 = vld [vmem:[#allocation205_spill] sm:$0xff]  ;;  %v5135_v44 = vld [vmem:[#allocation110_spill] sm:$0xff]  ;;  %v5136_v30 = vld [vmem:[#allocation171_spill] sm:$0xff] }
 0x37b   : > { %v1499_v61 = vadd.f32 %v3752_v36, %v1449_v40  ;;  %v903_v33 = vadd.f32 %v5131_v60, %v829_v45  ;;  %v948_v3 = vadd.f32 %v5132_v2, %v3912_v17  ;;  %v1058_v1 = vadd.f32 %v5133_v18, %v1008_v24  ;;  %v5137_v54 = vld [vmem:[#allocation214_spill] sm:$0xff]  ;;  %v5138_v17 = vld [vmem:[#allocation215_spill] sm:$0xff]  ;;  %v5139_v48 = vld [vmem:[#allocation217_spill] sm:$0xff] }
 0x37c   : > { %v1098_v57 = vadd.f32 %v5134_v50, %v1048_v12  ;;  %1683 = vrot.lane.b32.xlu2 %v3892_v46, %s2354_s19  ;;  %v1156_v10 = vadd.f32 %v5135_v44, %v1106_v11  ;;  %v1257_v26 = vadd.f32 %v3591_v6, %v1207_v63  ;;  %v1351_v55 = vadd.f32 %v3629_v4, %v1303_v9  ;;  %v5140_v41 = vld [vmem:[#allocation223_spill] sm:$0xff]  ;;  %v5141_v43 = vld [vmem:[#allocation162_spill] sm:$0xff]  ;;  %v5143_v24 = vld [vmem:[#allocation184_spill] sm:$0xff] }
 0x37d   : > { %v1549_v36 = vadd.f32 %v3833_v22, %v1499_v61  ;;  %v950_v45 = vadd.f32 %v5136_v30, %v902_v56  ;;  %v1108_v29 = vadd.f32 %v5137_v54, %v1058_v1  ;;  %1681 = vrot.lane.b32.xlu1 %v5139_v48, %s2354_s19  ;;  %v905_v7 = vadd.f32 %v5141_v43, %v831_v32  ;;  %v5142_v56 = vld [vmem:[#allocation183_spill] sm:$0xff]  ;;  %v5144_v12 = vld [vmem:[#allocation224_spill] sm:$0xff]  ;;  %v5146_v60 = vld [vmem:[#allocation174_spill] sm:$0xff] }
 0x37e   : > { %v1148_v53 = vadd.f32 %v5138_v17, %v1098_v57  ;;  %v1566_v35 = vpop.permute.xlu2 %1565  ;;  %1709 = vrot.lane.b32.xlu0 %v2556_v14, %s2355_s20  ;;  %v1206_v6 = vadd.f32 %v5140_v41, %v1156_v10  ;;  %v1307_v4 = vadd.f32 %v3635_v5, %v1257_v26  ;;  %v1402_v22 = vadd.f32 %v3673_v42, %v1351_v55  ;;  %v5145_v14 = vld [vmem:[#allocation225_spill] sm:$0xff]  ;;  %v5147_v2 = vld [vmem:[#allocation195_spill] sm:$0xff]  ;;  %v5148_v18 = vld [vmem:[#allocation196_spill] sm:$0xff] }
 0x37f   : > { %v4029_v40 = vadd.f32 %v1566_v35, %v1549_v36  ;;  %v999_v8 = vadd.f32 %v5142_v56, %v948_v3  ;;  %v1001_v52 = vadd.f32 %v5143_v24, %v950_v45  ;;  %v1158_v51 = vadd.f32 %v5144_v12, %v1108_v29  ;;  %v4035_v11 = vpop.permute.xlu1 %1519  ;;  %v4037_v63 = vpop.permute.xlu0 %1523  ;;  %v5149_v50 = vld [vmem:[#allocation231_spill] sm:$0xff]  ;;  %v5150_v44 = vld [vmem:[#allocation232_spill] sm:$0xff]  ;;  %v5152_v36 = vld [vmem:[#allocation266_spill] sm:$0xff] }
 0x380   : > { %v1198_v9 = vadd.f32 %v5145_v14, %v1148_v53  ;;  %v1256_v5 = vadd.f32 %v3548_v23, %v1206_v6  ;;  %v1355_v42 = vadd.f32 %v3679_v16, %v1307_v4  ;;  %v1452_v61 = vadd.f32 %v3717_v19, %v1402_v22  ;;  %v5151_v26 = vld [vmem:[#allocation240_spill] sm:$0xff]  ;;  %v5153_v45 = vld [vmem:[#allocation274_spill] sm:$0xff]  ;;  %v5154_v54 = vld [vmem:[#allocation175_spill] sm:$0xff] }
 0x381   : > { %v951_v32 = vadd.f32 %v5146_v60, %v903_v33  ;;  %v1049_v3 = vadd.f32 %v5147_v2, %v999_v8  ;;  %v1051_v1 = vadd.f32 %v5148_v18, %v1001_v52  ;;  %v1208_v57 = vadd.f32 %v5149_v50, %v1158_v51  ;;  %v5155_v29 = vld [vmem:[#allocation207_spill] sm:$0xff]  ;;  %v5156_v17 = vld [vmem:[#allocation208_spill] sm:$0xff]  ;;  %v5157_v53 = vld [vmem:[#allocation241_spill] sm:$0xff] }
 0x382   : > { %v1248_v10 = vadd.f32 %v5150_v44, %v1198_v9  ;;  %v1306_v55 = vadd.f32 %v5151_v26, %v1256_v5  ;;  %v1406_v30 = vadd.f32 %v5152_v36, %v1355_v42  ;;  %v1502_v23 = vadd.f32 %v5153_v45, %v1452_v61  ;;  %v5158_v41 = vld [vmem:[#allocation37_spill] sm:$0xff]  ;;  %v5159_v6 = vld [vmem:[#allocation242_spill] sm:$0xff]  ;;  %v5161_v56 = vld [vmem:[#allocation276_spill] sm:$0xff] }
 0x383   : > { %v953_v16 = vadd.f32 %v5154_v54, %v905_v7  ;;  %v1099_v19 = vadd.f32 %v5155_v29, %v1049_v3  ;;  %v1101_v33 = vadd.f32 %v5156_v17, %v1051_v1  ;;  %v1258_v35 = vadd.f32 %v5157_v53, %v1208_v57  ;;  %v5160_v22 = vld [vmem:[#allocation249_spill] sm:$0xff]  ;;  %v5162_v52 = vld [vmem:[#allocation114_spill] sm:$0xff]  ;;  %v5163_v7 = vld [vmem:[#allocation216_spill] sm:$0xff] }
 0x384   : > { %1713 = vrot.lane.b32.xlu2 %v5158_v41, %s2355_s20  ;;  %v1298_v4 = vadd.f32 %v5159_v6, %v1248_v10  ;;  %v1354_v43 = vadd.f32 %v5160_v22, %v1306_v55  ;;  %v1456_v8 = vadd.f32 %v5161_v56, %v1406_v30  ;;  %v1552_v24 = vadd.f32 %v3878_v58, %v1502_v23  ;;  %v5164_v14 = vld [vmem:[#allocation250_spill] sm:$0xff]  ;;  %v5165_v42 = vld [vmem:[#allocation251_spill] sm:$0xff]  ;;  %v5172_v45 = vld [vmem:[#allocation260_spill] sm:$0xff] }
 0x385   : > { %v1149_v12 = vadd.f32 %v5162_v52, %v1099_v19  ;;  %v1151_v51 = vadd.f32 %v5163_v7, %v1101_v33  ;;  %v1308_v9 = vadd.f32 %v5164_v14, %v1258_v35  ;;  %1711 = vrot.lane.b32.xlu1 %v2739_v34, %s2355_s20  ;;  %v5166_v60 = vld [vmem:[#allocation258_spill] sm:$0xff]  ;;  %v5168_v50 = vld [vmem:[#allocation187_spill] sm:$0xff]  ;;  %v5174_v19 = vld [vmem:[#allocation164_spill] sm:$0xff] }
 0x386   : > { %v1572_v5 = vpop.permute.xlu2 %1571  ;;  %1715 = vrot.lane.b32.xlu0 %v2878_v15, %s2355_s20  ;;  %v1346_v61 = vadd.f32 %v5165_v42, %v1298_v4  ;;  %v1405_v2 = vadd.f32 %v5166_v60, %v1354_v43  ;;  %v1506_v3 = vadd.f32 %v3902_v20, %v1456_v8  ;;  %v5167_v18 = vld [vmem:[#allocation10_spill] sm:$0xff]  ;;  %v1004_v57 = vadd.f32 %v5168_v50, %v953_v16  ;;  %v5170_v26 = vld [vmem:[#allocation227_spill] sm:$0xff]  ;;  %v5175_v17 = vld [vmem:[#allocation12_spill] sm:$0xff] }
 0x387   : > { %v4071_v58 = vadd.f32 %v1572_v5, %v1552_v24  ;;  %v1002_v1 = vadd.f32 %v5167_v18, %v951_v32  ;;  %v5169_v44 = vld [vmem:[#allocation226_spill] sm:$0xff]  ;;  %v1201_v55 = vadd.f32 %v5170_v26, %v1151_v51  ;;  %v4077_v34 = vpop.permute.xlu1 %1525  ;;  %v1530_v36 = vpop.permute.xlu0 %1529  ;;  %v5171_v15 = vld [vmem:[#allocation259_spill] sm:$0xff]  ;;  %v906_v32 = vadd.f32 %v5174_v19, %v3999_v59  ;;  %v5179_v22 = vld [vmem:[#allocation268_spill] sm:$0xff] }
 0x388   : > { %v1199_v10 = vadd.f32 %v5169_v44, %v1149_v12  ;;  %v1356_v30 = vadd.f32 %v5171_v15, %v1308_v9  ;;  %v1397_v23 = vadd.f32 %v5172_v45, %v1346_v61  ;;  %v5173_v54 = vld [vmem:[#allocation267_spill] sm:$0xff]  ;;  %v4082_v20 = vadd.f32 %v1530_v36, %v1506_v3  ;;  %v5177_v35 = vld [vmem:[#allocation234_spill] sm:$0xff]  ;;  %v5180_v56 = vld [vmem:[#allocation269_spill] sm:$0xff] }
 0x389   : > { %v1455_v29 = vadd.f32 %v5173_v54, %v1405_v2  ;;  %v1052_v16 = vadd.f32 %v5175_v17, %v1002_v1  ;;  %v5176_v33 = vld [vmem:[#allocation199_spill] sm:$0xff]  ;;  %v5181_v24 = vld [vmem:[#allocation82_spill] sm:$0xff]  ;;  %v5182_v12 = vld [vmem:[#allocation177_spill] sm:$0xff] }
 0x38a   : > { %v1054_v53 = vadd.f32 %v5176_v33, %v1004_v57  ;;  %v1249_v41 = vadd.f32 %v5177_v35, %v1199_v10  ;;  %v5178_v6 = vld [vmem:[#allocation235_spill] sm:$0xff]  ;;  %v1407_v43 = vadd.f32 %v5179_v22, %v1356_v30  ;;  %v1447_v8 = vadd.f32 %v5180_v56, %v1397_v23  ;;  %v5183_v51 = vld [vmem:[#allocation14_spill] sm:$0xff]  ;;  %v5186_v61 = vld [vmem:[#allocation4_spill] sm:$0xff] }
 0x38b   : > { %v1251_v4 = vadd.f32 %v5178_v6, %v1201_v55  ;;  %v1505_v52 = vadd.f32 %v5181_v24, %v1455_v29  ;;  %v954_v7 = vadd.f32 %v5182_v12, %v906_v32  ;;  %v1102_v14 = vadd.f32 %v5183_v51, %v1052_v16  ;;  %v5184_v9 = vld [vmem:[#allocation211_spill] sm:$0xff]  ;;  %v5187_v60 = vld [vmem:[#allocation244_spill] sm:$0xff]  ;;  %v5190_v44 = vld [vmem:[#allocation218_spill] sm:$0xff] }
 0x38c   : > { %v1104_v59 = vadd.f32 %v5184_v9, %v1054_v53  ;;  %v5185_v5 = vld [vmem:[#allocation243_spill] sm:$0xff]  ;;  %1719 = vrot.lane.b32.xlu2 %v5186_v61, %s2355_s20  ;;  %v5192_v36 = vld [vmem:[#allocation252_spill] sm:$0xff]  ;;  %v5193_v45 = vld [vmem:[#allocation5_spill] sm:$0xff] }
 0x38d   : > { %v1299_v42 = vadd.f32 %v5185_v5, %v1249_v41  ;;  %v1301_v2 = vadd.f32 %v5187_v60, %v1251_v4  ;;  %v5188_v3 = vld [vmem:[#allocation3_spill] sm:$0xff]  ;;  %v1555_v57 = vadd.f32 %v3933_v38, %v1505_v52  ;;  %v1152_v10 = vadd.f32 %v5190_v44, %v1102_v14  ;;  %1717 = vrot.lane.b32.xlu1 %v2885_v0, %s2355_s20  ;;  %v5194_v23 = vld [vmem:[#allocation253_spill] sm:$0xff]  ;;  %v5196_v16 = vld [vmem:[#allocation228_spill] sm:$0xff] }
 0x38e   : > { %v1457_v18 = vadd.f32 %v5188_v3, %v1407_v43  ;;  %v5189_v1 = vld [vmem:[#allocation83_spill] sm:$0xff]  ;;  %v1578_v30 = vpop.permute.xlu2 %1577  ;;  %1721 = vrot.lane.b32.xlu0 %v5193_v45, %s2355_s20  ;;  %v5195_v32 = vld [vmem:[#allocation189_spill] sm:$0xff]  ;;  %v5199_v22 = vld [vmem:[#allocation262_spill] sm:$0xff] }
 0x38f   : > { %v1497_v50 = vadd.f32 %v5189_v1, %v1447_v8  ;;  %v5191_v26 = vld [vmem:[#allocation219_spill] sm:$0xff]  ;;  %v1347_v15 = vadd.f32 %v5192_v36, %v1299_v42  ;;  %v1349_v54 = vadd.f32 %v5194_v23, %v1301_v2  ;;  %v4113_v38 = vadd.f32 %v1578_v30, %v1555_v57  ;;  %v5197_v53 = vld [vmem:[#allocation229_spill] sm:$0xff]  ;;  %v1532_v41 = vpop.permute.xlu1 %1531  ;;  %v1562_v6 = vpop.permute.xlu0 %1561  ;;  %v5202_v12 = vld [vmem:[#allocation238_spill] sm:$0xff] }
 0x390   : > { %v1154_v55 = vadd.f32 %v5191_v26, %v1104_v59  ;;  %v1507_v29 = vadd.f32 %v3947_v47, %v1457_v18  ;;  %v1005_v17 = vadd.f32 %v5195_v32, %v954_v7  ;;  %v1202_v33 = vadd.f32 %v5196_v16, %v1152_v10  ;;  %v5198_v0 = vld [vmem:[#allocation261_spill] sm:$0xff]  ;;  %v5203_v51 = vld [vmem:[#allocation270_spill] sm:$0xff]  ;;  %v5204_v9 = vld [vmem:[#allocation271_spill] sm:$0xff] }
 0x391   : > { %v1547_v19 = vadd.f32 %v3949_v25, %v1497_v50  ;;  %v1398_v4 = vadd.f32 %v5198_v0, %v1347_v15  ;;  %v1400_v43 = vadd.f32 %v5199_v22, %v1349_v54  ;;  %v5200_v47 = vld [vmem:[#allocation201_spill] sm:$0xff]  ;;  %v5205_v5 = vld [vmem:[#allocation102_spill] sm:$0xff]  ;;  %v5207_v2 = vld [vmem:[#allocation16_spill] sm:$0xff] }
 0x392   : > { %v1204_v35 = vadd.f32 %v5197_v53, %v1154_v55  ;;  %v4120_v56 = vadd.f32 %v1532_v41, %v1507_v29  ;;  %v1055_v25 = vadd.f32 %v5200_v47, %v1005_v17  ;;  %v5201_v24 = vld [vmem:[#allocation237_spill] sm:$0xff]  ;;  %v5206_v61 = vld [vmem:[#allocation246_spill] sm:$0xff]  ;;  %v5208_v3 = vld [vmem:[#allocation247_spill] sm:$0xff] }
 0x393   : > { %v4122_v8 = vadd.f32 %v1562_v6, %v1547_v19  ;;  %v1252_v52 = vadd.f32 %v5201_v24, %v1202_v33  ;;  %v1448_v14 = vadd.f32 %v5203_v51, %v1398_v4  ;;  %v1450_v59 = vadd.f32 %v5204_v9, %v1400_v43  ;;  %v5209_v1 = vld [vmem:[#allocation63_spill] sm:$0xff]  ;;  %v5210_v57 = vld [vmem:[#allocation93_spill] sm:$0xff]  ;;  %v5214_v45 = vld [vmem:[#allocation24_spill] sm:$0xff] }
 0x394   : > { %v1254_v7 = vadd.f32 %v5202_v12, %v1204_v35  ;;  %v1105_v42 = vadd.f32 %v5205_v5, %v1055_v25  ;;  %1725 = vrot.lane.b32.xlu2 %v5207_v2, %s2355_s20  ;;  %v5211_v10 = vld [vmem:[#allocation221_spill] sm:$0xff]  ;;  %v5212_v55 = vld [vmem:[#allocation255_spill] sm:$0xff]  ;;  %v5215_v23 = vld [vmem:[#allocation256_spill] sm:$0xff] }
 0x395   : > { %v1302_v60 = vadd.f32 %v5206_v61, %v1252_v52  ;;  %v1498_v50 = vadd.f32 %v5209_v1, %v1448_v14  ;;  %v1500_v44 = vadd.f32 %v5210_v57, %v1450_v59  ;;  %v5213_v30 = vld [vmem:[#allocation15_spill] sm:$0xff]  ;;  %v5216_v17 = vld [vmem:[#allocation230_spill] sm:$0xff]  ;;  %v5217_v35 = vld [vmem:[#allocation21_spill] sm:$0xff] }
 0x396   : > { %v1304_v18 = vadd.f32 %v5208_v3, %v1254_v7  ;;  %v1155_v26 = vadd.f32 %v5211_v10, %v1105_v42  ;;  %v1584_v15 = vpop.permute.xlu2 %1583  ;;  %1723 = vrot.lane.b32.xlu1 %v5213_v30, %s2355_s20  ;;  %1727 = vrot.lane.b32.xlu0 %v5214_v45, %s2355_s20  ;;  %v5218_v6 = vld [vmem:[#allocation264_spill] sm:$0xff]  ;;  %v5219_v43 = vld [vmem:[#allocation239_spill] sm:$0xff]  ;;  %v5220_v25 = vld [vmem:[#allocation25_spill] sm:$0xff] }
 0x397   : > { %v1350_v36 = vadd.f32 %v5212_v55, %v1302_v60  ;;  %v1548_v29 = vadd.f32 %v3990_v39, %v1498_v50  ;;  %v1550_v19 = vadd.f32 %v3992_v27, %v1500_v44  ;;  %v1608_v32 = vadd.f32 %v1584_v15, %v3984_v21  ;;  %v1564_v33 = vpop.permute.xlu1 %1563  ;;  %v1568_v53 = vpop.permute.xlu0 %1567  ;;  %v5221_v52 = vld [vmem:[#allocation273_spill] sm:$0xff]  ;;  %v5223_v21 = vld [vmem:[#allocation248_spill] sm:$0xff]  ;;  %v5224_v7 = vld [vmem:[#allocation46_spill] sm:$0xff] }
 0x398   : > { %v1352_v54 = vadd.f32 %v5215_v23, %v1304_v18  ;;  %v1205_v16 = vadd.f32 %v5216_v17, %v1155_v26  ;;  %v5222_v27 = vld [vmem:[#allocation233_spill] sm:$0xff]  ;;  %v5226_v5 = vld [vmem:[#allocation142_spill] sm:$0xff]  ;;  %v5230_v55 = vld [vmem:[#allocation275_spill] sm:$0xff] }
 0x399   : > { %v1401_v41 = vadd.f32 %v5217_v35, %v1350_v36  ;;  %v1598_v4 = vadd.f32 %v1564_v33, %v1548_v29  ;;  %v1600_v22 = vadd.f32 %v1568_v53, %v1550_v19  ;;  %v5225_v14 = vld [vmem:[#allocation69_spill] sm:$0xff]  ;;  %v5227_v42 = vld [vmem:[#allocation38_spill] sm:$0xff] }
 0x39a   : > { %v1403_v0 = vadd.f32 %v5218_v6, %v1352_v54  ;;  %v1255_v47 = vadd.f32 %v5219_v43, %v1205_v16  ;;  %v5228_v61 = vld [vmem:[#allocation257_spill] sm:$0xff]  ;;  %v5231_v15 = vld [vmem:[#allocation66_spill] sm:$0xff]  ;;  %v310_v6 = vpop.f32.mrf.mxu2 }
 0x39b   : > { %v1451_v24 = vadd.f32 %v5220_v25, %v1401_v41  ;;  %v5229_v57 = vld [vmem:[#allocation265_spill] sm:$0xff]  ;;  %v5235_v33 = vld [vmem:[#allocation6_spill] sm:$0xff] }
 0x39c   : > { %v1453_v39 = vadd.f32 %v5221_v52, %v1403_v0  ;;  %1731 = vrot.lane.b32.xlu2 %v5222_v27, %s2355_s20  ;;  %v1305_v12 = vadd.f32 %v5223_v21, %v1255_v47  ;;  %v5232_v30 = vld [vmem:[#allocation105_spill] sm:$0xff]  ;;  %v5237_v41 = vld [vmem:[#allocation18_spill] sm:$0xff]  ;;  %v378_v0 = vpop.f32.mrf.mxu3 }
 0x39d   : > { %v1501_v51 = vadd.f32 %v5224_v7, %v1451_v24  ;;  %v5236_v35 = vld [vmem:[#allocation73_spill] sm:$0xff]  ;;  %v4186_v25 = vadd.f32 %v378_v0, %v310_v6  ;;  %v5238_v24 = vld [vmem:[#allocation28_spill] sm:$0xff]  ;;  %v5240_v21 = vld [vmem:[#allocation146_spill] sm:$0xff]  ;;  %v5253_v0 = vrot.slane %v5222_v27, 2 }
 0x39e   : > { %v1503_v9 = vadd.f32 %v5225_v14, %v1453_v39  ;;  %v1616_v59 = vpop.permute.xlu2 %1615  ;;  %1729 = vrot.lane.b32.xlu1 %v5226_v5, %s2355_s20  ;;  %1760 = vrot.lane.b32.xlu0 %v5227_v42, %s2356_s21  ;;  %v1353_v60 = vadd.f32 %v5228_v61, %v1305_v12  ;;  %v5239_v39 = vld [vmem:[#allocation17_spill] sm:$0xff]  ;;  %v5242_v5 = vld [vmem:[#allocation236_spill] sm:$0xff]  ;;  %v5243_v42 = vld [vmem:[#allocation39_spill] sm:$0xff] }
 0x39f   : > { %v1551_v2 = vadd.f32 %v4035_v11, %v1501_v51  ;;  %v1649_v18 = vadd.f32 %v1616_v59, %v4029_v40  ;;  %v1570_v1 = vpop.permute.xlu1 %1569  ;;  %v1574_v50 = vpop.permute.xlu0 %1573  ;;  %v5233_v11 = vld [vmem:[#allocation60_spill] sm:$0xff] }
 0x3a0   : > { %v1553_v3 = vadd.f32 %v4037_v63, %v1503_v9  ;;  %v1404_v44 = vadd.f32 %v5229_v57, %v1353_v60  ;;  %v5234_v63 = vld [vmem:[#allocation67_spill] sm:$0xff] }
 0x3a1   : > { %v1601_v10 = vadd.f32 %v1570_v1, %v1551_v2  ;;  %v5245_v1 = vld [vmem:[#allocation43_spill] sm:$0xff] }
 0x3a2   : > { %v1603_v26 = vadd.f32 %v1574_v50, %v1553_v3  ;;  %v1454_v36 = vadd.f32 %v5230_v55, %v1404_v44  ;;  %v5246_v50 = vld [vmem:[#allocation74_spill] sm:$0xff] }
 0x3a4   : > { %1764 = vrot.lane.b32.xlu2 %v5231_v15, %s2356_s21  ;;  %v1504_v45 = vadd.f32 %v5232_v30, %v1454_v36  ;;  %v5249_v30 = vld [vmem:[#allocation20_spill] sm:$0xff] }
 0x3a6   : > { %v1622_v23 = vpop.permute.xlu2 %1621  ;;  %1762 = vrot.lane.b32.xlu1 %v5233_v11, %s2356_s21  ;;  %1766 = vrot.lane.b32.xlu0 %v5234_v63, %s2356_s21  ;;  %v1554_v40 = vadd.f32 %v4077_v34, %v1504_v45 }
 0x3a7   : > { %v1652_v54 = vadd.f32 %v1622_v23, %v4071_v58  ;;  %v1576_v29 = vpop.permute.xlu1 %1575  ;;  %v1580_v19 = vpop.permute.xlu0 %1579 }
 0x3a8   : > { %v1604_v17 = vadd.f32 %v1576_v29, %v1554_v40  ;;  %v1606_v16 = vadd.f32 %v1580_v19, %v4082_v20  ;;  %v5251_v19 = vld [vmem:[#allocation19_spill] sm:$0xff] }
 0x3ac   : > { %1770 = vrot.lane.b32.xlu2 %v5235_v33, %s2356_s21  ;;  %v1808_v33 = vrot.slane %v4186_v25, 2 }
 0x3ae   : > { %v1628_v53 = vpop.permute.xlu2 %1627  ;;  %1768 = vrot.lane.b32.xlu1 %v5236_v35, %s2356_s21  ;;  %1772 = vrot.lane.b32.xlu0 %v5237_v41, %s2356_s21 }
 0x3af   : > { %v1655_v34 = vadd.f32 %v1628_v53, %v4113_v38  ;;  %v1582_v58 = vpop.permute.xlu1 %1581  ;;  %v1612_v43 = vpop.permute.xlu0 %1611  ;;  %v1758_v38 = vrot.slane %v4186_v25, 1 }
 0x3b0   : > { %v1607_v47 = vadd.f32 %v1582_v58, %v4120_v56  ;;  %v1647_v20 = vadd.f32 %v1612_v43, %v4122_v8  ;;  %v5241_v8 = vrot.slane %v5222_v27, 1  ;;  %v5254_v43 = vld [vmem:[#allocation245_spill] sm:$0xff] }
 0x3b2   : > { %v1759_v9 = vsel %vm394_vm2, %v5241_v8, %v1758_v38 }
 0x3b4   : > { %1776 = vrot.lane.b32.xlu2 %v5238_v24, %s2356_s21 }
 0x3b6   : > { %v1634_v52 = vpop.permute.xlu2 %1633  ;;  %1774 = vrot.lane.b32.xlu1 %v5239_v39, %s2356_s21  ;;  %1778 = vrot.lane.b32.xlu0 %v5240_v21, %s2356_s21 }
 0x3b7   : > { %v1658_v12 = vadd.f32 %v1634_v52, %v1608_v32  ;;  %v1614_v7 = vpop.permute.xlu1 %1613  ;;  %v1618_v51 = vpop.permute.xlu0 %1617 }
 0x3b8   : > { %v1648_v56 = vadd.f32 %v1614_v7, %v1598_v4  ;;  %v1650_v14 = vadd.f32 %v1618_v51, %v1600_v22  ;;  %v5244_v22 = vld [vmem:[#allocation72_spill] sm:$0xff]  ;;  %v5257_v7 = vld [vmem:[#allocation49_spill] sm:$0xff] }
 0x3b9   : > { %v5258_v51 = vld [vmem:[#allocation80_spill] sm:$0xff] }
 0x3bc   : > { %1782 = vrot.lane.b32.xlu2 %v1759_v9, %s2356_s21 }
 0x3be   : > { %v1666_v59 = vpop.permute.xlu2 %1665  ;;  %1780 = vrot.lane.b32.xlu1 %v5242_v5, %s2356_s21  ;;  %1810 = vrot.lane.b32.xlu0 %v5243_v42, %s2357_s22  ;;  %v5259_v5 = vld [vmem:[#allocation8_spill] sm:$0xff] }
 0x3bf   : > { %v1699_v32 = vadd.f32 %v1666_v59, %v1649_v18  ;;  %v1620_v61 = vpop.permute.xlu1 %1619  ;;  %v1624_v60 = vpop.permute.xlu0 %1623  ;;  %v5247_v18 = vld [vmem:[#allocation7_spill] sm:$0xff] }
 0x3c0   : > { %v1651_v2 = vadd.f32 %v1620_v61, %v1601_v10  ;;  %v1653_v4 = vadd.f32 %v1624_v60, %v1603_v26  ;;  %v5248_v26 = vld [vmem:[#allocation79_spill] sm:$0xff] }
 0x3c1   : > { %v5261_v61 = vld [vmem:[#allocation23_spill] sm:$0xff] }
 0x3c4   : > { %1814 = vrot.lane.b32.xlu2 %v5244_v22, %s2357_s22 }
 0x3c6   : > { %v1672_v3 = vpop.permute.xlu2 %1671  ;;  %1812 = vrot.lane.b32.xlu1 %v5245_v1, %s2357_s22  ;;  %1816 = vrot.lane.b32.xlu0 %v5246_v50, %s2357_s22  ;;  %v5262_v1 = vld [vmem:[#allocation36_spill] sm:$0xff] }
 0x3c7   : > { %v1702_v57 = vadd.f32 %v1672_v3, %v1652_v54  ;;  %v1626_v44 = vpop.permute.xlu1 %1625  ;;  %v1630_v55 = vpop.permute.xlu0 %1629  ;;  %v5250_v54 = vld [vmem:[#allocation32_spill] sm:$0xff] }
 0x3c8   : > { %v1654_v36 = vadd.f32 %v1626_v44, %v1604_v17  ;;  %v1656_v15 = vadd.f32 %v1630_v55, %v1606_v16  ;;  %v5252_v17 = vld [vmem:[#allocation159_spill] sm:$0xff]  ;;  %v5264_v44 = vld [vmem:[#allocation172_spill] sm:$0xff] }
 0x3cc   : > { %1820 = vrot.lane.b32.xlu2 %v5247_v18, %s2357_s22 }
 0x3ce   : > { %v1678_v10 = vpop.permute.xlu2 %1677  ;;  %1818 = vrot.lane.b32.xlu1 %v5248_v26, %s2357_s22  ;;  %1822 = vrot.lane.b32.xlu0 %v5249_v30, %s2357_s22  ;;  %v5265_v30 = vrot.slane %v5222_v27, 3 }
 0x3cf   : > { %v1705_v45 = vadd.f32 %v1678_v10, %v1655_v34  ;;  %v1632_v23 = vpop.permute.xlu1 %1631  ;;  %v1662_v11 = vpop.permute.xlu0 %1661  ;;  %v1809_v34 = vsel %vm468_vm3, %v5253_v0, %v1808_v33 }
 0x3d0   : > { %v1657_v63 = vadd.f32 %v1632_v23, %v1607_v47  ;;  %v1697_v40 = vadd.f32 %v1662_v11, %v1647_v20  ;;  %v5255_v47 = vld [vmem:[#allocation44_spill] sm:$0xff]  ;;  %v5266_v11 = vld [vmem:[#allocation254_spill] sm:$0xff] }
 0x3d4   : > { %1826 = vrot.lane.b32.xlu2 %v5250_v54, %s2357_s22 }
 0x3d6   : > { %v1684_v29 = vpop.permute.xlu2 %1683  ;;  %1824 = vrot.lane.b32.xlu1 %v5251_v19, %s2357_s22  ;;  %1828 = vrot.lane.b32.xlu0 %v5252_v17, %s2357_s22 }
 0x3d7   : > { %v1708_v16 = vadd.f32 %v1684_v29, %v1658_v12  ;;  %v1664_v53 = vpop.permute.xlu1 %1663  ;;  %v1668_v35 = vpop.permute.xlu0 %1667  ;;  %v5256_v12 = vld [vmem:[#allocation78_spill] sm:$0xff] }
 0x3d8   : > { %v1698_v41 = vadd.f32 %v1664_v53, %v1648_v56  ;;  %v1700_v6 = vadd.f32 %v1668_v35, %v1650_v14  ;;  %v5269_v53 = vld [vmem:[#allocation55_spill] sm:$0xff]  ;;  %v5270_v35 = vld [vmem:[#allocation86_spill] sm:$0xff] }
 0x3dc   : > { %1832 = vrot.lane.b32.xlu2 %v1809_v34, %s2357_s22 }
 0x3de   : > { %v1714_v58 = vpop.permute.xlu2 %1713  ;;  %1830 = vrot.lane.b32.xlu1 %v5254_v43, %s2357_s22  ;;  %1860 = vrot.lane.b32.xlu0 %v5255_v47, %s2358_s23  ;;  %v5271_v43 = vld [vmem:[#allocation9_spill] sm:$0xff] }
 0x3df   : > { %v1747_v20 = vadd.f32 %v1714_v58, %v1699_v32  ;;  %v1670_v24 = vpop.permute.xlu1 %1669  ;;  %v1674_v52 = vpop.permute.xlu0 %1673  ;;  %v5260_v32 = vld [vmem:[#allocation85_spill] sm:$0xff] }
 0x3e0   : > { %v1701_v39 = vadd.f32 %v1670_v24, %v1651_v2  ;;  %v1703_v21 = vadd.f32 %v1674_v52, %v1653_v4  ;;  %v5273_v24 = vld [vmem:[#allocation27_spill] sm:$0xff] }
 0x3e4   : > { %1864 = vrot.lane.b32.xlu2 %v5256_v12, %s2358_s23 }
 0x3e6   : > { %v1720_v38 = vpop.permute.xlu2 %1719  ;;  %1862 = vrot.lane.b32.xlu1 %v5257_v7, %s2358_s23  ;;  %1866 = vrot.lane.b32.xlu0 %v5258_v51, %s2358_s23  ;;  %v5274_v7 = vld [vmem:[#allocation42_spill] sm:$0xff] }
 0x3e7   : > { %v1750_v56 = vadd.f32 %v1720_v38, %v1702_v57  ;;  %v1676_v14 = vpop.permute.xlu1 %1675  ;;  %v5263_v57 = vld [vmem:[#allocation22_spill] sm:$0xff] }
 0x3e8   : > { %v1680_v8 = vpop.permute.xlu0 %1679  ;;  %v1704_v9 = vadd.f32 %v1676_v14, %v1654_v36  ;;  %v1858_v36 = vrot.slane %v4186_v25, 3  ;;  %v5276_v14 = vld [vmem:[#allocation185_spill] sm:$0xff] }
 0x3e9   : > { %v1706_v59 = vadd.f32 %v1680_v8, %v1656_v15 }
 0x3ec   : > { %1870 = vrot.lane.b32.xlu2 %v5259_v5, %s2358_s23 }
 0x3ee   : > { %v1726_v42 = vpop.permute.xlu2 %1725  ;;  %1868 = vrot.lane.b32.xlu1 %v5260_v32, %s2358_s23  ;;  %1872 = vrot.lane.b32.xlu0 %v5261_v61, %s2358_s23  ;;  %v5277_v61 = vrot.slane %v5222_v27, 4 }
 0x3ef   : > { %v1753_v60 = vadd.f32 %v1726_v42, %v1705_v45  ;;  %v1682_v2 = vpop.permute.xlu1 %1681  ;;  %v1859_v45 = vsel %vm542_vm4, %v5265_v30, %v1858_v36 }
 0x3f0   : > { %v1710_v4 = vpop.permute.xlu0 %1709  ;;  %v1707_v22 = vadd.f32 %v1682_v2, %v1657_v63  ;;  %v5267_v63 = vld [vmem:[#allocation50_spill] sm:$0xff] }
 0x3f1   : > { %v1745_v3 = vadd.f32 %v1710_v4, %v1697_v40  ;;  %v5278_v4 = vld [vmem:[#allocation263_spill] sm:$0xff] }
 0x3f4   : > { %1876 = vrot.lane.b32.xlu2 %v5262_v1, %s2358_s23 }
 0x3f6   : > { %v1732_v50 = vpop.permute.xlu2 %1731  ;;  %1874 = vrot.lane.b32.xlu1 %v5263_v57, %s2358_s23  ;;  %1878 = vrot.lane.b32.xlu0 %v5264_v44, %s2358_s23 }
 0x3f7   : > { %v1756_v55 = vadd.f32 %v1732_v50, %v1708_v16  ;;  %v1712_v15 = vpop.permute.xlu1 %1711  ;;  %v5268_v16 = vld [vmem:[#allocation84_spill] sm:$0xff] }
 0x3f8   : > { %v1716_v18 = vpop.permute.xlu0 %1715  ;;  %v1746_v10 = vadd.f32 %v1712_v15, %v1698_v41  ;;  %v5281_v15 = vld [vmem:[#allocation61_spill] sm:$0xff] }
 0x3f9   : > { %v1748_v26 = vadd.f32 %v1716_v18, %v1700_v6  ;;  %v5282_v18 = vld [vmem:[#allocation92_spill] sm:$0xff] }
 0x3fc   : > { %1882 = vrot.lane.b32.xlu2 %v1859_v45, %s2358_s23 }
 0x3fe   : > { %v1765_v23 = vpop.permute.xlu2 %1764  ;;  %1880 = vrot.lane.b32.xlu1 %v5266_v11, %s2358_s23  ;;  %1910 = vrot.lane.b32.xlu0 %v5267_v63, %s2359_s24  ;;  %v5283_v11 = vld [vmem:[#allocation11_spill] sm:$0xff] }
 0x3ff   : > { %v1798_v40 = vadd.f32 %v1765_v23, %v1747_v20  ;;  %v1718_v54 = vpop.permute.xlu1 %1717  ;;  %v5272_v20 = vld [vmem:[#allocation91_spill] sm:$0xff] }
 0x400   : > { %v1722_v29 = vpop.permute.xlu0 %1721  ;;  %v1749_v19 = vadd.f32 %v1718_v54, %v1701_v39  ;;  %v5285_v54 = vld [vmem:[#allocation30_spill] sm:$0xff] }
 0x401   : > { %v1751_v17 = vadd.f32 %v1722_v29, %v1703_v21 }
 0x404   : > { %1914 = vrot.lane.b32.xlu2 %v5268_v16, %s2359_s24 }
 0x406   : > { %v1771_v33 = vpop.permute.xlu2 %1770  ;;  %1912 = vrot.lane.b32.xlu1 %v5269_v53, %s2359_s24  ;;  %1916 = vrot.lane.b32.xlu0 %v5270_v35, %s2359_s24  ;;  %v5286_v53 = vld [vmem:[#allocation48_spill] sm:$0xff] }
 0x407   : > { %v1801_v41 = vadd.f32 %v1771_v33, %v1750_v56  ;;  %v5275_v56 = vld [vmem:[#allocation26_spill] sm:$0xff] }
 0x408   : > { %v1724_v6 = vpop.permute.xlu1 %1723  ;;  %v1728_v0 = vpop.permute.xlu0 %1727 }
 0x409   : > { %v1752_v34 = vadd.f32 %v1724_v6, %v1704_v9  ;;  %v1754_v58 = vadd.f32 %v1728_v0, %v1706_v59  ;;  %v1908_v9 = vrot.slane %v4186_v25, 4  ;;  %v5288_v6 = vld [vmem:[#allocation197_spill] sm:$0xff] }
 0x40c   : > { %1920 = vrot.lane.b32.xlu2 %v5271_v43, %s2359_s24 }
 0x40e   : > { %v1777_v47 = vpop.permute.xlu2 %1776  ;;  %1918 = vrot.lane.b32.xlu1 %v5272_v20, %s2359_s24  ;;  %1922 = vrot.lane.b32.xlu0 %v5273_v24, %s2359_s24  ;;  %v5289_v24 = vrot.slane %v5222_v27, 5 }
 0x40f   : > { %v1804_v52 = vadd.f32 %v1777_v47, %v1753_v60  ;;  %v1909_v60 = vsel %vm260_vm0, %v5277_v61, %v1908_v9 }
 0x410   : > { %v1730_v39 = vpop.permute.xlu1 %1729  ;;  %v1761_v21 = vpop.permute.xlu0 %1760 }
 0x411   : > { %v1755_v12 = vadd.f32 %v1730_v39, %v1707_v22  ;;  %v1796_v38 = vadd.f32 %v1761_v21, %v1745_v3  ;;  %v5279_v22 = vld [vmem:[#allocation56_spill] sm:$0xff] }
 0x412   : > { %v5290_v21 = vld [vmem:[#allocation272_spill] sm:$0xff] }
 0x414   : > { %1926 = vrot.lane.b32.xlu2 %v5274_v7, %s2359_s24 }
 0x416   : > { %v1783_v51 = vpop.permute.xlu2 %1782  ;;  %1924 = vrot.lane.b32.xlu1 %v5275_v56, %s2359_s24  ;;  %1928 = vrot.lane.b32.xlu0 %v5276_v14, %s2359_s24 }
 0x417   : > { %v1807_v8 = vadd.f32 %v1783_v51, %v1756_v55  ;;  %v5280_v55 = vld [vmem:[#allocation90_spill] sm:$0xff] }
 0x418   : > { %v1763_v59 = vpop.permute.xlu1 %1762  ;;  %v1767_v5 = vpop.permute.xlu0 %1766 }
 0x419   : > { %v1797_v42 = vadd.f32 %v1763_v59, %v1746_v10  ;;  %v1799_v32 = vadd.f32 %v1767_v5, %v1748_v26  ;;  %v5293_v59 = vld [vmem:[#allocation68_spill] sm:$0xff]  ;;  %v5294_v5 = vld [vmem:[#allocation98_spill] sm:$0xff] }
 0x41c   : > { %1932 = vrot.lane.b32.xlu2 %v1909_v60, %s2359_s24 }
 0x41e   : > { %v1815_v2 = vpop.permute.xlu2 %1814  ;;  %1930 = vrot.lane.b32.xlu1 %v5278_v4, %s2359_s24  ;;  %1960 = vrot.lane.b32.xlu0 %v5279_v22, %s2360_s25  ;;  %v5295_v4 = vld [vmem:[#allocation13_spill] sm:$0xff] }
 0x41f   : > { %v1848_v3 = vadd.f32 %v1815_v2, %v1798_v40  ;;  %v5284_v40 = vld [vmem:[#allocation97_spill] sm:$0xff] }
 0x420   : > { %v1769_v1 = vpop.permute.xlu1 %1768  ;;  %v1773_v50 = vpop.permute.xlu0 %1772 }
 0x421   : > { %v1800_v57 = vadd.f32 %v1769_v1, %v1749_v19  ;;  %v1802_v44 = vadd.f32 %v1773_v50, %v1751_v17  ;;  %v5297_v1 = vld [vmem:[#allocation34_spill] sm:$0xff] }
 0x424   : > { %1964 = vrot.lane.b32.xlu2 %v5280_v55, %s2360_s25 }
 0x426   : > { %v1821_v36 = vpop.permute.xlu2 %1820  ;;  %1962 = vrot.lane.b32.xlu1 %v5281_v15, %s2360_s25  ;;  %1966 = vrot.lane.b32.xlu0 %v5282_v18, %s2360_s25  ;;  %v5298_v15 = vld [vmem:[#allocation54_spill] sm:$0xff] }
 0x427   : > { %v1851_v10 = vadd.f32 %v1821_v36, %v1801_v41  ;;  %v5287_v41 = vld [vmem:[#allocation29_spill] sm:$0xff] }
 0x428   : > { %v1775_v26 = vpop.permute.xlu1 %1774  ;;  %v1779_v30 = vpop.permute.xlu0 %1778 }
 0x429   : > { %v1803_v45 = vadd.f32 %v1775_v26, %v1752_v34  ;;  %v1805_v23 = vadd.f32 %v1779_v30, %v1754_v58  ;;  %v1958_v34 = vrot.slane %v4186_v25, 5  ;;  %v5300_v26 = vld [vmem:[#allocation209_spill] sm:$0xff] }
 0x42c   : > { %1970 = vrot.lane.b32.xlu2 %v5283_v11, %s2360_s25 }
 0x42e   : > { %v1827_v63 = vpop.permute.xlu2 %1826  ;;  %1968 = vrot.lane.b32.xlu1 %v5284_v40, %s2360_s25  ;;  %1972 = vrot.lane.b32.xlu0 %v5285_v54, %s2360_s25  ;;  %v5301_v54 = vrot.slane %v5222_v27, 6 }
 0x42f   : > { %v1854_v29 = vadd.f32 %v1827_v63, %v1804_v52  ;;  %v1959_v52 = vsel %vm689_vm5, %v5289_v24, %v1958_v34 }
 0x430   : > { %v1781_v19 = vpop.permute.xlu1 %1780  ;;  %v1811_v17 = vpop.permute.xlu0 %1810 }
 0x431   : > { %v1806_v16 = vadd.f32 %v1781_v19, %v1755_v12  ;;  %v1846_v33 = vadd.f32 %v1811_v17, %v1796_v38  ;;  %v5291_v12 = vld [vmem:[#allocation62_spill] sm:$0xff]  ;;  %v5302_v17 = vld [vmem:[#allocation99_spill] sm:$0xff] }
 0x434   : > { %1976 = vrot.lane.b32.xlu2 %v5286_v53, %s2360_s25 }
 0x436   : > { %v1833_v35 = vpop.permute.xlu2 %1832  ;;  %1974 = vrot.lane.b32.xlu1 %v5287_v41, %s2360_s25  ;;  %1978 = vrot.lane.b32.xlu0 %v5288_v6, %s2360_s25 }
 0x437   : > { %v1857_v0 = vadd.f32 %v1833_v35, %v1807_v8  ;;  %v5292_v8 = vld [vmem:[#allocation96_spill] sm:$0xff] }
 0x438   : > { %v1813_v58 = vpop.permute.xlu1 %1812  ;;  %v1817_v43 = vpop.permute.xlu0 %1816 }
 0x439   : > { %v1847_v47 = vadd.f32 %v1813_v58, %v1797_v42  ;;  %v1849_v20 = vadd.f32 %v1817_v43, %v1799_v32  ;;  %v5305_v58 = vld [vmem:[#allocation109_spill] sm:$0xff] }
 0x43c   : > { %1982 = vrot.lane.b32.xlu2 %v1959_v52, %s2360_s25 }
 0x43e   : > { %v1865_v39 = vpop.permute.xlu2 %1864  ;;  %1980 = vrot.lane.b32.xlu1 %v5290_v21, %s2360_s25  ;;  %2010 = vrot.lane.b32.xlu0 %v5291_v12, %s2361_s26 }
 0x43f   : > { %v1898_v38 = vadd.f32 %v1865_v39, %v1848_v3  ;;  %v5296_v3 = vld [vmem:[#allocation103_spill] sm:$0xff] }
 0x440   : > { %v1819_v7 = vpop.permute.xlu1 %1818  ;;  %v1823_v51 = vpop.permute.xlu0 %1822 }
 0x441   : > { %v1850_v56 = vadd.f32 %v1819_v7, %v1800_v57  ;;  %v1852_v14 = vadd.f32 %v1823_v51, %v1802_v44 }
 0x444   : > { %2014 = vrot.lane.b32.xlu2 %v5292_v8, %s2361_s26 }
 0x446   : > { %v1871_v9 = vpop.permute.xlu2 %1870  ;;  %2012 = vrot.lane.b32.xlu1 %v5293_v59, %s2361_s26  ;;  %2016 = vrot.lane.b32.xlu0 %v5294_v5, %s2361_s26 }
 0x447   : > { %v1901_v42 = vadd.f32 %v1871_v9, %v1851_v10  ;;  %v5299_v10 = vld [vmem:[#allocation33_spill] sm:$0xff]  ;;  %v5306_v9 = vrot.slane %v5222_v27, 7 }
 0x448   : > { %v1825_v32 = vpop.permute.xlu1 %1824  ;;  %v1829_v61 = vpop.permute.xlu0 %1828 }
 0x449   : > { %v1853_v60 = vadd.f32 %v1825_v32, %v1803_v45  ;;  %v1855_v2 = vadd.f32 %v1829_v61, %v1805_v23  ;;  %v2008_v45 = vrot.slane %v4186_v25, 6 }
 0x44c   : > { %2020 = vrot.lane.b32.xlu2 %v5295_v4, %s2361_s26 }
 0x44e   : > { %v1877_v22 = vpop.permute.xlu2 %1876  ;;  %2018 = vrot.lane.b32.xlu1 %v5296_v3, %s2361_s26  ;;  %2022 = vrot.lane.b32.xlu0 %v5297_v1, %s2361_s26 }
 0x44f   : > { %v1904_v50 = vadd.f32 %v1877_v22, %v1854_v29  ;;  %v2009_v29 = vsel %vm763_vm6, %v5301_v54, %v2008_v45  ;;  %v4401_v54 = vld [vmem:[%s4466_s2] ss:$0 sm:$0xff] }
 0x450   : > { %v1831_v57 = vpop.permute.xlu1 %1830  ;;  %v1861_v44 = vpop.permute.xlu0 %1860 }
 0x451   : > { %v1856_v55 = vadd.f32 %v1831_v57, %v1806_v16  ;;  %v1896_v36 = vadd.f32 %v1861_v44, %v1846_v33  ;;  %v5303_v16 = vld [vmem:[#allocation104_spill] sm:$0xff] }
 0x454   : > { %2026 = vrot.lane.b32.xlu2 %v5298_v15, %s2361_s26 }
 0x456   : > { %v1883_v18 = vpop.permute.xlu2 %1882  ;;  %2024 = vrot.lane.b32.xlu1 %v5299_v10, %s2361_s26  ;;  %2028 = vrot.lane.b32.xlu0 %v5300_v26, %s2361_s26 }
 0x457   : > { %v1907_v30 = vadd.f32 %v1883_v18, %v1857_v0  ;;  %v5304_v0 = vld [vmem:[#allocation108_spill] sm:$0xff] }
 0x458   : > { %v1863_v23 = vpop.permute.xlu1 %1862  ;;  %v1867_v11 = vpop.permute.xlu0 %1866 }
 0x459   : > { %v1897_v63 = vadd.f32 %v1863_v23, %v1847_v47  ;;  %v1899_v40 = vadd.f32 %v1867_v11, %v1849_v20 }
 0x45c   : > { %2032 = vrot.lane.b32.xlu2 %v2009_v29, %s2361_s26 }
 0x45e   : > { %v1915_v19 = vpop.permute.xlu2 %1914  ;;  %2030 = vrot.lane.b32.xlu1 %v5302_v17, %s2361_s26  ;;  %2060 = vrot.lane.b32.xlu0 %v5303_v16, %s2362_s27 }
 0x45f   : > { %v4338_v33 = vadd.f32 %v1915_v19, %v1898_v38 }
 0x460   : > { %v1869_v53 = vpop.permute.xlu1 %1868  ;;  %v1873_v35 = vpop.permute.xlu0 %1872 }
 0x461   : > { %v1900_v41 = vadd.f32 %v1869_v53, %v1850_v56  ;;  %v1902_v6 = vadd.f32 %v1873_v35, %v1852_v14 }
 0x464   : > { %2064 = vrot.lane.b32.xlu2 %v5304_v0, %s2362_s27 }
 0x466   : > { %v1921_v34 = vpop.permute.xlu2 %1920  ;;  %2062 = vrot.lane.b32.xlu1 %v5305_v58, %s2362_s27  ;;  %2066 = vrot.lane.b32.xlu0 %v4899_v31, %s2362_s27 }
 0x467   : > { %v4346_v43 = vadd.f32 %v1921_v34, %v1901_v42 }
 0x468   : > { %v1875_v47 = vpop.permute.xlu1 %1874  ;;  %v1879_v20 = vpop.permute.xlu0 %1878 }
 0x469   : > { %v1903_v24 = vadd.f32 %v1875_v47, %v1853_v60  ;;  %v1905_v52 = vadd.f32 %v1879_v20, %v1855_v2 }
 0x46c   : > { %2070 = vrot.lane.b32.xlu2 %v4904_v62, %s2362_s27 }
 0x46e   : > { %v1927_v39 = vpop.permute.xlu2 %1926  ;;  %2068 = vrot.lane.b32.xlu1 %v3120_v49, %s2362_s27  ;;  %2072 = vrot.lane.b32.xlu0 %v5116_v13, %s2362_s27  ;;  %v2058_v49 = vrot.slane %v4186_v25, 7 }
 0x46f   : > { %v4354_v21 = vadd.f32 %v1927_v39, %v1904_v50 }
 0x470   : > { %v1881_v12 = vpop.permute.xlu1 %1880  ;;  %v1911_v31 = vpop.permute.xlu0 %1910 }
 0x471   : > { %v1906_v38 = vadd.f32 %v1881_v12, %v1856_v55  ;;  %v4356_v7 = vadd.f32 %v1911_v31, %v1896_v36 }
 0x474   : > { %2076 = vrot.lane.b32.xlu2 %v5117_v28, %s2362_s27  ;;  %v2059_v28 = vsel %vm837_vm7, %v5306_v9, %v2058_v49 }
 0x476   : > { %v1933_v51 = vpop.permute.xlu2 %1932  ;;  %2074 = vrot.lane.b32.xlu1 %v5110_v37, %s2362_s27  ;;  %2078 = vrot.lane.b32.xlu0 %v5139_v48, %s2362_s27 }
 0x477   : > { %v4364_v62 = vadd.f32 %v1933_v51, %v1907_v30 }
 0x478   : > { %v1913_v13 = vpop.permute.xlu1 %1912  ;;  %v1917_v56 = vpop.permute.xlu0 %1916 }
 0x479   : > { %v4367_v14 = vadd.f32 %v1913_v13, %v1897_v63  ;;  %v4369_v8 = vadd.f32 %v1917_v56, %v1899_v40 }
 0x47c   : > { %2082 = vrot.lane.b32.xlu2 %v2059_v28, %s2362_s27 }
 0x47e   : > { %v1965_v37 = vpop.permute.xlu2 %1964  ;;  %2080 = vrot.lane.b32.xlu1 %v3892_v46, %s2362_s27 }
 0x47f   : > { %v1998_v63 = vadd.f32 %v1965_v37, %v4338_v33 }
 0x480   : > { %v1919_v48 = vpop.permute.xlu1 %1918  ;;  %v1923_v59 = vpop.permute.xlu0 %1922 }
 0x481   : > { %v4377_v5 = vadd.f32 %v1919_v48, %v1900_v41  ;;  %v4379_v25 = vadd.f32 %v1923_v59, %v1902_v6 }
 0x486   : > { %v1971_v42 = vpop.permute.xlu2 %1970 }
 0x487   : > { %v2001_v33 = vadd.f32 %v1971_v42, %v4346_v43 }
 0x488   : > { %v1925_v32 = vpop.permute.xlu1 %1924  ;;  %v1929_v61 = vpop.permute.xlu0 %1928 }
 0x489   : > { %v4381_v60 = vadd.f32 %v1925_v32, %v1903_v24  ;;  %v4383_v27 = vadd.f32 %v1929_v61, %v1905_v52 }
 0x48e   : > { %v1977_v2 = vpop.permute.xlu2 %1976 }
 0x48f   : > { %v2004_v20 = vadd.f32 %v1977_v2, %v4354_v21 }
 0x490   : > { %v1931_v4 = vpop.permute.xlu1 %1930  ;;  %v1961_v22 = vpop.permute.xlu0 %1960 }
 0x491   : > { %v4385_v3 = vadd.f32 %v1931_v4, %v1906_v38  ;;  %v1996_v52 = vadd.f32 %v1961_v22, %v4356_v7 }
 0x496   : > { %v1983_v1 = vpop.permute.xlu2 %1982 }
 0x497   : > { %v2007_v56 = vadd.f32 %v1983_v1, %v4364_v62 }
 0x498   : > { %v1963_v46 = vpop.permute.xlu1 %1962  ;;  %v1967_v50 = vpop.permute.xlu0 %1966 }
 0x499   : > { %v1997_v7 = vadd.f32 %v1963_v46, %v4367_v14  ;;  %v1999_v28 = vadd.f32 %v1967_v50, %v4369_v8 }
 0x49e   : > { %v2015_v57 = vpop.permute.xlu2 %2014 }
 0x49f   : > { %v2048_v40 = vadd.f32 %v2015_v57, %v1998_v63 }
 0x4a0   : > { %v4387_v44 = vpop.permute.xlu1 %1968  ;;  %v4389_v55 = vpop.permute.xlu0 %1972 }
 0x4a1   : > { %v2000_v50 = vadd.f32 %v4387_v44, %v4377_v5  ;;  %v2002_v57 = vadd.f32 %v4389_v55, %v4379_v25 }
 0x4a6   : > { %v2021_v36 = vpop.permute.xlu2 %2020 }
 0x4a7   : > { %v2051_v41 = vadd.f32 %v2021_v36, %v2001_v33 }
 0x4a8   : > { %v4391_v15 = vpop.permute.xlu1 %1974  ;;  %v4393_v18 = vpop.permute.xlu0 %1978 }
 0x4a9   : > { %v2003_v44 = vadd.f32 %v4391_v15, %v4381_v60  ;;  %v2005_v55 = vadd.f32 %v4393_v18, %v4383_v27 }
 0x4ae   : > { %v2027_v10 = vpop.permute.xlu2 %2026 }
 0x4af   : > { %v2054_v39 = vadd.f32 %v2027_v10, %v2004_v20 }
 0x4b0   : > { %v4395_v26 = vpop.permute.xlu1 %1980  ;;  %v2011_v30 = vpop.permute.xlu0 %2010 }
 0x4b1   : > { %v2046_v12 = vadd.f32 %v2011_v30, %v1996_v52  ;;  %v2006_v27 = vadd.f32 %v4395_v26, %v4385_v3 }
 0x4b6   : > { %v2033_v45 = vpop.permute.xlu2 %2032 }
 0x4b7   : > { %v2057_v37 = vadd.f32 %v2033_v45, %v2007_v56 }
 0x4b8   : > { %v2013_v23 = vpop.permute.xlu1 %2012  ;;  %v2017_v11 = vpop.permute.xlu0 %2016 }
 0x4b9   : > { %v2047_v42 = vadd.f32 %v2013_v23, %v1997_v7  ;;  %v2049_v32 = vadd.f32 %v2017_v11, %v1999_v28 }
 0x4be   : > { %v2065_v29 = vpop.permute.xlu2 %2064 }
 0x4bf   : > { %v2098_v19 = vadd.f32 %v2065_v29, %v2048_v40 }
 0x4c0   : > { %v2019_v17 = vpop.permute.xlu1 %2018  ;;  %v2023_v16 = vpop.permute.xlu0 %2022 }
 0x4c1   : > { %v2114_v53 = vadd.f32 %v4401_v54, %v2098_v19  ;;  %v2050_v30 = vadd.f32 %v2019_v17, %v2000_v50  ;;  %v2052_v45 = vadd.f32 %v2023_v16, %v2002_v57 }
 0x4c3   : > { %v2126_v35 = vpack.c.bf16 %v2114_v53, %v2114_v53 }
 0x4c5   : > { %2139 = vst.msk [vmem:[%s4408_s6 + $0x8] sm:$0xf] %vm2136_vm8, %v2126_v35 }
 0x4c6   : > { %v2071_v6 = vpop.permute.xlu2 %2070 }
 0x4c7   : > { %v2101_v0 = vadd.f32 %v2071_v6, %v2051_v41 }
 0x4c8   : > { %v2025_v34 = vpop.permute.xlu1 %2024  ;;  %v2029_v58 = vpop.permute.xlu0 %2028 }
 0x4c9   : > { %v2117_v47 = vadd.f32 %v4401_v54, %v2101_v0  ;;  %v2053_v17 = vadd.f32 %v2025_v34, %v2003_v44  ;;  %v2055_v16 = vadd.f32 %v2029_v58, %v2005_v55 }
 0x4cb   : > { %v2129_v24 = vpack.c.bf16 %v2117_v47, %v2117_v47 }
 0x4cd   : > { %2142 = vst.msk [vmem:[%s4408_s6 + $0x14] sm:$0xf] %vm2136_vm8, %v2129_v24 }
 0x4ce   : > { %v2077_v43 = vpop.permute.xlu2 %2076 }
 0x4cf   : > { %v2104_v31 = vadd.f32 %v2077_v43, %v2054_v39 }
 0x4d0   : > { %v2031_v38 = vpop.permute.xlu1 %2030  ;;  %v2061_v51 = vpop.permute.xlu0 %2060 }
 0x4d1   : > { %v2120_v49 = vadd.f32 %v4401_v54, %v2104_v31  ;;  %v2096_v13 = vadd.f32 %v2061_v51, %v2046_v12  ;;  %v2056_v0 = vadd.f32 %v2031_v38, %v2006_v27 }
 0x4d3   : > { %v2132_v9 = vpack.c.bf16 %v2120_v49, %v2120_v49  ;;  %v2112_v21 = vadd.f32 %v4401_v54, %v2096_v13 }
 0x4d5   : > { %2145 = vst.msk [vmem:[%s4408_s6 + $0x20] sm:$0xf] %vm2136_vm8, %v2132_v9  ;;  %v2124_v48 = vpack.c.bf16 %v2112_v21, %v2112_v21 }
 0x4d6   : > { %v2083_v59 = vpop.permute.xlu2 %2082 }
 0x4d7   : > { %2137 = vst.msk [vmem:[%s4408_s6] sm:$0xf] %vm2136_vm8, %v2124_v48  ;;  %v2107_v61 = vadd.f32 %v2083_v59, %v2057_v37 }
 0x4d8   : > { %v2063_v62 = vpop.permute.xlu1 %2062  ;;  %v2067_v2 = vpop.permute.xlu0 %2066 }
 0x4d9   : > { %v2123_v4 = vadd.f32 %v4401_v54, %v2107_v61  ;;  %v2097_v14 = vadd.f32 %v2063_v62, %v2047_v42  ;;  %v2099_v22 = vadd.f32 %v2067_v2, %v2049_v32 }
 0x4db   : > { %v2135_v8 = vpack.c.bf16 %v2123_v4, %v2123_v4  ;;  %v2113_v1 = vadd.f32 %v4401_v54, %v2097_v14  ;;  %v2115_v46 = vadd.f32 %v4401_v54, %v2099_v22 }
 0x4dd   : > { %2148 = vst.msk [vmem:[%s4408_s6 + $0x2c] sm:$0xf] %vm2136_vm8, %v2135_v8  ;;  %v2125_v36 = vpack.c.bf16 %v2113_v1, %v2113_v1  ;;  %v2127_v10 = vpack.c.bf16 %v2115_v46, %v2115_v46 }
 0x4df   : > { %2138 = vst.msk [vmem:[%s4408_s6 + $0x4] sm:$0xf] %vm2136_vm8, %v2125_v36 }
 0x4e0   : > { %2140 = vst.msk [vmem:[%s4408_s6 + $0xc] sm:$0xf] %vm2136_vm8, %v2127_v10  ;;  %v2069_v23 = vpop.permute.xlu1 %2068  ;;  %v2073_v11 = vpop.permute.xlu0 %2072 }
 0x4e1   : > { %v2100_v63 = vadd.f32 %v2069_v23, %v2050_v30  ;;  %v2102_v40 = vadd.f32 %v2073_v11, %v2052_v45 }
 0x4e3   : > { %v2116_v5 = vadd.f32 %v4401_v54, %v2100_v63  ;;  %v2118_v25 = vadd.f32 %v4401_v54, %v2102_v40 }
 0x4e5   : > { %v2128_v29 = vpack.c.bf16 %v2116_v5, %v2116_v5  ;;  %v2130_v19 = vpack.c.bf16 %v2118_v25, %v2118_v25 }
 0x4e7   : > { %2141 = vst.msk [vmem:[%s4408_s6 + $0x10] sm:$0xf] %vm2136_vm8, %v2128_v29 }
 0x4e8   : > { %2143 = vst.msk [vmem:[%s4408_s6 + $0x18] sm:$0xf] %vm2136_vm8, %v2130_v19  ;;  %v2075_v53 = vpop.permute.xlu1 %2074  ;;  %v2079_v33 = vpop.permute.xlu0 %2078 }
 0x4e9   : > { %v2103_v35 = vadd.f32 %v2075_v53, %v2053_v17  ;;  %v2105_v41 = vadd.f32 %v2079_v33, %v2055_v16 }
 0x4eb   : > { %v2119_v60 = vadd.f32 %v4401_v54, %v2103_v35  ;;  %v2121_v15 = vadd.f32 %v4401_v54, %v2105_v41 }
 0x4ed   : > { %v2131_v18 = vpack.c.bf16 %v2119_v60, %v2119_v60  ;;  %v2133_v6 = vpack.c.bf16 %v2121_v15, %v2121_v15 }
 0x4ef   : > { %2144 = vst.msk [vmem:[%s4408_s6 + $0x1c] sm:$0xf] %vm2136_vm8, %v2131_v18 }
 0x4f0   : > { %2146 = vst.msk [vmem:[%s4408_s6 + $0x24] sm:$0xf] %vm2136_vm8, %v2133_v6  ;;  %v2081_v34 = vpop.permute.xlu1 %2080 }
 0x4f1   : > { %v2106_v58 = vadd.f32 %v2081_v34, %v2056_v0 }
 0x4f3   : > { %v2122_v47 = vadd.f32 %v4401_v54, %v2106_v58 }
 0x4f5   : > { %v2134_v20 = vpack.c.bf16 %v2122_v47, %v2122_v47 }
 0x4f7   : > { %2147 = vst.msk [vmem:[%s4408_s6 + $0x28] sm:$0xf] %vm2136_vm8, %v2134_v20 }
 0x4f8 PF: > { %s13_s12 = sadd.s32 1, %s2330_s12  }
 0x4f9   : > { %p10_p4 = scmp.ge.s32.totalorder %s13_s12, 4  }
 0x4fb   :  { %12 = sbr.rel (!%p10_p4) target bundleno = 1 (0x1), region = 63 }

</bundles_post_ra>
